<compile_context>
chip_gen: v7x
topology: tpu7x:2x2x1
jax: 0.10.0
libtpu: 0.0.40
codegen_flags: <defaults>
</compile_context>

<pallas_src>
import functools
import math

import numpy as np
import jax
import jax.numpy as jnp
from jax.experimental import pallas as pl
from jax.experimental.pallas import tpu as pltpu

CFG = dict(hidden=32, att_heads=4, layers=2, dropout=0.0, max_seq_len=16)


# --------------------------- small shared math helpers ---------------------------
def _layernorm(x, g, b, eps=1e-5):
    mu = jnp.mean(x, axis=-1, keepdims=True)
    var = jnp.mean((x - mu) ** 2, axis=-1, keepdims=True)
    return (x - mu) * jax.lax.rsqrt(var + eps) * g + b


def _erf_approx(x):
    # Abramowitz & Stegun 7.1.26 (max abs err ~1.5e-7): only mul/add/exp -> VPU+EUP.
    a1, a2, a3, a4, a5 = 0.254829592, -0.284496736, 1.421413741, -1.453152027, 1.061405429
    pp = 0.3275911
    sgn = jnp.where(x >= 0.0, 1.0, -1.0)
    ax = jnp.abs(x)
    t = 1.0 / (1.0 + pp * ax)
    poly = ((((a5 * t + a4) * t + a3) * t + a2) * t + a1) * t
    return sgn * (1.0 - poly * jnp.exp(-ax * ax))


def _gelu_exact(x):
    return 0.5 * x * (1.0 + _erf_approx(x * (1.0 / math.sqrt(2.0))))


# --------------------------- the single fused kernel ---------------------------
def _transformer_kernel(ab_ref, x_ref, e_ref, gsel_ref, hsel_ref,
                        nw_ref, nb_ref, ew_ref, eb_ref,
                        wqkv_ref, bqkv_ref, wo_ref, bo_ref,
                        we1_ref, be1_ref, we2_ref, be2_ref, we3_ref, be3_ref,
                        wp1_ref, bp1_ref, wp2_ref, bp2_ref,
                        g1_ref, b1_ref, g2_ref, b2_ref,
                        aw1_ref, ab1_ref, aw2_ref, ab2_ref, cw_ref, cb_ref,
                        logits_ref, value_ref,
                        *, S, H, nH, L, node_f, edge_f):
    f32 = jnp.float32
    dh = H // nH
    scale = 1.0 / math.sqrt(dh)

    # Constant selector matrices (precomputed host-side, VMEM-resident):
    #   G[i, r]  = 1 iff r // S == i     (S, S*S)
    #   Hs[r, j] = 1 iff r %  S == j     (S*S, S)
    # so (G @ (Hs * col))[i, j] == col[i*S + j]: a matmul-based "unflatten" of
    # (S*S,) -> (S, S) with no in-kernel reshape / transpose / int div-mod.
    G = gsel_ref[...]
    Hs = hsel_ref[...]

    # ---- node_proc / edge_proc: tiny-K projections as VPU broadcast-FMAs ----
    xn = x_ref[0]                                    # (S, node_f)
    nw = nw_ref[...]                                 # (node_f, H)
    x = nb_ref[...]                                  # (1, H) -> broadcasts up
    for f in range(node_f):
        x = x + xn[:, f:f + 1] * nw[f:f + 1, :]
    x = jnp.maximum(x, 0.0)                          # (S, H)

    ein = e_ref[0]                                   # (SS, edge_f)
    ew = ew_ref[...]                                 # (edge_f, H)
    e = eb_ref[...]
    for f in range(edge_f):
        e = e + ein[:, f:f + 1] * ew[f:f + 1, :]
    e = jnp.maximum(e, 0.0)                          # (SS, H)

    # ---- attention layers (static unroll; all activations stay on-chip) ----
    for l in range(L):
        alpha = ab_ref[l, 0]
        beta = ab_ref[l, 1]

        # fused Q/K/V projection: one (S, H) x (H, 3H) matmul
        qkv = jnp.dot(x, wqkv_ref[l], preferred_element_type=f32) + bqkv_ref[l]
        q = qkv[:, 0:H] * scale
        k = qkv[:, H:2 * H]
        v = qkv[:, 2 * H:3 * H]

        # edge-coefficient MLP: (SS, H) -> (SS, nH)
        h1 = jnp.maximum(jnp.dot(e, we1_ref[l], preferred_element_type=f32) + be1_ref[l], 0.0)
        h2 = jnp.maximum(jnp.dot(h1, we2_ref[l], preferred_element_type=f32) + be2_ref[l], 0.0)
        c = jnp.dot(h2, we3_ref[l], preferred_element_type=f32) + be3_ref[l]    # (SS, nH)

        wo_l = wo_ref[l]                             # (H, H)
        res = bo_ref[l]                              # (1, H) -> broadcasts up
        for h in range(nH):                          # static head unroll
            qh = q[:, h * dh:(h + 1) * dh]
            kh = k[:, h * dh:(h + 1) * dh]
            vh = v[:, h * dh:(h + 1) * dh]
            s = jax.lax.dot_general(qh, kh, (((1,), (1,)), ((), ())),
                                    preferred_element_type=f32)                 # (S, S)
            # per-head (S, S) edge bias via selector matmuls
            ch = jnp.dot(G, Hs * c[:, h:h + 1], preferred_element_type=f32)     # (S, S)
            s = alpha * s + beta * ch
            s = s - jnp.max(s, axis=-1, keepdims=True)
            p = jnp.exp(s)
            p = p * pl.reciprocal(jnp.sum(p, axis=-1, keepdims=True), approx=True)
            oh = jnp.dot(p, vh, preferred_element_type=f32)                     # (S, dh)
            # concat-free head merge: fold the head concat into out_lin row blocks
            res = res + jnp.dot(oh, wo_l[h * dh:(h + 1) * dh, :],
                                preferred_element_type=f32)

        sa = _layernorm(res + x, g1_ref[l], b1_ref[l])
        pre = jnp.dot(sa, wp1_ref[l], preferred_element_type=f32) + bp1_ref[l]  # (S, 2H)
        pp = jnp.dot(_gelu_exact(pre), wp2_ref[l], preferred_element_type=f32) + bp2_ref[l]
        x = _layernorm(pp + sa, g2_ref[l], b2_ref[l])

    # ---- heads: action_net (node path) + critic ----
    # NOTE: matches the PyTorch reference -- padded nodes still take part in the
    # attention softmax and in the mean pooling; the mask only hits the logits.
    gf = jnp.mean(x, axis=0, keepdims=True)                                      # (1, H)
    ha = jnp.maximum(jnp.dot(x, aw1_ref[...], preferred_element_type=f32) + ab1_ref[...], 0.0)
    logits_ref[0] = jnp.dot(ha, aw2_ref[...], preferred_element_type=f32) + ab2_ref[...]
    value_ref[0] = jnp.dot(gf, cw_ref[...], preferred_element_type=f32) + cb_ref[...]


def _fused_forward(params, x_nodes, edge_flat, cfg):
    B, S, node_f = x_nodes.shape
    SS, edge_f = edge_flat.shape[1], edge_flat.shape[2]
    H, nH, L = cfg["hidden"], cfg["att_heads"], cfg["layers"]

    layers = params["layers"]
    stack = lambda name: jnp.stack([lp[name] for lp in layers], axis=0)
    wqkv = jnp.stack([jnp.concatenate([lp["wq"], lp["wk"], lp["wv"]], axis=1) for lp in layers])
    bqkv = jnp.stack([jnp.concatenate([lp["bq"], lp["bk"], lp["bv"]], axis=1) for lp in layers])
    ab = jnp.stack([lp["alpha_beta"] for lp in layers])                           # (L, 2)

    # host-side selector constants (row-major unflatten of S*S -> (S, S))
    g_sel = jnp.asarray((np.arange(SS)[None, :] // S ==
                         np.arange(S)[:, None]).astype(np.float32))               # (S, SS)
    h_sel = jnp.asarray((np.arange(SS)[:, None] % S ==
                         np.arange(S)[None, :]).astype(np.float32))               # (SS, S)

    operands = (ab, x_nodes, edge_flat, g_sel, h_sel,
                params["node_w"], params["node_b"], params["edge_w"], params["edge_b"],
                wqkv, bqkv, stack("wo"), stack("bo"),
                stack("we1"), stack("be1"), stack("we2"), stack("be2"),
                stack("we3"), stack("be3"),
                stack("wp1"), stack("bp1"), stack("wp2"), stack("bp2"),
                stack("g1"), stack("b1"), stack("g2"), stack("b2"),
                params["act_w1"], params["act_b1"], params["act_w2"], params["act_b2"],
                params["critic_w"], params["critic_b"])

    def rep_spec(a):                                  # full array, same block every grid step
        zeros = (0,) * a.ndim
        return pl.BlockSpec(a.shape, lambda b, _z=zeros: _z)

    in_specs = [pl.BlockSpec(memory_space=pltpu.MemorySpace.SMEM),               # alpha/beta
                pl.BlockSpec((1, S, node_f), lambda b: (b, 0, 0)),
                pl.BlockSpec((1, SS, edge_f), lambda b: (b, 0, 0))]
    in_specs += [rep_spec(a) for a in operands[3:]]

    out_shape = (jax.ShapeDtypeStruct((B, S, 1), jnp.float32),
                 jax.ShapeDtypeStruct((B, 1, 1), jnp.float32))
    out_specs = (pl.BlockSpec((1, S, 1), lambda b: (b, 0, 0)),
                 pl.BlockSpec((1, 1, 1), lambda b: (b, 0, 0)))

    kernel = functools.partial(_transformer_kernel, S=S, H=H, nH=nH, L=L,
                               node_f=node_f, edge_f=edge_f)
    logits3, value3 = pl.pallas_call(
        kernel,
        out_shape=out_shape,
        grid=(B,),
        in_specs=in_specs,
        out_specs=out_specs,
        compiler_params=pltpu.CompilerParams(dimension_semantics=("parallel",)),
    )(*operands)
    return logits3[..., 0], value3[:, :, 0]           # (B, S), (B, 1)


# --------------------------- full forward (kernel + tiny JAX glue) ---------------------------
def transformer_forward(params, x_nodes, edge_dense, mask, *, cfg, pick_max=True, rng=None):
    B, S, _ = x_nodes.shape
    edge_flat = edge_dense.reshape(B, S * S, edge_dense.shape[-1])
    logits, value = _fused_forward(params, x_nodes, edge_flat, cfg)

    # TODO(synk): action_type == 'edge' path (edge_index gather + concat) not implemented.
    logits = jnp.where(mask, logits, -jnp.inf)
    logz = jax.nn.logsumexp(logits, axis=-1, keepdims=True)
    logp = logits - logz
    if pick_max:
        actions = jnp.argmax(logits, axis=-1)
    else:
        actions = jax.random.categorical(rng, logits, axis=-1)
    logprobs = jnp.take_along_axis(logp, actions[:, None], axis=1)[:, 0]
    probs = jnp.exp(logp)
    min_real = jnp.finfo(logits.dtype).min
    entropy = -jnp.sum(probs * jnp.maximum(logp, min_real), axis=-1)
    return actions, logprobs, entropy, value


# --------------------------- pure-JAX reference (for correctness check) ---------------------------
def _reference_forward(params, x_nodes, edge_dense, cfg):
    H, nH, L = cfg["hidden"], cfg["att_heads"], cfg["layers"]
    B, S, _ = x_nodes.shape
    dh = H // nH
    x = jax.nn.relu(x_nodes @ params["node_w"] + params["node_b"])
    e = jax.nn.relu(edge_dense @ params["edge_w"] + params["edge_b"]).reshape(B, S * S, H)
    for lp in params["layers"]:
        sh = lambda t: t.reshape(B, S, nH, dh).transpose(0, 2, 1, 3)
        q = sh(x @ lp["wq"] + lp["bq"]) / math.sqrt(dh)
        k = sh(x @ lp["wk"] + lp["bk"])
        v = sh(x @ lp["wv"] + lp["bv"])
        scores = jnp.einsum("bhqd,bhkd->bhqk", q, k)
        h1 = jax.nn.relu(e @ lp["we1"] + lp["be1"])
        h2 = jax.nn.relu(h1 @ lp["we2"] + lp["be2"])
        c = (h2 @ lp["we3"] + lp["be3"]).reshape(B, S, S, nH).transpose(0, 3, 1, 2)
        scores = lp["alpha_beta"][0] * scores + lp["alpha_beta"][1] * c
        w = jax.nn.softmax(scores, axis=-1)
        res = jnp.einsum("bhqk,bhkd->bhqd", w, v).transpose(0, 2, 1, 3).reshape(B, S, H)
        res = res @ lp["wo"] + lp["bo"]
        sa = _layernorm(res + x, lp["g1"], lp["b1"])
        pre = sa @ lp["wp1"] + lp["bp1"]
        pp = jax.nn.gelu(pre, approximate=False) @ lp["wp2"] + lp["bp2"]
        x = _layernorm(pp + sa, lp["g2"], lp["b2"])
    gf = x.mean(axis=1)
    h1a = jax.nn.relu(x @ params["act_w1"] + params["act_b1"])
    logits = (h1a @ params["act_w2"] + params["act_b2"])[..., 0]
    value = gf @ params["critic_w"] + params["critic_b"]
    return logits, value


# --------------------------- deterministic parameter init (PyTorch Linear default) ---------------------------
def _init_linear(key, fan_in, fan_out):
    kw, kb = jax.random.split(key)
    bound = 1.0 / math.sqrt(fan_in)
    w = jax.random.uniform(kw, (fan_in, fan_out), jnp.float32, -bound, bound)
    b = jax.random.uniform(kb, (1, fan_out), jnp.float32, -bound, bound)
    return w, b


def make_params(key, cfg, node_f, edge_f):
    H, nH, L = cfg["hidden"], cfg["att_heads"], cfg["layers"]
    keys = iter(jax.random.split(key, 8 + 16 * L))
    p = {}
    p["node_w"], p["node_b"] = _init_linear(next(keys), node_f, H)
    p["edge_w"], p["edge_b"] = _init_linear(next(keys), edge_f, H)
    p["act_w1"], p["act_b1"] = _init_linear(next(keys), H, H)
    p["act_w2"], p["act_b2"] = _init_linear(next(keys), H, 1)
    p["critic_w"], p["critic_b"] = _init_linear(next(keys), H, 1)
    layers = []
    for _ in range(L):
        lp = {}
        lp["wq"], lp["bq"] = _init_linear(next(keys), H, H)
        lp["wk"], lp["bk"] = _init_linear(next(keys), H, H)
        lp["wv"], lp["bv"] = _init_linear(next(keys), H, H)
        lp["wo"], lp["bo"] = _init_linear(next(keys), H, H)
        lp["we1"], lp["be1"] = _init_linear(next(keys), H, H)
        lp["we2"], lp["be2"] = _init_linear(next(keys), H, H)
        lp["we3"], lp["be3"] = _init_linear(next(keys), H, nH)
        lp["wp1"], lp["bp1"] = _init_linear(next(keys), H, 2 * H)
        lp["wp2"], lp["bp2"] = _init_linear(next(keys), 2 * H, H)
        lp["g1"] = jnp.ones((1, H), jnp.float32)
        lp["b1"] = jnp.zeros((1, H), jnp.float32)
        lp["g2"] = jnp.ones((1, H), jnp.float32)
        lp["b2"] = jnp.zeros((1, H), jnp.float32)
        lp["alpha_beta"] = jnp.ones((2,), jnp.float32)            # alpha=1, beta=1
        layers.append(lp)
    p["layers"] = layers
    return p


if __name__ == "__main__":
    B, S, NODE_F, EDGE_F = 2, 8, 6, 3
    root = jax.random.PRNGKey(0)
    k_param, k_x, k_e = jax.random.split(root, 3)

    params = make_params(k_param, CFG, NODE_F, EDGE_F)
    x_nodes = jax.random.normal(k_x, (B, S, NODE_F), jnp.float32)
    edge_dense = jax.random.normal(k_e, (B, S, S, EDGE_F), jnp.float32)
    mask = jnp.ones((B, S), bool).at[0, 2].set(False).at[1, 5].set(False)

    fwd = jax.jit(functools.partial(transformer_forward, cfg=CFG, pick_max=True))
    actions, logprobs, entropy, value = fwd(params, x_nodes, edge_dense, mask)
    jax.block_until_ready((actions, logprobs, entropy, value))

    assert actions.shape == (B,)
    assert logprobs.shape == (B,)
    assert entropy.shape == (B,)
    assert value.shape == (B, 1)

    # Correctness check against a pure-JAX reference (also validates the edge-coefficient
    # permutation / head folding).  Loose tolerance covers the EUP approx reciprocal and
    # the polynomial erf-GELU.
    kern_logits, kern_value = _fused_forward(params, x_nodes,
                                             edge_dense.reshape(B, S * S, EDGE_F), CFG)
    ref_logits, ref_value = _reference_forward(params, x_nodes, edge_dense, CFG)
    assert jnp.allclose(kern_logits, ref_logits, rtol=5e-2, atol=5e-2)
    assert jnp.allclose(kern_value, ref_value, rtol=5e-2, atol=5e-2)

    print("KERNEL_OK")
</pallas_src>

<mosaic_0001>
module attributes {stable_mosaic.version = 11 : i64} {
  func.func @_transformer_kernel(%arg0: i32, %arg1: memref<2x2xf32, #tpu.memory_space<smem>>, %arg2: memref<1x8x6xf32, #tpu.memory_space<vmem>>, %arg3: memref<1x64x3xf32, #tpu.memory_space<vmem>>, %arg4: memref<8x64xf32, #tpu.memory_space<vmem>>, %arg5: memref<64x8xf32, #tpu.memory_space<vmem>>, %arg6: memref<6x32xf32, #tpu.memory_space<vmem>>, %arg7: memref<1x32xf32, #tpu.memory_space<vmem>>, %arg8: memref<3x32xf32, #tpu.memory_space<vmem>>, %arg9: memref<1x32xf32, #tpu.memory_space<vmem>>, %arg10: memref<2x32x96xf32, #tpu.memory_space<vmem>>, %arg11: memref<2x1x96xf32, #tpu.memory_space<vmem>>, %arg12: memref<2x32x32xf32, #tpu.memory_space<vmem>>, %arg13: memref<2x1x32xf32, #tpu.memory_space<vmem>>, %arg14: memref<2x32x32xf32, #tpu.memory_space<vmem>>, %arg15: memref<2x1x32xf32, #tpu.memory_space<vmem>>, %arg16: memref<2x32x32xf32, #tpu.memory_space<vmem>>, %arg17: memref<2x1x32xf32, #tpu.memory_space<vmem>>, %arg18: memref<2x32x4xf32, #tpu.memory_space<vmem>>, %arg19: memref<2x1x4xf32, #tpu.memory_space<vmem>>, %arg20: memref<2x32x64xf32, #tpu.memory_space<vmem>>, %arg21: memref<2x1x64xf32, #tpu.memory_space<vmem>>, %arg22: memref<2x64x32xf32, #tpu.memory_space<vmem>>, %arg23: memref<2x1x32xf32, #tpu.memory_space<vmem>>, %arg24: memref<2x1x32xf32, #tpu.memory_space<vmem>>, %arg25: memref<2x1x32xf32, #tpu.memory_space<vmem>>, %arg26: memref<2x1x32xf32, #tpu.memory_space<vmem>>, %arg27: memref<2x1x32xf32, #tpu.memory_space<vmem>>, %arg28: memref<32x32xf32, #tpu.memory_space<vmem>>, %arg29: memref<1x32xf32, #tpu.memory_space<vmem>>, %arg30: memref<32x1xf32, #tpu.memory_space<vmem>>, %arg31: memref<1x1xf32, #tpu.memory_space<vmem>>, %arg32: memref<32x1xf32, #tpu.memory_space<vmem>>, %arg33: memref<1x1xf32, #tpu.memory_space<vmem>>, %arg34: memref<1x8x1xf32, #tpu.memory_space<vmem>>, %arg35: memref<1x1x1xf32, #tpu.memory_space<vmem>>) attributes {dimension_semantics = [#tpu.dimension_semantics<parallel>], iteration_bounds = array<i64: 2>, scalar_prefetch = 0 : i64, scratch_operands = 0 : i64, tpu.core_type = #tpu.core_type<tc>, window_params = [{transform_indices = @transform_0, window_bounds = array<i64: 2, 2>}, {transform_indices = @transform_1, window_bounds = array<i64: 1, 8, 6>}, {transform_indices = @transform_2, window_bounds = array<i64: 1, 64, 3>}, {pipeline_mode = #tpu.pipeline_mode<synchronous>, transform_indices = @transform_3, window_bounds = array<i64: 8, 64>}, {pipeline_mode = #tpu.pipeline_mode<synchronous>, transform_indices = @transform_4, window_bounds = array<i64: 64, 8>}, {pipeline_mode = #tpu.pipeline_mode<synchronous>, transform_indices = @transform_5, window_bounds = array<i64: 6, 32>}, {pipeline_mode = #tpu.pipeline_mode<synchronous>, transform_indices = @transform_6, window_bounds = array<i64: 1, 32>}, {pipeline_mode = #tpu.pipeline_mode<synchronous>, transform_indices = @transform_7, window_bounds = array<i64: 3, 32>}, {pipeline_mode = #tpu.pipeline_mode<synchronous>, transform_indices = @transform_8, window_bounds = array<i64: 1, 32>}, {pipeline_mode = #tpu.pipeline_mode<synchronous>, transform_indices = @transform_9, window_bounds = array<i64: 2, 32, 96>}, {pipeline_mode = #tpu.pipeline_mode<synchronous>, transform_indices = @transform_10, window_bounds = array<i64: 2, 1, 96>}, {pipeline_mode = #tpu.pipeline_mode<synchronous>, transform_indices = @transform_11, window_bounds = array<i64: 2, 32, 32>}, {pipeline_mode = #tpu.pipeline_mode<synchronous>, transform_indices = @transform_12, window_bounds = array<i64: 2, 1, 32>}, {pipeline_mode = #tpu.pipeline_mode<synchronous>, transform_indices = @transform_13, window_bounds = array<i64: 2, 32, 32>}, {pipeline_mode = #tpu.pipeline_mode<synchronous>, transform_indices = @transform_14, window_bounds = array<i64: 2, 1, 32>}, {pipeline_mode = #tpu.pipeline_mode<synchronous>, transform_indices = @transform_15, window_bounds = array<i64: 2, 32, 32>}, {pipeline_mode = #tpu.pipeline_mode<synchronous>, transform_indices = @transform_16, window_bounds = array<i64: 2, 1, 32>}, {pipeline_mode = #tpu.pipeline_mode<synchronous>, transform_indices = @transform_17, window_bounds = array<i64: 2, 32, 4>}, {pipeline_mode = #tpu.pipeline_mode<synchronous>, transform_indices = @transform_18, window_bounds = array<i64: 2, 1, 4>}, {pipeline_mode = #tpu.pipeline_mode<synchronous>, transform_indices = @transform_19, window_bounds = array<i64: 2, 32, 64>}, {pipeline_mode = #tpu.pipeline_mode<synchronous>, transform_indices = @transform_20, window_bounds = array<i64: 2, 1, 64>}, {pipeline_mode = #tpu.pipeline_mode<synchronous>, transform_indices = @transform_21, window_bounds = array<i64: 2, 64, 32>}, {pipeline_mode = #tpu.pipeline_mode<synchronous>, transform_indices = @transform_22, window_bounds = array<i64: 2, 1, 32>}, {pipeline_mode = #tpu.pipeline_mode<synchronous>, transform_indices = @transform_23, window_bounds = array<i64: 2, 1, 32>}, {pipeline_mode = #tpu.pipeline_mode<synchronous>, transform_indices = @transform_24, window_bounds = array<i64: 2, 1, 32>}, {pipeline_mode = #tpu.pipeline_mode<synchronous>, transform_indices = @transform_25, window_bounds = array<i64: 2, 1, 32>}, {pipeline_mode = #tpu.pipeline_mode<synchronous>, transform_indices = @transform_26, window_bounds = array<i64: 2, 1, 32>}, {pipeline_mode = #tpu.pipeline_mode<synchronous>, transform_indices = @transform_27, window_bounds = array<i64: 32, 32>}, {pipeline_mode = #tpu.pipeline_mode<synchronous>, transform_indices = @transform_28, window_bounds = array<i64: 1, 32>}, {pipeline_mode = #tpu.pipeline_mode<synchronous>, transform_indices = @transform_29, window_bounds = array<i64: 32, 1>}, {pipeline_mode = #tpu.pipeline_mode<synchronous>, transform_indices = @transform_30, window_bounds = array<i64: 1, 1>}, {pipeline_mode = #tpu.pipeline_mode<synchronous>, transform_indices = @transform_31, window_bounds = array<i64: 32, 1>}, {pipeline_mode = #tpu.pipeline_mode<synchronous>, transform_indices = @transform_32, window_bounds = array<i64: 1, 1>}, {transform_indices = @transform_33, window_bounds = array<i64: 1, 8, 1>}, {transform_indices = @transform_34, window_bounds = array<i64: 1, 1, 1>}]} {
    %c0 = arith.constant 0 : index
    %c0_0 = arith.constant 0 : index
    %0 = vector.load %arg4[%c0, %c0_0] : memref<8x64xf32, #tpu.memory_space<vmem>>, vector<8x64xf32>
    %c0_1 = arith.constant 0 : index
    %c0_2 = arith.constant 0 : index
    %1 = vector.load %arg5[%c0_1, %c0_2] : memref<64x8xf32, #tpu.memory_space<vmem>>, vector<64x8xf32>
    %c0_3 = arith.constant 0 : index
    %c0_4 = arith.constant 0 : index
    %c0_5 = arith.constant 0 : index
    %2 = vector.load %arg2[%c0_3, %c0_4, %c0_5] : memref<1x8x6xf32, #tpu.memory_space<vmem>>, vector<1x8x6xf32>
    %3 = vector.shape_cast %2 : vector<1x8x6xf32> to vector<8x6xf32>
    %c0_6 = arith.constant 0 : index
    %c0_7 = arith.constant 0 : index
    %4 = vector.load %arg6[%c0_6, %c0_7] : memref<6x32xf32, #tpu.memory_space<vmem>>, vector<6x32xf32>
    %c0_8 = arith.constant 0 : index
    %c0_9 = arith.constant 0 : index
    %5 = vector.load %arg7[%c0_8, %c0_9] : memref<1x32xf32, #tpu.memory_space<vmem>>, vector<1x32xf32>
    %6 = vector.extract_strided_slice %3 {offsets = [0, 0], sizes = [8, 1], strides = [1, 1]} : vector<8x6xf32> to vector<8x1xf32>
    %7 = vector.extract_strided_slice %4 {offsets = [0, 0], sizes = [1, 32], strides = [1, 1]} : vector<6x32xf32> to vector<1x32xf32>
    %8 = vector.broadcast %6 : vector<8x1xf32> to vector<8x32xf32>
    %9 = vector.broadcast %7 : vector<1x32xf32> to vector<8x32xf32>
    %10 = arith.mulf %8, %9 : vector<8x32xf32>
    %11 = vector.broadcast %5 : vector<1x32xf32> to vector<8x32xf32>
    %12 = arith.addf %11, %10 : vector<8x32xf32>
    %13 = vector.extract_strided_slice %3 {offsets = [0, 1], sizes = [8, 1], strides = [1, 1]} : vector<8x6xf32> to vector<8x1xf32>
    %14 = vector.extract_strided_slice %4 {offsets = [1, 0], sizes = [1, 32], strides = [1, 1]} : vector<6x32xf32> to vector<1x32xf32>
    %15 = vector.broadcast %13 : vector<8x1xf32> to vector<8x32xf32>
    %16 = vector.broadcast %14 : vector<1x32xf32> to vector<8x32xf32>
    %17 = arith.mulf %15, %16 : vector<8x32xf32>
    %18 = arith.addf %12, %17 : vector<8x32xf32>
    %19 = vector.extract_strided_slice %3 {offsets = [0, 2], sizes = [8, 1], strides = [1, 1]} : vector<8x6xf32> to vector<8x1xf32>
    %20 = vector.extract_strided_slice %4 {offsets = [2, 0], sizes = [1, 32], strides = [1, 1]} : vector<6x32xf32> to vector<1x32xf32>
    %21 = vector.broadcast %19 : vector<8x1xf32> to vector<8x32xf32>
    %22 = vector.broadcast %20 : vector<1x32xf32> to vector<8x32xf32>
    %23 = arith.mulf %21, %22 : vector<8x32xf32>
    %24 = arith.addf %18, %23 : vector<8x32xf32>
    %25 = vector.extract_strided_slice %3 {offsets = [0, 3], sizes = [8, 1], strides = [1, 1]} : vector<8x6xf32> to vector<8x1xf32>
    %26 = vector.extract_strided_slice %4 {offsets = [3, 0], sizes = [1, 32], strides = [1, 1]} : vector<6x32xf32> to vector<1x32xf32>
    %27 = vector.broadcast %25 : vector<8x1xf32> to vector<8x32xf32>
    %28 = vector.broadcast %26 : vector<1x32xf32> to vector<8x32xf32>
    %29 = arith.mulf %27, %28 : vector<8x32xf32>
    %30 = arith.addf %24, %29 : vector<8x32xf32>
    %31 = vector.extract_strided_slice %3 {offsets = [0, 4], sizes = [8, 1], strides = [1, 1]} : vector<8x6xf32> to vector<8x1xf32>
    %32 = vector.extract_strided_slice %4 {offsets = [4, 0], sizes = [1, 32], strides = [1, 1]} : vector<6x32xf32> to vector<1x32xf32>
    %33 = vector.broadcast %31 : vector<8x1xf32> to vector<8x32xf32>
    %34 = vector.broadcast %32 : vector<1x32xf32> to vector<8x32xf32>
    %35 = arith.mulf %33, %34 : vector<8x32xf32>
    %36 = arith.addf %30, %35 : vector<8x32xf32>
    %37 = vector.extract_strided_slice %3 {offsets = [0, 5], sizes = [8, 1], strides = [1, 1]} : vector<8x6xf32> to vector<8x1xf32>
    %38 = vector.extract_strided_slice %4 {offsets = [5, 0], sizes = [1, 32], strides = [1, 1]} : vector<6x32xf32> to vector<1x32xf32>
    %39 = vector.broadcast %37 : vector<8x1xf32> to vector<8x32xf32>
    %40 = vector.broadcast %38 : vector<1x32xf32> to vector<8x32xf32>
    %41 = arith.mulf %39, %40 : vector<8x32xf32>
    %42 = arith.addf %36, %41 : vector<8x32xf32>
    %cst = arith.constant 0.000000e+00 : f32
    %43 = vector.broadcast %cst : f32 to vector<8x32xf32>
    %44 = arith.maximumf %42, %43 : vector<8x32xf32>
    %c0_10 = arith.constant 0 : index
    %c0_11 = arith.constant 0 : index
    %c0_12 = arith.constant 0 : index
    %45 = vector.load %arg3[%c0_10, %c0_11, %c0_12] : memref<1x64x3xf32, #tpu.memory_space<vmem>>, vector<1x64x3xf32>
    %46 = vector.shape_cast %45 : vector<1x64x3xf32> to vector<64x3xf32>
    %c0_13 = arith.constant 0 : index
    %c0_14 = arith.constant 0 : index
    %47 = vector.load %arg8[%c0_13, %c0_14] : memref<3x32xf32, #tpu.memory_space<vmem>>, vector<3x32xf32>
    %c0_15 = arith.constant 0 : index
    %c0_16 = arith.constant 0 : index
    %48 = vector.load %arg9[%c0_15, %c0_16] : memref<1x32xf32, #tpu.memory_space<vmem>>, vector<1x32xf32>
    %49 = vector.extract_strided_slice %46 {offsets = [0, 0], sizes = [64, 1], strides = [1, 1]} : vector<64x3xf32> to vector<64x1xf32>
    %50 = vector.extract_strided_slice %47 {offsets = [0, 0], sizes = [1, 32], strides = [1, 1]} : vector<3x32xf32> to vector<1x32xf32>
    %51 = vector.broadcast %49 : vector<64x1xf32> to vector<64x32xf32>
    %52 = vector.broadcast %50 : vector<1x32xf32> to vector<64x32xf32>
    %53 = arith.mulf %51, %52 : vector<64x32xf32>
    %54 = vector.broadcast %48 : vector<1x32xf32> to vector<64x32xf32>
    %55 = arith.addf %54, %53 : vector<64x32xf32>
    %56 = vector.extract_strided_slice %46 {offsets = [0, 1], sizes = [64, 1], strides = [1, 1]} : vector<64x3xf32> to vector<64x1xf32>
    %57 = vector.extract_strided_slice %47 {offsets = [1, 0], sizes = [1, 32], strides = [1, 1]} : vector<3x32xf32> to vector<1x32xf32>
    %58 = vector.broadcast %56 : vector<64x1xf32> to vector<64x32xf32>
    %59 = vector.broadcast %57 : vector<1x32xf32> to vector<64x32xf32>
    %60 = arith.mulf %58, %59 : vector<64x32xf32>
    %61 = arith.addf %55, %60 : vector<64x32xf32>
    %62 = vector.extract_strided_slice %46 {offsets = [0, 2], sizes = [64, 1], strides = [1, 1]} : vector<64x3xf32> to vector<64x1xf32>
    %63 = vector.extract_strided_slice %47 {offsets = [2, 0], sizes = [1, 32], strides = [1, 1]} : vector<3x32xf32> to vector<1x32xf32>
    %64 = vector.broadcast %62 : vector<64x1xf32> to vector<64x32xf32>
    %65 = vector.broadcast %63 : vector<1x32xf32> to vector<64x32xf32>
    %66 = arith.mulf %64, %65 : vector<64x32xf32>
    %67 = arith.addf %61, %66 : vector<64x32xf32>
    %cst_17 = arith.constant 0.000000e+00 : f32
    %68 = vector.broadcast %cst_17 : f32 to vector<64x32xf32>
    %69 = arith.maximumf %67, %68 : vector<64x32xf32>
    %c0_18 = arith.constant 0 : index
    %c0_19 = arith.constant 0 : index
    %70 = memref.load %arg1[%c0_18, %c0_19] : memref<2x2xf32, #tpu.memory_space<smem>>
    %c0_20 = arith.constant 0 : index
    %c1 = arith.constant 1 : index
    %71 = memref.load %arg1[%c0_20, %c1] : memref<2x2xf32, #tpu.memory_space<smem>>
    %c0_21 = arith.constant 0 : index
    %c0_22 = arith.constant 0 : index
    %c0_23 = arith.constant 0 : index
    %72 = vector.load %arg10[%c0_21, %c0_22, %c0_23] : memref<2x32x96xf32, #tpu.memory_space<vmem>>, vector<1x32x96xf32>
    %73 = vector.shape_cast %72 : vector<1x32x96xf32> to vector<32x96xf32>
    %cst_24 = arith.constant dense<0.000000e+00> : vector<8x96xf32>
    %74 = tpu.matmul %44, %73, %cst_24 {dimension_numbers = #tpu.dot_dimension_numbers<[1], [0], [0], [1], [0, 0, 1, 1], [], []>} : vector<8x32xf32>, vector<32x96xf32>, vector<8x96xf32> -> vector<8x96xf32>
    %c0_25 = arith.constant 0 : index
    %c0_26 = arith.constant 0 : index
    %c0_27 = arith.constant 0 : index
    %75 = vector.load %arg11[%c0_25, %c0_26, %c0_27] : memref<2x1x96xf32, #tpu.memory_space<vmem>>, vector<1x1x96xf32>
    %76 = vector.shape_cast %75 : vector<1x1x96xf32> to vector<1x96xf32>
    %77 = vector.broadcast %76 : vector<1x96xf32> to vector<8x96xf32>
    %78 = arith.addf %74, %77 : vector<8x96xf32>
    %79 = vector.extract_strided_slice %78 {offsets = [0, 0], sizes = [8, 32], strides = [1, 1]} : vector<8x96xf32> to vector<8x32xf32>
    %cst_28 = arith.constant 0.353553385 : f32
    %80 = vector.broadcast %cst_28 : f32 to vector<8x32xf32>
    %81 = arith.mulf %79, %80 : vector<8x32xf32>
    %82 = vector.extract_strided_slice %78 {offsets = [0, 32], sizes = [8, 32], strides = [1, 1]} : vector<8x96xf32> to vector<8x32xf32>
    %83 = vector.extract_strided_slice %78 {offsets = [0, 64], sizes = [8, 32], strides = [1, 1]} : vector<8x96xf32> to vector<8x32xf32>
    %c0_29 = arith.constant 0 : index
    %c0_30 = arith.constant 0 : index
    %c0_31 = arith.constant 0 : index
    %84 = vector.load %arg14[%c0_29, %c0_30, %c0_31] : memref<2x32x32xf32, #tpu.memory_space<vmem>>, vector<1x32x32xf32>
    %85 = vector.shape_cast %84 : vector<1x32x32xf32> to vector<32x32xf32>
    %cst_32 = arith.constant dense<0.000000e+00> : vector<64x32xf32>
    %86 = tpu.matmul %69, %85, %cst_32 {dimension_numbers = #tpu.dot_dimension_numbers<[1], [0], [0], [1], [0, 0, 1, 1], [], []>} : vector<64x32xf32>, vector<32x32xf32>, vector<64x32xf32> -> vector<64x32xf32>
    %c0_33 = arith.constant 0 : index
    %c0_34 = arith.constant 0 : index
    %c0_35 = arith.constant 0 : index
    %87 = vector.load %arg15[%c0_33, %c0_34, %c0_35] : memref<2x1x32xf32, #tpu.memory_space<vmem>>, vector<1x1x32xf32>
    %88 = vector.shape_cast %87 : vector<1x1x32xf32> to vector<1x32xf32>
    %89 = vector.broadcast %88 : vector<1x32xf32> to vector<64x32xf32>
    %90 = arith.addf %86, %89 : vector<64x32xf32>
    %cst_36 = arith.constant 0.000000e+00 : f32
    %91 = vector.broadcast %cst_36 : f32 to vector<64x32xf32>
    %92 = arith.maximumf %90, %91 : vector<64x32xf32>
    %c0_37 = arith.constant 0 : index
    %c0_38 = arith.constant 0 : index
    %c0_39 = arith.constant 0 : index
    %93 = vector.load %arg16[%c0_37, %c0_38, %c0_39] : memref<2x32x32xf32, #tpu.memory_space<vmem>>, vector<1x32x32xf32>
    %94 = vector.shape_cast %93 : vector<1x32x32xf32> to vector<32x32xf32>
    %cst_40 = arith.constant dense<0.000000e+00> : vector<64x32xf32>
    %95 = tpu.matmul %92, %94, %cst_40 {dimension_numbers = #tpu.dot_dimension_numbers<[1], [0], [0], [1], [0, 0, 1, 1], [], []>} : vector<64x32xf32>, vector<32x32xf32>, vector<64x32xf32> -> vector<64x32xf32>
    %c0_41 = arith.constant 0 : index
    %c0_42 = arith.constant 0 : index
    %c0_43 = arith.constant 0 : index
    %96 = vector.load %arg17[%c0_41, %c0_42, %c0_43] : memref<2x1x32xf32, #tpu.memory_space<vmem>>, vector<1x1x32xf32>
    %97 = vector.shape_cast %96 : vector<1x1x32xf32> to vector<1x32xf32>
    %98 = vector.broadcast %97 : vector<1x32xf32> to vector<64x32xf32>
    %99 = arith.addf %95, %98 : vector<64x32xf32>
    %cst_44 = arith.constant 0.000000e+00 : f32
    %100 = vector.broadcast %cst_44 : f32 to vector<64x32xf32>
    %101 = arith.maximumf %99, %100 : vector<64x32xf32>
    %c0_45 = arith.constant 0 : index
    %c0_46 = arith.constant 0 : index
    %c0_47 = arith.constant 0 : index
    %102 = vector.load %arg18[%c0_45, %c0_46, %c0_47] : memref<2x32x4xf32, #tpu.memory_space<vmem>>, vector<1x32x4xf32>
    %103 = vector.shape_cast %102 : vector<1x32x4xf32> to vector<32x4xf32>
    %cst_48 = arith.constant dense<0.000000e+00> : vector<64x4xf32>
    %104 = tpu.matmul %101, %103, %cst_48 {dimension_numbers = #tpu.dot_dimension_numbers<[1], [0], [0], [1], [0, 0, 1, 1], [], []>} : vector<64x32xf32>, vector<32x4xf32>, vector<64x4xf32> -> vector<64x4xf32>
    %c0_49 = arith.constant 0 : index
    %c0_50 = arith.constant 0 : index
    %c0_51 = arith.constant 0 : index
    %105 = vector.load %arg19[%c0_49, %c0_50, %c0_51] : memref<2x1x4xf32, #tpu.memory_space<vmem>>, vector<1x1x4xf32>
    %106 = vector.shape_cast %105 : vector<1x1x4xf32> to vector<1x4xf32>
    %107 = vector.broadcast %106 : vector<1x4xf32> to vector<64x4xf32>
    %108 = arith.addf %104, %107 : vector<64x4xf32>
    %c0_52 = arith.constant 0 : index
    %c0_53 = arith.constant 0 : index
    %c0_54 = arith.constant 0 : index
    %109 = vector.load %arg12[%c0_52, %c0_53, %c0_54] : memref<2x32x32xf32, #tpu.memory_space<vmem>>, vector<1x32x32xf32>
    %110 = vector.shape_cast %109 : vector<1x32x32xf32> to vector<32x32xf32>
    %c0_55 = arith.constant 0 : index
    %c0_56 = arith.constant 0 : index
    %c0_57 = arith.constant 0 : index
    %111 = vector.load %arg13[%c0_55, %c0_56, %c0_57] : memref<2x1x32xf32, #tpu.memory_space<vmem>>, vector<1x1x32xf32>
    %112 = vector.shape_cast %111 : vector<1x1x32xf32> to vector<1x32xf32>
    %113 = vector.extract_strided_slice %81 {offsets = [0, 0], sizes = [8, 8], strides = [1, 1]} : vector<8x32xf32> to vector<8x8xf32>
    %114 = vector.extract_strided_slice %82 {offsets = [0, 0], sizes = [8, 8], strides = [1, 1]} : vector<8x32xf32> to vector<8x8xf32>
    %115 = vector.extract_strided_slice %83 {offsets = [0, 0], sizes = [8, 8], strides = [1, 1]} : vector<8x32xf32> to vector<8x8xf32>
    %cst_58 = arith.constant dense<0.000000e+00> : vector<8x8xf32>
    %116 = tpu.matmul %113, %114, %cst_58 {dimension_numbers = #tpu.dot_dimension_numbers<[1], [1], [0], [0], [0, 0, 1, 0], [], []>} : vector<8x8xf32>, vector<8x8xf32>, vector<8x8xf32> -> vector<8x8xf32>
    %117 = vector.extract_strided_slice %108 {offsets = [0, 0], sizes = [64, 1], strides = [1, 1]} : vector<64x4xf32> to vector<64x1xf32>
    %118 = vector.broadcast %117 : vector<64x1xf32> to vector<64x8xf32>
    %119 = arith.mulf %1, %118 : vector<64x8xf32>
    %cst_59 = arith.constant dense<0.000000e+00> : vector<8x8xf32>
    %120 = tpu.matmul %0, %119, %cst_59 {dimension_numbers = #tpu.dot_dimension_numbers<[1], [0], [0], [1], [0, 0, 1, 1], [], []>} : vector<8x64xf32>, vector<64x8xf32>, vector<8x8xf32> -> vector<8x8xf32>
    %121 = vector.broadcast %70 : f32 to vector<8x8xf32>
    %122 = arith.mulf %121, %116 : vector<8x8xf32>
    %123 = vector.broadcast %71 : f32 to vector<8x8xf32>
    %124 = arith.mulf %123, %120 : vector<8x8xf32>
    %125 = arith.addf %122, %124 : vector<8x8xf32>
    %cst_60 = arith.constant dense<0xFF800000> : vector<8xf32>
    %126 = vector.multi_reduction <maximumf>, %125, %cst_60 [1] : vector<8x8xf32> to vector<8xf32>
    %127 = vector.shape_cast %126 : vector<8xf32> to vector<8x1xf32>
    %128 = vector.broadcast %127 : vector<8x1xf32> to vector<8x8xf32>
    %129 = arith.subf %125, %128 : vector<8x8xf32>
    %130 = math.exp %129 : vector<8x8xf32>
    %cst_61 = arith.constant dense<0.000000e+00> : vector<8xf32>
    %131 = vector.multi_reduction <add>, %130, %cst_61 [1] : vector<8x8xf32> to vector<8xf32>
    %132 = vector.shape_cast %131 : vector<8xf32> to vector<8x1xf32>
    %133 = tpu.reciprocal %132 {approx = true} : vector<8x1xf32> -> vector<8x1xf32>
    %134 = vector.broadcast %133 : vector<8x1xf32> to vector<8x8xf32>
    %135 = arith.mulf %130, %134 : vector<8x8xf32>
    %cst_62 = arith.constant dense<0.000000e+00> : vector<8x8xf32>
    %136 = tpu.matmul %135, %115, %cst_62 {dimension_numbers = #tpu.dot_dimension_numbers<[1], [0], [0], [1], [0, 0, 1, 1], [], []>} : vector<8x8xf32>, vector<8x8xf32>, vector<8x8xf32> -> vector<8x8xf32>
    %137 = vector.extract_strided_slice %110 {offsets = [0, 0], sizes = [8, 32], strides = [1, 1]} : vector<32x32xf32> to vector<8x32xf32>
    %cst_63 = arith.constant dense<0.000000e+00> : vector<8x32xf32>
    %138 = tpu.matmul %136, %137, %cst_63 {dimension_numbers = #tpu.dot_dimension_numbers<[1], [0], [0], [1], [0, 0, 1, 1], [], []>} : vector<8x8xf32>, vector<8x32xf32>, vector<8x32xf32> -> vector<8x32xf32>
    %139 = vector.broadcast %112 : vector<1x32xf32> to vector<8x32xf32>
    %140 = arith.addf %139, %138 : vector<8x32xf32>
    %141 = vector.extract_strided_slice %81 {offsets = [0, 8], sizes = [8, 8], strides = [1, 1]} : vector<8x32xf32> to vector<8x8xf32>
    %142 = vector.extract_strided_slice %82 {offsets = [0, 8], sizes = [8, 8], strides = [1, 1]} : vector<8x32xf32> to vector<8x8xf32>
    %143 = vector.extract_strided_slice %83 {offsets = [0, 8], sizes = [8, 8], strides = [1, 1]} : vector<8x32xf32> to vector<8x8xf32>
    %cst_64 = arith.constant dense<0.000000e+00> : vector<8x8xf32>
    %144 = tpu.matmul %141, %142, %cst_64 {dimension_numbers = #tpu.dot_dimension_numbers<[1], [1], [0], [0], [0, 0, 1, 0], [], []>} : vector<8x8xf32>, vector<8x8xf32>, vector<8x8xf32> -> vector<8x8xf32>
    %145 = vector.extract_strided_slice %108 {offsets = [0, 1], sizes = [64, 1], strides = [1, 1]} : vector<64x4xf32> to vector<64x1xf32>
    %146 = vector.broadcast %145 : vector<64x1xf32> to vector<64x8xf32>
    %147 = arith.mulf %1, %146 : vector<64x8xf32>
    %cst_65 = arith.constant dense<0.000000e+00> : vector<8x8xf32>
    %148 = tpu.matmul %0, %147, %cst_65 {dimension_numbers = #tpu.dot_dimension_numbers<[1], [0], [0], [1], [0, 0, 1, 1], [], []>} : vector<8x64xf32>, vector<64x8xf32>, vector<8x8xf32> -> vector<8x8xf32>
    %149 = vector.broadcast %70 : f32 to vector<8x8xf32>
    %150 = arith.mulf %149, %144 : vector<8x8xf32>
    %151 = vector.broadcast %71 : f32 to vector<8x8xf32>
    %152 = arith.mulf %151, %148 : vector<8x8xf32>
    %153 = arith.addf %150, %152 : vector<8x8xf32>
    %cst_66 = arith.constant dense<0xFF800000> : vector<8xf32>
    %154 = vector.multi_reduction <maximumf>, %153, %cst_66 [1] : vector<8x8xf32> to vector<8xf32>
    %155 = vector.shape_cast %154 : vector<8xf32> to vector<8x1xf32>
    %156 = vector.broadcast %155 : vector<8x1xf32> to vector<8x8xf32>
    %157 = arith.subf %153, %156 : vector<8x8xf32>
    %158 = math.exp %157 : vector<8x8xf32>
    %cst_67 = arith.constant dense<0.000000e+00> : vector<8xf32>
    %159 = vector.multi_reduction <add>, %158, %cst_67 [1] : vector<8x8xf32> to vector<8xf32>
    %160 = vector.shape_cast %159 : vector<8xf32> to vector<8x1xf32>
    %161 = tpu.reciprocal %160 {approx = true} : vector<8x1xf32> -> vector<8x1xf32>
    %162 = vector.broadcast %161 : vector<8x1xf32> to vector<8x8xf32>
    %163 = arith.mulf %158, %162 : vector<8x8xf32>
    %cst_68 = arith.constant dense<0.000000e+00> : vector<8x8xf32>
    %164 = tpu.matmul %163, %143, %cst_68 {dimension_numbers = #tpu.dot_dimension_numbers<[1], [0], [0], [1], [0, 0, 1, 1], [], []>} : vector<8x8xf32>, vector<8x8xf32>, vector<8x8xf32> -> vector<8x8xf32>
    %165 = vector.extract_strided_slice %110 {offsets = [8, 0], sizes = [8, 32], strides = [1, 1]} : vector<32x32xf32> to vector<8x32xf32>
    %cst_69 = arith.constant dense<0.000000e+00> : vector<8x32xf32>
    %166 = tpu.matmul %164, %165, %cst_69 {dimension_numbers = #tpu.dot_dimension_numbers<[1], [0], [0], [1], [0, 0, 1, 1], [], []>} : vector<8x8xf32>, vector<8x32xf32>, vector<8x32xf32> -> vector<8x32xf32>
    %167 = arith.addf %140, %166 : vector<8x32xf32>
    %168 = vector.extract_strided_slice %81 {offsets = [0, 16], sizes = [8, 8], strides = [1, 1]} : vector<8x32xf32> to vector<8x8xf32>
    %169 = vector.extract_strided_slice %82 {offsets = [0, 16], sizes = [8, 8], strides = [1, 1]} : vector<8x32xf32> to vector<8x8xf32>
    %170 = vector.extract_strided_slice %83 {offsets = [0, 16], sizes = [8, 8], strides = [1, 1]} : vector<8x32xf32> to vector<8x8xf32>
    %cst_70 = arith.constant dense<0.000000e+00> : vector<8x8xf32>
    %171 = tpu.matmul %168, %169, %cst_70 {dimension_numbers = #tpu.dot_dimension_numbers<[1], [1], [0], [0], [0, 0, 1, 0], [], []>} : vector<8x8xf32>, vector<8x8xf32>, vector<8x8xf32> -> vector<8x8xf32>
    %172 = vector.extract_strided_slice %108 {offsets = [0, 2], sizes = [64, 1], strides = [1, 1]} : vector<64x4xf32> to vector<64x1xf32>
    %173 = vector.broadcast %172 : vector<64x1xf32> to vector<64x8xf32>
    %174 = arith.mulf %1, %173 : vector<64x8xf32>
    %cst_71 = arith.constant dense<0.000000e+00> : vector<8x8xf32>
    %175 = tpu.matmul %0, %174, %cst_71 {dimension_numbers = #tpu.dot_dimension_numbers<[1], [0], [0], [1], [0, 0, 1, 1], [], []>} : vector<8x64xf32>, vector<64x8xf32>, vector<8x8xf32> -> vector<8x8xf32>
    %176 = vector.broadcast %70 : f32 to vector<8x8xf32>
    %177 = arith.mulf %176, %171 : vector<8x8xf32>
    %178 = vector.broadcast %71 : f32 to vector<8x8xf32>
    %179 = arith.mulf %178, %175 : vector<8x8xf32>
    %180 = arith.addf %177, %179 : vector<8x8xf32>
    %cst_72 = arith.constant dense<0xFF800000> : vector<8xf32>
    %181 = vector.multi_reduction <maximumf>, %180, %cst_72 [1] : vector<8x8xf32> to vector<8xf32>
    %182 = vector.shape_cast %181 : vector<8xf32> to vector<8x1xf32>
    %183 = vector.broadcast %182 : vector<8x1xf32> to vector<8x8xf32>
    %184 = arith.subf %180, %183 : vector<8x8xf32>
    %185 = math.exp %184 : vector<8x8xf32>
    %cst_73 = arith.constant dense<0.000000e+00> : vector<8xf32>
    %186 = vector.multi_reduction <add>, %185, %cst_73 [1] : vector<8x8xf32> to vector<8xf32>
    %187 = vector.shape_cast %186 : vector<8xf32> to vector<8x1xf32>
    %188 = tpu.reciprocal %187 {approx = true} : vector<8x1xf32> -> vector<8x1xf32>
    %189 = vector.broadcast %188 : vector<8x1xf32> to vector<8x8xf32>
    %190 = arith.mulf %185, %189 : vector<8x8xf32>
    %cst_74 = arith.constant dense<0.000000e+00> : vector<8x8xf32>
    %191 = tpu.matmul %190, %170, %cst_74 {dimension_numbers = #tpu.dot_dimension_numbers<[1], [0], [0], [1], [0, 0, 1, 1], [], []>} : vector<8x8xf32>, vector<8x8xf32>, vector<8x8xf32> -> vector<8x8xf32>
    %192 = vector.extract_strided_slice %110 {offsets = [16, 0], sizes = [8, 32], strides = [1, 1]} : vector<32x32xf32> to vector<8x32xf32>
    %cst_75 = arith.constant dense<0.000000e+00> : vector<8x32xf32>
    %193 = tpu.matmul %191, %192, %cst_75 {dimension_numbers = #tpu.dot_dimension_numbers<[1], [0], [0], [1], [0, 0, 1, 1], [], []>} : vector<8x8xf32>, vector<8x32xf32>, vector<8x32xf32> -> vector<8x32xf32>
    %194 = arith.addf %167, %193 : vector<8x32xf32>
    %195 = vector.extract_strided_slice %81 {offsets = [0, 24], sizes = [8, 8], strides = [1, 1]} : vector<8x32xf32> to vector<8x8xf32>
    %196 = vector.extract_strided_slice %82 {offsets = [0, 24], sizes = [8, 8], strides = [1, 1]} : vector<8x32xf32> to vector<8x8xf32>
    %197 = vector.extract_strided_slice %83 {offsets = [0, 24], sizes = [8, 8], strides = [1, 1]} : vector<8x32xf32> to vector<8x8xf32>
    %cst_76 = arith.constant dense<0.000000e+00> : vector<8x8xf32>
    %198 = tpu.matmul %195, %196, %cst_76 {dimension_numbers = #tpu.dot_dimension_numbers<[1], [1], [0], [0], [0, 0, 1, 0], [], []>} : vector<8x8xf32>, vector<8x8xf32>, vector<8x8xf32> -> vector<8x8xf32>
    %199 = vector.extract_strided_slice %108 {offsets = [0, 3], sizes = [64, 1], strides = [1, 1]} : vector<64x4xf32> to vector<64x1xf32>
    %200 = vector.broadcast %199 : vector<64x1xf32> to vector<64x8xf32>
    %201 = arith.mulf %1, %200 : vector<64x8xf32>
    %cst_77 = arith.constant dense<0.000000e+00> : vector<8x8xf32>
    %202 = tpu.matmul %0, %201, %cst_77 {dimension_numbers = #tpu.dot_dimension_numbers<[1], [0], [0], [1], [0, 0, 1, 1], [], []>} : vector<8x64xf32>, vector<64x8xf32>, vector<8x8xf32> -> vector<8x8xf32>
    %203 = vector.broadcast %70 : f32 to vector<8x8xf32>
    %204 = arith.mulf %203, %198 : vector<8x8xf32>
    %205 = vector.broadcast %71 : f32 to vector<8x8xf32>
    %206 = arith.mulf %205, %202 : vector<8x8xf32>
    %207 = arith.addf %204, %206 : vector<8x8xf32>
    %cst_78 = arith.constant dense<0xFF800000> : vector<8xf32>
    %208 = vector.multi_reduction <maximumf>, %207, %cst_78 [1] : vector<8x8xf32> to vector<8xf32>
    %209 = vector.shape_cast %208 : vector<8xf32> to vector<8x1xf32>
    %210 = vector.broadcast %209 : vector<8x1xf32> to vector<8x8xf32>
    %211 = arith.subf %207, %210 : vector<8x8xf32>
    %212 = math.exp %211 : vector<8x8xf32>
    %cst_79 = arith.constant dense<0.000000e+00> : vector<8xf32>
    %213 = vector.multi_reduction <add>, %212, %cst_79 [1] : vector<8x8xf32> to vector<8xf32>
    %214 = vector.shape_cast %213 : vector<8xf32> to vector<8x1xf32>
    %215 = tpu.reciprocal %214 {approx = true} : vector<8x1xf32> -> vector<8x1xf32>
    %216 = vector.broadcast %215 : vector<8x1xf32> to vector<8x8xf32>
    %217 = arith.mulf %212, %216 : vector<8x8xf32>
    %cst_80 = arith.constant dense<0.000000e+00> : vector<8x8xf32>
    %218 = tpu.matmul %217, %197, %cst_80 {dimension_numbers = #tpu.dot_dimension_numbers<[1], [0], [0], [1], [0, 0, 1, 1], [], []>} : vector<8x8xf32>, vector<8x8xf32>, vector<8x8xf32> -> vector<8x8xf32>
    %219 = vector.extract_strided_slice %110 {offsets = [24, 0], sizes = [8, 32], strides = [1, 1]} : vector<32x32xf32> to vector<8x32xf32>
    %cst_81 = arith.constant dense<0.000000e+00> : vector<8x32xf32>
    %220 = tpu.matmul %218, %219, %cst_81 {dimension_numbers = #tpu.dot_dimension_numbers<[1], [0], [0], [1], [0, 0, 1, 1], [], []>} : vector<8x8xf32>, vector<8x32xf32>, vector<8x32xf32> -> vector<8x32xf32>
    %221 = arith.addf %194, %220 : vector<8x32xf32>
    %222 = arith.addf %221, %44 : vector<8x32xf32>
    %c0_82 = arith.constant 0 : index
    %c0_83 = arith.constant 0 : index
    %c0_84 = arith.constant 0 : index
    %223 = vector.load %arg24[%c0_82, %c0_83, %c0_84] : memref<2x1x32xf32, #tpu.memory_space<vmem>>, vector<1x1x32xf32>
    %224 = vector.shape_cast %223 : vector<1x1x32xf32> to vector<1x32xf32>
    %c0_85 = arith.constant 0 : index
    %c0_86 = arith.constant 0 : index
    %c0_87 = arith.constant 0 : index
    %225 = vector.load %arg25[%c0_85, %c0_86, %c0_87] : memref<2x1x32xf32, #tpu.memory_space<vmem>>, vector<1x1x32xf32>
    %226 = vector.shape_cast %225 : vector<1x1x32xf32> to vector<1x32xf32>
    %cst_88 = arith.constant dense<0.000000e+00> : vector<8xf32>
    %227 = vector.multi_reduction <add>, %222, %cst_88 [1] : vector<8x32xf32> to vector<8xf32>
    %228 = vector.shape_cast %227 : vector<8xf32> to vector<8x1xf32>
    %cst_89 = arith.constant 3.200000e+01 : f32
    %229 = vector.broadcast %cst_89 : f32 to vector<8x1xf32>
    %230 = arith.divf %228, %229 : vector<8x1xf32>
    %231 = vector.broadcast %230 : vector<8x1xf32> to vector<8x32xf32>
    %232 = arith.subf %222, %231 : vector<8x32xf32>
    %233 = arith.mulf %232, %232 : vector<8x32xf32>
    %cst_90 = arith.constant dense<0.000000e+00> : vector<8xf32>
    %234 = vector.multi_reduction <add>, %233, %cst_90 [1] : vector<8x32xf32> to vector<8xf32>
    %235 = vector.shape_cast %234 : vector<8xf32> to vector<8x1xf32>
    %cst_91 = arith.constant 3.200000e+01 : f32
    %236 = vector.broadcast %cst_91 : f32 to vector<8x1xf32>
    %237 = arith.divf %235, %236 : vector<8x1xf32>
    %238 = vector.broadcast %230 : vector<8x1xf32> to vector<8x32xf32>
    %239 = arith.subf %222, %238 : vector<8x32xf32>
    %cst_92 = arith.constant 9.99999974E-6 : f32
    %240 = vector.broadcast %cst_92 : f32 to vector<8x1xf32>
    %241 = arith.addf %237, %240 : vector<8x1xf32>
    %242 = math.rsqrt %241 : vector<8x1xf32>
    %243 = vector.broadcast %242 : vector<8x1xf32> to vector<8x32xf32>
    %244 = arith.mulf %239, %243 : vector<8x32xf32>
    %245 = vector.broadcast %224 : vector<1x32xf32> to vector<8x32xf32>
    %246 = arith.mulf %244, %245 : vector<8x32xf32>
    %247 = vector.broadcast %226 : vector<1x32xf32> to vector<8x32xf32>
    %248 = arith.addf %246, %247 : vector<8x32xf32>
    %c0_93 = arith.constant 0 : index
    %c0_94 = arith.constant 0 : index
    %c0_95 = arith.constant 0 : index
    %249 = vector.load %arg20[%c0_93, %c0_94, %c0_95] : memref<2x32x64xf32, #tpu.memory_space<vmem>>, vector<1x32x64xf32>
    %250 = vector.shape_cast %249 : vector<1x32x64xf32> to vector<32x64xf32>
    %cst_96 = arith.constant dense<0.000000e+00> : vector<8x64xf32>
    %251 = tpu.matmul %248, %250, %cst_96 {dimension_numbers = #tpu.dot_dimension_numbers<[1], [0], [0], [1], [0, 0, 1, 1], [], []>} : vector<8x32xf32>, vector<32x64xf32>, vector<8x64xf32> -> vector<8x64xf32>
    %c0_97 = arith.constant 0 : index
    %c0_98 = arith.constant 0 : index
    %c0_99 = arith.constant 0 : index
    %252 = vector.load %arg21[%c0_97, %c0_98, %c0_99] : memref<2x1x64xf32, #tpu.memory_space<vmem>>, vector<1x1x64xf32>
    %253 = vector.shape_cast %252 : vector<1x1x64xf32> to vector<1x64xf32>
    %254 = vector.broadcast %253 : vector<1x64xf32> to vector<8x64xf32>
    %255 = arith.addf %251, %254 : vector<8x64xf32>
    %cst_100 = arith.constant 5.000000e-01 : f32
    %256 = vector.broadcast %cst_100 : f32 to vector<8x64xf32>
    %257 = arith.mulf %256, %255 : vector<8x64xf32>
    %cst_101 = arith.constant 0.707106769 : f32
    %258 = vector.broadcast %cst_101 : f32 to vector<8x64xf32>
    %259 = arith.mulf %255, %258 : vector<8x64xf32>
    %cst_102 = arith.constant 0.000000e+00 : f32
    %260 = vector.broadcast %cst_102 : f32 to vector<8x64xf32>
    %261 = arith.cmpf oge, %259, %260 : vector<8x64xf32>
    %cst_103 = arith.constant 1.000000e+00 : f32
    %cst_104 = arith.constant -1.000000e+00 : f32
    %262 = vector.broadcast %cst_103 : f32 to vector<8x64xf32>
    %263 = vector.broadcast %cst_104 : f32 to vector<8x64xf32>
    %264 = arith.select %261, %262, %263 : vector<8x64xi1>, vector<8x64xf32>
    %265 = math.absf %259 : vector<8x64xf32>
    %cst_105 = arith.constant 0.327591091 : f32
    %266 = vector.broadcast %cst_105 : f32 to vector<8x64xf32>
    %267 = arith.mulf %266, %265 : vector<8x64xf32>
    %cst_106 = arith.constant 1.000000e+00 : f32
    %268 = vector.broadcast %cst_106 : f32 to vector<8x64xf32>
    %269 = arith.addf %268, %267 : vector<8x64xf32>
    %cst_107 = arith.constant 1.000000e+00 : f32
    %270 = vector.broadcast %cst_107 : f32 to vector<8x64xf32>
    %271 = arith.divf %270, %269 : vector<8x64xf32>
    %cst_108 = arith.constant 1.06140542 : f32
    %272 = vector.broadcast %cst_108 : f32 to vector<8x64xf32>
    %273 = arith.mulf %272, %271 : vector<8x64xf32>
    %cst_109 = arith.constant -1.45315206 : f32
    %274 = vector.broadcast %cst_109 : f32 to vector<8x64xf32>
    %275 = arith.addf %273, %274 : vector<8x64xf32>
    %276 = arith.mulf %275, %271 : vector<8x64xf32>
    %cst_110 = arith.constant 1.42141378 : f32
    %277 = vector.broadcast %cst_110 : f32 to vector<8x64xf32>
    %278 = arith.addf %276, %277 : vector<8x64xf32>
    %279 = arith.mulf %278, %271 : vector<8x64xf32>
    %cst_111 = arith.constant -0.284496725 : f32
    %280 = vector.broadcast %cst_111 : f32 to vector<8x64xf32>
    %281 = arith.addf %279, %280 : vector<8x64xf32>
    %282 = arith.mulf %281, %271 : vector<8x64xf32>
    %cst_112 = arith.constant 0.254829586 : f32
    %283 = vector.broadcast %cst_112 : f32 to vector<8x64xf32>
    %284 = arith.addf %282, %283 : vector<8x64xf32>
    %285 = arith.mulf %284, %271 : vector<8x64xf32>
    %cst_113 = arith.constant 0.000000e+00 : f32
    %286 = vector.broadcast %cst_113 : f32 to vector<8x64xf32>
    %287 = arith.subf %286, %265 : vector<8x64xf32>
    %288 = arith.mulf %287, %265 : vector<8x64xf32>
    %289 = math.exp %288 : vector<8x64xf32>
    %290 = arith.mulf %285, %289 : vector<8x64xf32>
    %cst_114 = arith.constant 1.000000e+00 : f32
    %291 = vector.broadcast %cst_114 : f32 to vector<8x64xf32>
    %292 = arith.subf %291, %290 : vector<8x64xf32>
    %293 = arith.mulf %264, %292 : vector<8x64xf32>
    %cst_115 = arith.constant 1.000000e+00 : f32
    %294 = vector.broadcast %cst_115 : f32 to vector<8x64xf32>
    %295 = arith.addf %294, %293 : vector<8x64xf32>
    %296 = arith.mulf %257, %295 : vector<8x64xf32>
    %c0_116 = arith.constant 0 : index
    %c0_117 = arith.constant 0 : index
    %c0_118 = arith.constant 0 : index
    %297 = vector.load %arg22[%c0_116, %c0_117, %c0_118] : memref<2x64x32xf32, #tpu.memory_space<vmem>>, vector<1x64x32xf32>
    %298 = vector.shape_cast %297 : vector<1x64x32xf32> to vector<64x32xf32>
    %cst_119 = arith.constant dense<0.000000e+00> : vector<8x32xf32>
    %299 = tpu.matmul %296, %298, %cst_119 {dimension_numbers = #tpu.dot_dimension_numbers<[1], [0], [0], [1], [0, 0, 1, 1], [], []>} : vector<8x64xf32>, vector<64x32xf32>, vector<8x32xf32> -> vector<8x32xf32>
    %c0_120 = arith.constant 0 : index
    %c0_121 = arith.constant 0 : index
    %c0_122 = arith.constant 0 : index
    %300 = vector.load %arg23[%c0_120, %c0_121, %c0_122] : memref<2x1x32xf32, #tpu.memory_space<vmem>>, vector<1x1x32xf32>
    %301 = vector.shape_cast %300 : vector<1x1x32xf32> to vector<1x32xf32>
    %302 = vector.broadcast %301 : vector<1x32xf32> to vector<8x32xf32>
    %303 = arith.addf %299, %302 : vector<8x32xf32>
    %304 = arith.addf %303, %248 : vector<8x32xf32>
    %c0_123 = arith.constant 0 : index
    %c0_124 = arith.constant 0 : index
    %c0_125 = arith.constant 0 : index
    %305 = vector.load %arg26[%c0_123, %c0_124, %c0_125] : memref<2x1x32xf32, #tpu.memory_space<vmem>>, vector<1x1x32xf32>
    %306 = vector.shape_cast %305 : vector<1x1x32xf32> to vector<1x32xf32>
    %c0_126 = arith.constant 0 : index
    %c0_127 = arith.constant 0 : index
    %c0_128 = arith.constant 0 : index
    %307 = vector.load %arg27[%c0_126, %c0_127, %c0_128] : memref<2x1x32xf32, #tpu.memory_space<vmem>>, vector<1x1x32xf32>
    %308 = vector.shape_cast %307 : vector<1x1x32xf32> to vector<1x32xf32>
    %cst_129 = arith.constant dense<0.000000e+00> : vector<8xf32>
    %309 = vector.multi_reduction <add>, %304, %cst_129 [1] : vector<8x32xf32> to vector<8xf32>
    %310 = vector.shape_cast %309 : vector<8xf32> to vector<8x1xf32>
    %cst_130 = arith.constant 3.200000e+01 : f32
    %311 = vector.broadcast %cst_130 : f32 to vector<8x1xf32>
    %312 = arith.divf %310, %311 : vector<8x1xf32>
    %313 = vector.broadcast %312 : vector<8x1xf32> to vector<8x32xf32>
    %314 = arith.subf %304, %313 : vector<8x32xf32>
    %315 = arith.mulf %314, %314 : vector<8x32xf32>
    %cst_131 = arith.constant dense<0.000000e+00> : vector<8xf32>
    %316 = vector.multi_reduction <add>, %315, %cst_131 [1] : vector<8x32xf32> to vector<8xf32>
    %317 = vector.shape_cast %316 : vector<8xf32> to vector<8x1xf32>
    %cst_132 = arith.constant 3.200000e+01 : f32
    %318 = vector.broadcast %cst_132 : f32 to vector<8x1xf32>
    %319 = arith.divf %317, %318 : vector<8x1xf32>
    %320 = vector.broadcast %312 : vector<8x1xf32> to vector<8x32xf32>
    %321 = arith.subf %304, %320 : vector<8x32xf32>
    %cst_133 = arith.constant 9.99999974E-6 : f32
    %322 = vector.broadcast %cst_133 : f32 to vector<8x1xf32>
    %323 = arith.addf %319, %322 : vector<8x1xf32>
    %324 = math.rsqrt %323 : vector<8x1xf32>
    %325 = vector.broadcast %324 : vector<8x1xf32> to vector<8x32xf32>
    %326 = arith.mulf %321, %325 : vector<8x32xf32>
    %327 = vector.broadcast %306 : vector<1x32xf32> to vector<8x32xf32>
    %328 = arith.mulf %326, %327 : vector<8x32xf32>
    %329 = vector.broadcast %308 : vector<1x32xf32> to vector<8x32xf32>
    %330 = arith.addf %328, %329 : vector<8x32xf32>
    %c1_134 = arith.constant 1 : index
    %c0_135 = arith.constant 0 : index
    %331 = memref.load %arg1[%c1_134, %c0_135] : memref<2x2xf32, #tpu.memory_space<smem>>
    %c1_136 = arith.constant 1 : index
    %c1_137 = arith.constant 1 : index
    %332 = memref.load %arg1[%c1_136, %c1_137] : memref<2x2xf32, #tpu.memory_space<smem>>
    %c1_138 = arith.constant 1 : index
    %c0_139 = arith.constant 0 : index
    %c0_140 = arith.constant 0 : index
    %333 = vector.load %arg10[%c1_138, %c0_139, %c0_140] : memref<2x32x96xf32, #tpu.memory_space<vmem>>, vector<1x32x96xf32>
    %334 = vector.shape_cast %333 : vector<1x32x96xf32> to vector<32x96xf32>
    %cst_141 = arith.constant dense<0.000000e+00> : vector<8x96xf32>
    %335 = tpu.matmul %330, %334, %cst_141 {dimension_numbers = #tpu.dot_dimension_numbers<[1], [0], [0], [1], [0, 0, 1, 1], [], []>} : vector<8x32xf32>, vector<32x96xf32>, vector<8x96xf32> -> vector<8x96xf32>
    %c1_142 = arith.constant 1 : index
    %c0_143 = arith.constant 0 : index
    %c0_144 = arith.constant 0 : index
    %336 = vector.load %arg11[%c1_142, %c0_143, %c0_144] : memref<2x1x96xf32, #tpu.memory_space<vmem>>, vector<1x1x96xf32>
    %337 = vector.shape_cast %336 : vector<1x1x96xf32> to vector<1x96xf32>
    %338 = vector.broadcast %337 : vector<1x96xf32> to vector<8x96xf32>
    %339 = arith.addf %335, %338 : vector<8x96xf32>
    %340 = vector.extract_strided_slice %339 {offsets = [0, 0], sizes = [8, 32], strides = [1, 1]} : vector<8x96xf32> to vector<8x32xf32>
    %cst_145 = arith.constant 0.353553385 : f32
    %341 = vector.broadcast %cst_145 : f32 to vector<8x32xf32>
    %342 = arith.mulf %340, %341 : vector<8x32xf32>
    %343 = vector.extract_strided_slice %339 {offsets = [0, 32], sizes = [8, 32], strides = [1, 1]} : vector<8x96xf32> to vector<8x32xf32>
    %344 = vector.extract_strided_slice %339 {offsets = [0, 64], sizes = [8, 32], strides = [1, 1]} : vector<8x96xf32> to vector<8x32xf32>
    %c1_146 = arith.constant 1 : index
    %c0_147 = arith.constant 0 : index
    %c0_148 = arith.constant 0 : index
    %345 = vector.load %arg14[%c1_146, %c0_147, %c0_148] : memref<2x32x32xf32, #tpu.memory_space<vmem>>, vector<1x32x32xf32>
    %346 = vector.shape_cast %345 : vector<1x32x32xf32> to vector<32x32xf32>
    %cst_149 = arith.constant dense<0.000000e+00> : vector<64x32xf32>
    %347 = tpu.matmul %69, %346, %cst_149 {dimension_numbers = #tpu.dot_dimension_numbers<[1], [0], [0], [1], [0, 0, 1, 1], [], []>} : vector<64x32xf32>, vector<32x32xf32>, vector<64x32xf32> -> vector<64x32xf32>
    %c1_150 = arith.constant 1 : index
    %c0_151 = arith.constant 0 : index
    %c0_152 = arith.constant 0 : index
    %348 = vector.load %arg15[%c1_150, %c0_151, %c0_152] : memref<2x1x32xf32, #tpu.memory_space<vmem>>, vector<1x1x32xf32>
    %349 = vector.shape_cast %348 : vector<1x1x32xf32> to vector<1x32xf32>
    %350 = vector.broadcast %349 : vector<1x32xf32> to vector<64x32xf32>
    %351 = arith.addf %347, %350 : vector<64x32xf32>
    %cst_153 = arith.constant 0.000000e+00 : f32
    %352 = vector.broadcast %cst_153 : f32 to vector<64x32xf32>
    %353 = arith.maximumf %351, %352 : vector<64x32xf32>
    %c1_154 = arith.constant 1 : index
    %c0_155 = arith.constant 0 : index
    %c0_156 = arith.constant 0 : index
    %354 = vector.load %arg16[%c1_154, %c0_155, %c0_156] : memref<2x32x32xf32, #tpu.memory_space<vmem>>, vector<1x32x32xf32>
    %355 = vector.shape_cast %354 : vector<1x32x32xf32> to vector<32x32xf32>
    %cst_157 = arith.constant dense<0.000000e+00> : vector<64x32xf32>
    %356 = tpu.matmul %353, %355, %cst_157 {dimension_numbers = #tpu.dot_dimension_numbers<[1], [0], [0], [1], [0, 0, 1, 1], [], []>} : vector<64x32xf32>, vector<32x32xf32>, vector<64x32xf32> -> vector<64x32xf32>
    %c1_158 = arith.constant 1 : index
    %c0_159 = arith.constant 0 : index
    %c0_160 = arith.constant 0 : index
    %357 = vector.load %arg17[%c1_158, %c0_159, %c0_160] : memref<2x1x32xf32, #tpu.memory_space<vmem>>, vector<1x1x32xf32>
    %358 = vector.shape_cast %357 : vector<1x1x32xf32> to vector<1x32xf32>
    %359 = vector.broadcast %358 : vector<1x32xf32> to vector<64x32xf32>
    %360 = arith.addf %356, %359 : vector<64x32xf32>
    %cst_161 = arith.constant 0.000000e+00 : f32
    %361 = vector.broadcast %cst_161 : f32 to vector<64x32xf32>
    %362 = arith.maximumf %360, %361 : vector<64x32xf32>
    %c1_162 = arith.constant 1 : index
    %c0_163 = arith.constant 0 : index
    %c0_164 = arith.constant 0 : index
    %363 = vector.load %arg18[%c1_162, %c0_163, %c0_164] : memref<2x32x4xf32, #tpu.memory_space<vmem>>, vector<1x32x4xf32>
    %364 = vector.shape_cast %363 : vector<1x32x4xf32> to vector<32x4xf32>
    %cst_165 = arith.constant dense<0.000000e+00> : vector<64x4xf32>
    %365 = tpu.matmul %362, %364, %cst_165 {dimension_numbers = #tpu.dot_dimension_numbers<[1], [0], [0], [1], [0, 0, 1, 1], [], []>} : vector<64x32xf32>, vector<32x4xf32>, vector<64x4xf32> -> vector<64x4xf32>
    %c1_166 = arith.constant 1 : index
    %c0_167 = arith.constant 0 : index
    %c0_168 = arith.constant 0 : index
    %366 = vector.load %arg19[%c1_166, %c0_167, %c0_168] : memref<2x1x4xf32, #tpu.memory_space<vmem>>, vector<1x1x4xf32>
    %367 = vector.shape_cast %366 : vector<1x1x4xf32> to vector<1x4xf32>
    %368 = vector.broadcast %367 : vector<1x4xf32> to vector<64x4xf32>
    %369 = arith.addf %365, %368 : vector<64x4xf32>
    %c1_169 = arith.constant 1 : index
    %c0_170 = arith.constant 0 : index
    %c0_171 = arith.constant 0 : index
    %370 = vector.load %arg12[%c1_169, %c0_170, %c0_171] : memref<2x32x32xf32, #tpu.memory_space<vmem>>, vector<1x32x32xf32>
    %371 = vector.shape_cast %370 : vector<1x32x32xf32> to vector<32x32xf32>
    %c1_172 = arith.constant 1 : index
    %c0_173 = arith.constant 0 : index
    %c0_174 = arith.constant 0 : index
    %372 = vector.load %arg13[%c1_172, %c0_173, %c0_174] : memref<2x1x32xf32, #tpu.memory_space<vmem>>, vector<1x1x32xf32>
    %373 = vector.shape_cast %372 : vector<1x1x32xf32> to vector<1x32xf32>
    %374 = vector.extract_strided_slice %342 {offsets = [0, 0], sizes = [8, 8], strides = [1, 1]} : vector<8x32xf32> to vector<8x8xf32>
    %375 = vector.extract_strided_slice %343 {offsets = [0, 0], sizes = [8, 8], strides = [1, 1]} : vector<8x32xf32> to vector<8x8xf32>
    %376 = vector.extract_strided_slice %344 {offsets = [0, 0], sizes = [8, 8], strides = [1, 1]} : vector<8x32xf32> to vector<8x8xf32>
    %cst_175 = arith.constant dense<0.000000e+00> : vector<8x8xf32>
    %377 = tpu.matmul %374, %375, %cst_175 {dimension_numbers = #tpu.dot_dimension_numbers<[1], [1], [0], [0], [0, 0, 1, 0], [], []>} : vector<8x8xf32>, vector<8x8xf32>, vector<8x8xf32> -> vector<8x8xf32>
    %378 = vector.extract_strided_slice %369 {offsets = [0, 0], sizes = [64, 1], strides = [1, 1]} : vector<64x4xf32> to vector<64x1xf32>
    %379 = vector.broadcast %378 : vector<64x1xf32> to vector<64x8xf32>
    %380 = arith.mulf %1, %379 : vector<64x8xf32>
    %cst_176 = arith.constant dense<0.000000e+00> : vector<8x8xf32>
    %381 = tpu.matmul %0, %380, %cst_176 {dimension_numbers = #tpu.dot_dimension_numbers<[1], [0], [0], [1], [0, 0, 1, 1], [], []>} : vector<8x64xf32>, vector<64x8xf32>, vector<8x8xf32> -> vector<8x8xf32>
    %382 = vector.broadcast %331 : f32 to vector<8x8xf32>
    %383 = arith.mulf %382, %377 : vector<8x8xf32>
    %384 = vector.broadcast %332 : f32 to vector<8x8xf32>
    %385 = arith.mulf %384, %381 : vector<8x8xf32>
    %386 = arith.addf %383, %385 : vector<8x8xf32>
    %cst_177 = arith.constant dense<0xFF800000> : vector<8xf32>
    %387 = vector.multi_reduction <maximumf>, %386, %cst_177 [1] : vector<8x8xf32> to vector<8xf32>
    %388 = vector.shape_cast %387 : vector<8xf32> to vector<8x1xf32>
    %389 = vector.broadcast %388 : vector<8x1xf32> to vector<8x8xf32>
    %390 = arith.subf %386, %389 : vector<8x8xf32>
    %391 = math.exp %390 : vector<8x8xf32>
    %cst_178 = arith.constant dense<0.000000e+00> : vector<8xf32>
    %392 = vector.multi_reduction <add>, %391, %cst_178 [1] : vector<8x8xf32> to vector<8xf32>
    %393 = vector.shape_cast %392 : vector<8xf32> to vector<8x1xf32>
    %394 = tpu.reciprocal %393 {approx = true} : vector<8x1xf32> -> vector<8x1xf32>
    %395 = vector.broadcast %394 : vector<8x1xf32> to vector<8x8xf32>
    %396 = arith.mulf %391, %395 : vector<8x8xf32>
    %cst_179 = arith.constant dense<0.000000e+00> : vector<8x8xf32>
    %397 = tpu.matmul %396, %376, %cst_179 {dimension_numbers = #tpu.dot_dimension_numbers<[1], [0], [0], [1], [0, 0, 1, 1], [], []>} : vector<8x8xf32>, vector<8x8xf32>, vector<8x8xf32> -> vector<8x8xf32>
    %398 = vector.extract_strided_slice %371 {offsets = [0, 0], sizes = [8, 32], strides = [1, 1]} : vector<32x32xf32> to vector<8x32xf32>
    %cst_180 = arith.constant dense<0.000000e+00> : vector<8x32xf32>
    %399 = tpu.matmul %397, %398, %cst_180 {dimension_numbers = #tpu.dot_dimension_numbers<[1], [0], [0], [1], [0, 0, 1, 1], [], []>} : vector<8x8xf32>, vector<8x32xf32>, vector<8x32xf32> -> vector<8x32xf32>
    %400 = vector.broadcast %373 : vector<1x32xf32> to vector<8x32xf32>
    %401 = arith.addf %400, %399 : vector<8x32xf32>
    %402 = vector.extract_strided_slice %342 {offsets = [0, 8], sizes = [8, 8], strides = [1, 1]} : vector<8x32xf32> to vector<8x8xf32>
    %403 = vector.extract_strided_slice %343 {offsets = [0, 8], sizes = [8, 8], strides = [1, 1]} : vector<8x32xf32> to vector<8x8xf32>
    %404 = vector.extract_strided_slice %344 {offsets = [0, 8], sizes = [8, 8], strides = [1, 1]} : vector<8x32xf32> to vector<8x8xf32>
    %cst_181 = arith.constant dense<0.000000e+00> : vector<8x8xf32>
    %405 = tpu.matmul %402, %403, %cst_181 {dimension_numbers = #tpu.dot_dimension_numbers<[1], [1], [0], [0], [0, 0, 1, 0], [], []>} : vector<8x8xf32>, vector<8x8xf32>, vector<8x8xf32> -> vector<8x8xf32>
    %406 = vector.extract_strided_slice %369 {offsets = [0, 1], sizes = [64, 1], strides = [1, 1]} : vector<64x4xf32> to vector<64x1xf32>
    %407 = vector.broadcast %406 : vector<64x1xf32> to vector<64x8xf32>
    %408 = arith.mulf %1, %407 : vector<64x8xf32>
    %cst_182 = arith.constant dense<0.000000e+00> : vector<8x8xf32>
    %409 = tpu.matmul %0, %408, %cst_182 {dimension_numbers = #tpu.dot_dimension_numbers<[1], [0], [0], [1], [0, 0, 1, 1], [], []>} : vector<8x64xf32>, vector<64x8xf32>, vector<8x8xf32> -> vector<8x8xf32>
    %410 = vector.broadcast %331 : f32 to vector<8x8xf32>
    %411 = arith.mulf %410, %405 : vector<8x8xf32>
    %412 = vector.broadcast %332 : f32 to vector<8x8xf32>
    %413 = arith.mulf %412, %409 : vector<8x8xf32>
    %414 = arith.addf %411, %413 : vector<8x8xf32>
    %cst_183 = arith.constant dense<0xFF800000> : vector<8xf32>
    %415 = vector.multi_reduction <maximumf>, %414, %cst_183 [1] : vector<8x8xf32> to vector<8xf32>
    %416 = vector.shape_cast %415 : vector<8xf32> to vector<8x1xf32>
    %417 = vector.broadcast %416 : vector<8x1xf32> to vector<8x8xf32>
    %418 = arith.subf %414, %417 : vector<8x8xf32>
    %419 = math.exp %418 : vector<8x8xf32>
    %cst_184 = arith.constant dense<0.000000e+00> : vector<8xf32>
    %420 = vector.multi_reduction <add>, %419, %cst_184 [1] : vector<8x8xf32> to vector<8xf32>
    %421 = vector.shape_cast %420 : vector<8xf32> to vector<8x1xf32>
    %422 = tpu.reciprocal %421 {approx = true} : vector<8x1xf32> -> vector<8x1xf32>
    %423 = vector.broadcast %422 : vector<8x1xf32> to vector<8x8xf32>
    %424 = arith.mulf %419, %423 : vector<8x8xf32>
    %cst_185 = arith.constant dense<0.000000e+00> : vector<8x8xf32>
    %425 = tpu.matmul %424, %404, %cst_185 {dimension_numbers = #tpu.dot_dimension_numbers<[1], [0], [0], [1], [0, 0, 1, 1], [], []>} : vector<8x8xf32>, vector<8x8xf32>, vector<8x8xf32> -> vector<8x8xf32>
    %426 = vector.extract_strided_slice %371 {offsets = [8, 0], sizes = [8, 32], strides = [1, 1]} : vector<32x32xf32> to vector<8x32xf32>
    %cst_186 = arith.constant dense<0.000000e+00> : vector<8x32xf32>
    %427 = tpu.matmul %425, %426, %cst_186 {dimension_numbers = #tpu.dot_dimension_numbers<[1], [0], [0], [1], [0, 0, 1, 1], [], []>} : vector<8x8xf32>, vector<8x32xf32>, vector<8x32xf32> -> vector<8x32xf32>
    %428 = arith.addf %401, %427 : vector<8x32xf32>
    %429 = vector.extract_strided_slice %342 {offsets = [0, 16], sizes = [8, 8], strides = [1, 1]} : vector<8x32xf32> to vector<8x8xf32>
    %430 = vector.extract_strided_slice %343 {offsets = [0, 16], sizes = [8, 8], strides = [1, 1]} : vector<8x32xf32> to vector<8x8xf32>
    %431 = vector.extract_strided_slice %344 {offsets = [0, 16], sizes = [8, 8], strides = [1, 1]} : vector<8x32xf32> to vector<8x8xf32>
    %cst_187 = arith.constant dense<0.000000e+00> : vector<8x8xf32>
    %432 = tpu.matmul %429, %430, %cst_187 {dimension_numbers = #tpu.dot_dimension_numbers<[1], [1], [0], [0], [0, 0, 1, 0], [], []>} : vector<8x8xf32>, vector<8x8xf32>, vector<8x8xf32> -> vector<8x8xf32>
    %433 = vector.extract_strided_slice %369 {offsets = [0, 2], sizes = [64, 1], strides = [1, 1]} : vector<64x4xf32> to vector<64x1xf32>
    %434 = vector.broadcast %433 : vector<64x1xf32> to vector<64x8xf32>
    %435 = arith.mulf %1, %434 : vector<64x8xf32>
    %cst_188 = arith.constant dense<0.000000e+00> : vector<8x8xf32>
    %436 = tpu.matmul %0, %435, %cst_188 {dimension_numbers = #tpu.dot_dimension_numbers<[1], [0], [0], [1], [0, 0, 1, 1], [], []>} : vector<8x64xf32>, vector<64x8xf32>, vector<8x8xf32> -> vector<8x8xf32>
    %437 = vector.broadcast %331 : f32 to vector<8x8xf32>
    %438 = arith.mulf %437, %432 : vector<8x8xf32>
    %439 = vector.broadcast %332 : f32 to vector<8x8xf32>
    %440 = arith.mulf %439, %436 : vector<8x8xf32>
    %441 = arith.addf %438, %440 : vector<8x8xf32>
    %cst_189 = arith.constant dense<0xFF800000> : vector<8xf32>
    %442 = vector.multi_reduction <maximumf>, %441, %cst_189 [1] : vector<8x8xf32> to vector<8xf32>
    %443 = vector.shape_cast %442 : vector<8xf32> to vector<8x1xf32>
    %444 = vector.broadcast %443 : vector<8x1xf32> to vector<8x8xf32>
    %445 = arith.subf %441, %444 : vector<8x8xf32>
    %446 = math.exp %445 : vector<8x8xf32>
    %cst_190 = arith.constant dense<0.000000e+00> : vector<8xf32>
    %447 = vector.multi_reduction <add>, %446, %cst_190 [1] : vector<8x8xf32> to vector<8xf32>
    %448 = vector.shape_cast %447 : vector<8xf32> to vector<8x1xf32>
    %449 = tpu.reciprocal %448 {approx = true} : vector<8x1xf32> -> vector<8x1xf32>
    %450 = vector.broadcast %449 : vector<8x1xf32> to vector<8x8xf32>
    %451 = arith.mulf %446, %450 : vector<8x8xf32>
    %cst_191 = arith.constant dense<0.000000e+00> : vector<8x8xf32>
    %452 = tpu.matmul %451, %431, %cst_191 {dimension_numbers = #tpu.dot_dimension_numbers<[1], [0], [0], [1], [0, 0, 1, 1], [], []>} : vector<8x8xf32>, vector<8x8xf32>, vector<8x8xf32> -> vector<8x8xf32>
    %453 = vector.extract_strided_slice %371 {offsets = [16, 0], sizes = [8, 32], strides = [1, 1]} : vector<32x32xf32> to vector<8x32xf32>
    %cst_192 = arith.constant dense<0.000000e+00> : vector<8x32xf32>
    %454 = tpu.matmul %452, %453, %cst_192 {dimension_numbers = #tpu.dot_dimension_numbers<[1], [0], [0], [1], [0, 0, 1, 1], [], []>} : vector<8x8xf32>, vector<8x32xf32>, vector<8x32xf32> -> vector<8x32xf32>
    %455 = arith.addf %428, %454 : vector<8x32xf32>
    %456 = vector.extract_strided_slice %342 {offsets = [0, 24], sizes = [8, 8], strides = [1, 1]} : vector<8x32xf32> to vector<8x8xf32>
    %457 = vector.extract_strided_slice %343 {offsets = [0, 24], sizes = [8, 8], strides = [1, 1]} : vector<8x32xf32> to vector<8x8xf32>
    %458 = vector.extract_strided_slice %344 {offsets = [0, 24], sizes = [8, 8], strides = [1, 1]} : vector<8x32xf32> to vector<8x8xf32>
    %cst_193 = arith.constant dense<0.000000e+00> : vector<8x8xf32>
    %459 = tpu.matmul %456, %457, %cst_193 {dimension_numbers = #tpu.dot_dimension_numbers<[1], [1], [0], [0], [0, 0, 1, 0], [], []>} : vector<8x8xf32>, vector<8x8xf32>, vector<8x8xf32> -> vector<8x8xf32>
    %460 = vector.extract_strided_slice %369 {offsets = [0, 3], sizes = [64, 1], strides = [1, 1]} : vector<64x4xf32> to vector<64x1xf32>
    %461 = vector.broadcast %460 : vector<64x1xf32> to vector<64x8xf32>
    %462 = arith.mulf %1, %461 : vector<64x8xf32>
    %cst_194 = arith.constant dense<0.000000e+00> : vector<8x8xf32>
    %463 = tpu.matmul %0, %462, %cst_194 {dimension_numbers = #tpu.dot_dimension_numbers<[1], [0], [0], [1], [0, 0, 1, 1], [], []>} : vector<8x64xf32>, vector<64x8xf32>, vector<8x8xf32> -> vector<8x8xf32>
    %464 = vector.broadcast %331 : f32 to vector<8x8xf32>
    %465 = arith.mulf %464, %459 : vector<8x8xf32>
    %466 = vector.broadcast %332 : f32 to vector<8x8xf32>
    %467 = arith.mulf %466, %463 : vector<8x8xf32>
    %468 = arith.addf %465, %467 : vector<8x8xf32>
    %cst_195 = arith.constant dense<0xFF800000> : vector<8xf32>
    %469 = vector.multi_reduction <maximumf>, %468, %cst_195 [1] : vector<8x8xf32> to vector<8xf32>
    %470 = vector.shape_cast %469 : vector<8xf32> to vector<8x1xf32>
    %471 = vector.broadcast %470 : vector<8x1xf32> to vector<8x8xf32>
    %472 = arith.subf %468, %471 : vector<8x8xf32>
    %473 = math.exp %472 : vector<8x8xf32>
    %cst_196 = arith.constant dense<0.000000e+00> : vector<8xf32>
    %474 = vector.multi_reduction <add>, %473, %cst_196 [1] : vector<8x8xf32> to vector<8xf32>
    %475 = vector.shape_cast %474 : vector<8xf32> to vector<8x1xf32>
    %476 = tpu.reciprocal %475 {approx = true} : vector<8x1xf32> -> vector<8x1xf32>
    %477 = vector.broadcast %476 : vector<8x1xf32> to vector<8x8xf32>
    %478 = arith.mulf %473, %477 : vector<8x8xf32>
    %cst_197 = arith.constant dense<0.000000e+00> : vector<8x8xf32>
    %479 = tpu.matmul %478, %458, %cst_197 {dimension_numbers = #tpu.dot_dimension_numbers<[1], [0], [0], [1], [0, 0, 1, 1], [], []>} : vector<8x8xf32>, vector<8x8xf32>, vector<8x8xf32> -> vector<8x8xf32>
    %480 = vector.extract_strided_slice %371 {offsets = [24, 0], sizes = [8, 32], strides = [1, 1]} : vector<32x32xf32> to vector<8x32xf32>
    %cst_198 = arith.constant dense<0.000000e+00> : vector<8x32xf32>
    %481 = tpu.matmul %479, %480, %cst_198 {dimension_numbers = #tpu.dot_dimension_numbers<[1], [0], [0], [1], [0, 0, 1, 1], [], []>} : vector<8x8xf32>, vector<8x32xf32>, vector<8x32xf32> -> vector<8x32xf32>
    %482 = arith.addf %455, %481 : vector<8x32xf32>
    %483 = arith.addf %482, %330 : vector<8x32xf32>
    %c1_199 = arith.constant 1 : index
    %c0_200 = arith.constant 0 : index
    %c0_201 = arith.constant 0 : index
    %484 = vector.load %arg24[%c1_199, %c0_200, %c0_201] : memref<2x1x32xf32, #tpu.memory_space<vmem>>, vector<1x1x32xf32>
    %485 = vector.shape_cast %484 : vector<1x1x32xf32> to vector<1x32xf32>
    %c1_202 = arith.constant 1 : index
    %c0_203 = arith.constant 0 : index
    %c0_204 = arith.constant 0 : index
    %486 = vector.load %arg25[%c1_202, %c0_203, %c0_204] : memref<2x1x32xf32, #tpu.memory_space<vmem>>, vector<1x1x32xf32>
    %487 = vector.shape_cast %486 : vector<1x1x32xf32> to vector<1x32xf32>
    %cst_205 = arith.constant dense<0.000000e+00> : vector<8xf32>
    %488 = vector.multi_reduction <add>, %483, %cst_205 [1] : vector<8x32xf32> to vector<8xf32>
    %489 = vector.shape_cast %488 : vector<8xf32> to vector<8x1xf32>
    %cst_206 = arith.constant 3.200000e+01 : f32
    %490 = vector.broadcast %cst_206 : f32 to vector<8x1xf32>
    %491 = arith.divf %489, %490 : vector<8x1xf32>
    %492 = vector.broadcast %491 : vector<8x1xf32> to vector<8x32xf32>
    %493 = arith.subf %483, %492 : vector<8x32xf32>
    %494 = arith.mulf %493, %493 : vector<8x32xf32>
    %cst_207 = arith.constant dense<0.000000e+00> : vector<8xf32>
    %495 = vector.multi_reduction <add>, %494, %cst_207 [1] : vector<8x32xf32> to vector<8xf32>
    %496 = vector.shape_cast %495 : vector<8xf32> to vector<8x1xf32>
    %cst_208 = arith.constant 3.200000e+01 : f32
    %497 = vector.broadcast %cst_208 : f32 to vector<8x1xf32>
    %498 = arith.divf %496, %497 : vector<8x1xf32>
    %499 = vector.broadcast %491 : vector<8x1xf32> to vector<8x32xf32>
    %500 = arith.subf %483, %499 : vector<8x32xf32>
    %cst_209 = arith.constant 9.99999974E-6 : f32
    %501 = vector.broadcast %cst_209 : f32 to vector<8x1xf32>
    %502 = arith.addf %498, %501 : vector<8x1xf32>
    %503 = math.rsqrt %502 : vector<8x1xf32>
    %504 = vector.broadcast %503 : vector<8x1xf32> to vector<8x32xf32>
    %505 = arith.mulf %500, %504 : vector<8x32xf32>
    %506 = vector.broadcast %485 : vector<1x32xf32> to vector<8x32xf32>
    %507 = arith.mulf %505, %506 : vector<8x32xf32>
    %508 = vector.broadcast %487 : vector<1x32xf32> to vector<8x32xf32>
    %509 = arith.addf %507, %508 : vector<8x32xf32>
    %c1_210 = arith.constant 1 : index
    %c0_211 = arith.constant 0 : index
    %c0_212 = arith.constant 0 : index
    %510 = vector.load %arg20[%c1_210, %c0_211, %c0_212] : memref<2x32x64xf32, #tpu.memory_space<vmem>>, vector<1x32x64xf32>
    %511 = vector.shape_cast %510 : vector<1x32x64xf32> to vector<32x64xf32>
    %cst_213 = arith.constant dense<0.000000e+00> : vector<8x64xf32>
    %512 = tpu.matmul %509, %511, %cst_213 {dimension_numbers = #tpu.dot_dimension_numbers<[1], [0], [0], [1], [0, 0, 1, 1], [], []>} : vector<8x32xf32>, vector<32x64xf32>, vector<8x64xf32> -> vector<8x64xf32>
    %c1_214 = arith.constant 1 : index
    %c0_215 = arith.constant 0 : index
    %c0_216 = arith.constant 0 : index
    %513 = vector.load %arg21[%c1_214, %c0_215, %c0_216] : memref<2x1x64xf32, #tpu.memory_space<vmem>>, vector<1x1x64xf32>
    %514 = vector.shape_cast %513 : vector<1x1x64xf32> to vector<1x64xf32>
    %515 = vector.broadcast %514 : vector<1x64xf32> to vector<8x64xf32>
    %516 = arith.addf %512, %515 : vector<8x64xf32>
    %cst_217 = arith.constant 5.000000e-01 : f32
    %517 = vector.broadcast %cst_217 : f32 to vector<8x64xf32>
    %518 = arith.mulf %517, %516 : vector<8x64xf32>
    %cst_218 = arith.constant 0.707106769 : f32
    %519 = vector.broadcast %cst_218 : f32 to vector<8x64xf32>
    %520 = arith.mulf %516, %519 : vector<8x64xf32>
    %cst_219 = arith.constant 0.000000e+00 : f32
    %521 = vector.broadcast %cst_219 : f32 to vector<8x64xf32>
    %522 = arith.cmpf oge, %520, %521 : vector<8x64xf32>
    %cst_220 = arith.constant 1.000000e+00 : f32
    %cst_221 = arith.constant -1.000000e+00 : f32
    %523 = vector.broadcast %cst_220 : f32 to vector<8x64xf32>
    %524 = vector.broadcast %cst_221 : f32 to vector<8x64xf32>
    %525 = arith.select %522, %523, %524 : vector<8x64xi1>, vector<8x64xf32>
    %526 = math.absf %520 : vector<8x64xf32>
    %cst_222 = arith.constant 0.327591091 : f32
    %527 = vector.broadcast %cst_222 : f32 to vector<8x64xf32>
    %528 = arith.mulf %527, %526 : vector<8x64xf32>
    %cst_223 = arith.constant 1.000000e+00 : f32
    %529 = vector.broadcast %cst_223 : f32 to vector<8x64xf32>
    %530 = arith.addf %529, %528 : vector<8x64xf32>
    %cst_224 = arith.constant 1.000000e+00 : f32
    %531 = vector.broadcast %cst_224 : f32 to vector<8x64xf32>
    %532 = arith.divf %531, %530 : vector<8x64xf32>
    %cst_225 = arith.constant 1.06140542 : f32
    %533 = vector.broadcast %cst_225 : f32 to vector<8x64xf32>
    %534 = arith.mulf %533, %532 : vector<8x64xf32>
    %cst_226 = arith.constant -1.45315206 : f32
    %535 = vector.broadcast %cst_226 : f32 to vector<8x64xf32>
    %536 = arith.addf %534, %535 : vector<8x64xf32>
    %537 = arith.mulf %536, %532 : vector<8x64xf32>
    %cst_227 = arith.constant 1.42141378 : f32
    %538 = vector.broadcast %cst_227 : f32 to vector<8x64xf32>
    %539 = arith.addf %537, %538 : vector<8x64xf32>
    %540 = arith.mulf %539, %532 : vector<8x64xf32>
    %cst_228 = arith.constant -0.284496725 : f32
    %541 = vector.broadcast %cst_228 : f32 to vector<8x64xf32>
    %542 = arith.addf %540, %541 : vector<8x64xf32>
    %543 = arith.mulf %542, %532 : vector<8x64xf32>
    %cst_229 = arith.constant 0.254829586 : f32
    %544 = vector.broadcast %cst_229 : f32 to vector<8x64xf32>
    %545 = arith.addf %543, %544 : vector<8x64xf32>
    %546 = arith.mulf %545, %532 : vector<8x64xf32>
    %cst_230 = arith.constant 0.000000e+00 : f32
    %547 = vector.broadcast %cst_230 : f32 to vector<8x64xf32>
    %548 = arith.subf %547, %526 : vector<8x64xf32>
    %549 = arith.mulf %548, %526 : vector<8x64xf32>
    %550 = math.exp %549 : vector<8x64xf32>
    %551 = arith.mulf %546, %550 : vector<8x64xf32>
    %cst_231 = arith.constant 1.000000e+00 : f32
    %552 = vector.broadcast %cst_231 : f32 to vector<8x64xf32>
    %553 = arith.subf %552, %551 : vector<8x64xf32>
    %554 = arith.mulf %525, %553 : vector<8x64xf32>
    %cst_232 = arith.constant 1.000000e+00 : f32
    %555 = vector.broadcast %cst_232 : f32 to vector<8x64xf32>
    %556 = arith.addf %555, %554 : vector<8x64xf32>
    %557 = arith.mulf %518, %556 : vector<8x64xf32>
    %c1_233 = arith.constant 1 : index
    %c0_234 = arith.constant 0 : index
    %c0_235 = arith.constant 0 : index
    %558 = vector.load %arg22[%c1_233, %c0_234, %c0_235] : memref<2x64x32xf32, #tpu.memory_space<vmem>>, vector<1x64x32xf32>
    %559 = vector.shape_cast %558 : vector<1x64x32xf32> to vector<64x32xf32>
    %cst_236 = arith.constant dense<0.000000e+00> : vector<8x32xf32>
    %560 = tpu.matmul %557, %559, %cst_236 {dimension_numbers = #tpu.dot_dimension_numbers<[1], [0], [0], [1], [0, 0, 1, 1], [], []>} : vector<8x64xf32>, vector<64x32xf32>, vector<8x32xf32> -> vector<8x32xf32>
    %c1_237 = arith.constant 1 : index
    %c0_238 = arith.constant 0 : index
    %c0_239 = arith.constant 0 : index
    %561 = vector.load %arg23[%c1_237, %c0_238, %c0_239] : memref<2x1x32xf32, #tpu.memory_space<vmem>>, vector<1x1x32xf32>
    %562 = vector.shape_cast %561 : vector<1x1x32xf32> to vector<1x32xf32>
    %563 = vector.broadcast %562 : vector<1x32xf32> to vector<8x32xf32>
    %564 = arith.addf %560, %563 : vector<8x32xf32>
    %565 = arith.addf %564, %509 : vector<8x32xf32>
    %c1_240 = arith.constant 1 : index
    %c0_241 = arith.constant 0 : index
    %c0_242 = arith.constant 0 : index
    %566 = vector.load %arg26[%c1_240, %c0_241, %c0_242] : memref<2x1x32xf32, #tpu.memory_space<vmem>>, vector<1x1x32xf32>
    %567 = vector.shape_cast %566 : vector<1x1x32xf32> to vector<1x32xf32>
    %c1_243 = arith.constant 1 : index
    %c0_244 = arith.constant 0 : index
    %c0_245 = arith.constant 0 : index
    %568 = vector.load %arg27[%c1_243, %c0_244, %c0_245] : memref<2x1x32xf32, #tpu.memory_space<vmem>>, vector<1x1x32xf32>
    %569 = vector.shape_cast %568 : vector<1x1x32xf32> to vector<1x32xf32>
    %cst_246 = arith.constant dense<0.000000e+00> : vector<8xf32>
    %570 = vector.multi_reduction <add>, %565, %cst_246 [1] : vector<8x32xf32> to vector<8xf32>
    %571 = vector.shape_cast %570 : vector<8xf32> to vector<8x1xf32>
    %cst_247 = arith.constant 3.200000e+01 : f32
    %572 = vector.broadcast %cst_247 : f32 to vector<8x1xf32>
    %573 = arith.divf %571, %572 : vector<8x1xf32>
    %574 = vector.broadcast %573 : vector<8x1xf32> to vector<8x32xf32>
    %575 = arith.subf %565, %574 : vector<8x32xf32>
    %576 = arith.mulf %575, %575 : vector<8x32xf32>
    %cst_248 = arith.constant dense<0.000000e+00> : vector<8xf32>
    %577 = vector.multi_reduction <add>, %576, %cst_248 [1] : vector<8x32xf32> to vector<8xf32>
    %578 = vector.shape_cast %577 : vector<8xf32> to vector<8x1xf32>
    %cst_249 = arith.constant 3.200000e+01 : f32
    %579 = vector.broadcast %cst_249 : f32 to vector<8x1xf32>
    %580 = arith.divf %578, %579 : vector<8x1xf32>
    %581 = vector.broadcast %573 : vector<8x1xf32> to vector<8x32xf32>
    %582 = arith.subf %565, %581 : vector<8x32xf32>
    %cst_250 = arith.constant 9.99999974E-6 : f32
    %583 = vector.broadcast %cst_250 : f32 to vector<8x1xf32>
    %584 = arith.addf %580, %583 : vector<8x1xf32>
    %585 = math.rsqrt %584 : vector<8x1xf32>
    %586 = vector.broadcast %585 : vector<8x1xf32> to vector<8x32xf32>
    %587 = arith.mulf %582, %586 : vector<8x32xf32>
    %588 = vector.broadcast %567 : vector<1x32xf32> to vector<8x32xf32>
    %589 = arith.mulf %587, %588 : vector<8x32xf32>
    %590 = vector.broadcast %569 : vector<1x32xf32> to vector<8x32xf32>
    %591 = arith.addf %589, %590 : vector<8x32xf32>
    %cst_251 = arith.constant dense<0.000000e+00> : vector<32xf32>
    %592 = vector.multi_reduction <add>, %591, %cst_251 [0] : vector<8x32xf32> to vector<32xf32>
    %593 = vector.shape_cast %592 : vector<32xf32> to vector<1x32xf32>
    %cst_252 = arith.constant 8.000000e+00 : f32
    %594 = vector.broadcast %cst_252 : f32 to vector<1x32xf32>
    %595 = arith.divf %593, %594 : vector<1x32xf32>
    %c0_253 = arith.constant 0 : index
    %c0_254 = arith.constant 0 : index
    %596 = vector.load %arg28[%c0_253, %c0_254] : memref<32x32xf32, #tpu.memory_space<vmem>>, vector<32x32xf32>
    %cst_255 = arith.constant dense<0.000000e+00> : vector<8x32xf32>
    %597 = tpu.matmul %591, %596, %cst_255 {dimension_numbers = #tpu.dot_dimension_numbers<[1], [0], [0], [1], [0, 0, 1, 1], [], []>} : vector<8x32xf32>, vector<32x32xf32>, vector<8x32xf32> -> vector<8x32xf32>
    %c0_256 = arith.constant 0 : index
    %c0_257 = arith.constant 0 : index
    %598 = vector.load %arg29[%c0_256, %c0_257] : memref<1x32xf32, #tpu.memory_space<vmem>>, vector<1x32xf32>
    %599 = vector.broadcast %598 : vector<1x32xf32> to vector<8x32xf32>
    %600 = arith.addf %597, %599 : vector<8x32xf32>
    %cst_258 = arith.constant 0.000000e+00 : f32
    %601 = vector.broadcast %cst_258 : f32 to vector<8x32xf32>
    %602 = arith.maximumf %600, %601 : vector<8x32xf32>
    %c0_259 = arith.constant 0 : index
    %c0_260 = arith.constant 0 : index
    %603 = vector.load %arg30[%c0_259, %c0_260] : memref<32x1xf32, #tpu.memory_space<vmem>>, vector<32x1xf32>
    %cst_261 = arith.constant dense<0.000000e+00> : vector<8x1xf32>
    %604 = tpu.matmul %602, %603, %cst_261 {dimension_numbers = #tpu.dot_dimension_numbers<[1], [0], [0], [1], [0, 0, 1, 1], [], []>} : vector<8x32xf32>, vector<32x1xf32>, vector<8x1xf32> -> vector<8x1xf32>
    %c0_262 = arith.constant 0 : index
    %c0_263 = arith.constant 0 : index
    %605 = vector.load %arg31[%c0_262, %c0_263] : memref<1x1xf32, #tpu.memory_space<vmem>>, vector<1x1xf32>
    %606 = vector.broadcast %605 : vector<1x1xf32> to vector<8x1xf32>
    %607 = arith.addf %604, %606 : vector<8x1xf32>
    %c0_264 = arith.constant 0 : index
    %c0_265 = arith.constant 0 : index
    %c0_266 = arith.constant 0 : index
    %608 = vector.load %arg34[%c0_264, %c0_265, %c0_266] : memref<1x8x1xf32, #tpu.memory_space<vmem>>, vector<1x8x1xf32>
    %609 = vector.shape_cast %608 : vector<1x8x1xf32> to vector<8x1xf32>
    %610 = vector.shape_cast %607 : vector<8x1xf32> to vector<1x8x1xf32>
    tpu.vector_store %arg34[%c0_264, %c0_265, %c0_266], %610 {strides = array<i32>} : memref<1x8x1xf32, #tpu.memory_space<vmem>>, vector<1x8x1xf32>,
    %c0_267 = arith.constant 0 : index
    %c0_268 = arith.constant 0 : index
    %611 = vector.load %arg32[%c0_267, %c0_268] : memref<32x1xf32, #tpu.memory_space<vmem>>, vector<32x1xf32>
    %cst_269 = arith.constant dense<0.000000e+00> : vector<1x1xf32>
    %612 = tpu.matmul %595, %611, %cst_269 {dimension_numbers = #tpu.dot_dimension_numbers<[1], [0], [0], [1], [0, 0, 1, 1], [], []>} : vector<1x32xf32>, vector<32x1xf32>, vector<1x1xf32> -> vector<1x1xf32>
    %c0_270 = arith.constant 0 : index
    %c0_271 = arith.constant 0 : index
    %613 = vector.load %arg33[%c0_270, %c0_271] : memref<1x1xf32, #tpu.memory_space<vmem>>, vector<1x1xf32>
    %614 = arith.addf %612, %613 : vector<1x1xf32>
    %c0_272 = arith.constant 0 : index
    %c0_273 = arith.constant 0 : index
    %c0_274 = arith.constant 0 : index
    %615 = vector.load %arg35[%c0_272, %c0_273, %c0_274] : memref<1x1x1xf32, #tpu.memory_space<vmem>>, vector<1x1x1xf32>
    %616 = vector.shape_cast %615 : vector<1x1x1xf32> to vector<1x1xf32>
    %617 = vector.shape_cast %614 : vector<1x1xf32> to vector<1x1x1xf32>
    tpu.vector_store %arg35[%c0_272, %c0_273, %c0_274], %617 {strides = array<i32>} : memref<1x1x1xf32, #tpu.memory_space<vmem>>, vector<1x1x1xf32>,
    return
  }
  func.func @transform_0(%arg0: i32) -> (i32, i32) {
    %c0_i32 = arith.constant 0 : i32
    %c0_i32_0 = arith.constant 0 : i32
    %c0_i32_1 = arith.constant 0 : i32
    return %c0_i32, %c0_i32_0 : i32, i32
  }
  func.func @transform_1(%arg0: i32) -> (i32, i32, i32) {
    %c0_i32 = arith.constant 0 : i32
    %c0_i32_0 = arith.constant 0 : i32
    %c0_i32_1 = arith.constant 0 : i32
    return %arg0, %c0_i32, %c0_i32_0 : i32, i32, i32
  }
  func.func @transform_2(%arg0: i32) -> (i32, i32, i32) {
    %c0_i32 = arith.constant 0 : i32
    %c0_i32_0 = arith.constant 0 : i32
    %c0_i32_1 = arith.constant 0 : i32
    return %arg0, %c0_i32, %c0_i32_0 : i32, i32, i32
  }
  func.func @transform_3(%arg0: i32) -> (i32, i32) {
    %c0_i32 = arith.constant 0 : i32
    %c0_i32_0 = arith.constant 0 : i32
    %c0_i32_1 = arith.constant 0 : i32
    return %c0_i32, %c0_i32_0 : i32, i32
  }
  func.func @transform_4(%arg0: i32) -> (i32, i32) {
    %c0_i32 = arith.constant 0 : i32
    %c0_i32_0 = arith.constant 0 : i32
    %c0_i32_1 = arith.constant 0 : i32
    return %c0_i32, %c0_i32_0 : i32, i32
  }
  func.func @transform_5(%arg0: i32) -> (i32, i32) {
    %c0_i32 = arith.constant 0 : i32
    %c0_i32_0 = arith.constant 0 : i32
    %c0_i32_1 = arith.constant 0 : i32
    return %c0_i32, %c0_i32_0 : i32, i32
  }
  func.func @transform_6(%arg0: i32) -> (i32, i32) {
    %c0_i32 = arith.constant 0 : i32
    %c0_i32_0 = arith.constant 0 : i32
    %c0_i32_1 = arith.constant 0 : i32
    return %c0_i32, %c0_i32_0 : i32, i32
  }
  func.func @transform_7(%arg0: i32) -> (i32, i32) {
    %c0_i32 = arith.constant 0 : i32
    %c0_i32_0 = arith.constant 0 : i32
    %c0_i32_1 = arith.constant 0 : i32
    return %c0_i32, %c0_i32_0 : i32, i32
  }
  func.func @transform_8(%arg0: i32) -> (i32, i32) {
    %c0_i32 = arith.constant 0 : i32
    %c0_i32_0 = arith.constant 0 : i32
    %c0_i32_1 = arith.constant 0 : i32
    return %c0_i32, %c0_i32_0 : i32, i32
  }
  func.func @transform_9(%arg0: i32) -> (i32, i32, i32) {
    %c0_i32 = arith.constant 0 : i32
    %c0_i32_0 = arith.constant 0 : i32
    %c0_i32_1 = arith.constant 0 : i32
    %c0_i32_2 = arith.constant 0 : i32
    return %c0_i32, %c0_i32_0, %c0_i32_1 : i32, i32, i32
  }
  func.func @transform_10(%arg0: i32) -> (i32, i32, i32) {
    %c0_i32 = arith.constant 0 : i32
    %c0_i32_0 = arith.constant 0 : i32
    %c0_i32_1 = arith.constant 0 : i32
    %c0_i32_2 = arith.constant 0 : i32
    return %c0_i32, %c0_i32_0, %c0_i32_1 : i32, i32, i32
  }
  func.func @transform_11(%arg0: i32) -> (i32, i32, i32) {
    %c0_i32 = arith.constant 0 : i32
    %c0_i32_0 = arith.constant 0 : i32
    %c0_i32_1 = arith.constant 0 : i32
    %c0_i32_2 = arith.constant 0 : i32
    return %c0_i32, %c0_i32_0, %c0_i32_1 : i32, i32, i32
  }
  func.func @transform_12(%arg0: i32) -> (i32, i32, i32) {
    %c0_i32 = arith.constant 0 : i32
    %c0_i32_0 = arith.constant 0 : i32
    %c0_i32_1 = arith.constant 0 : i32
    %c0_i32_2 = arith.constant 0 : i32
    return %c0_i32, %c0_i32_0, %c0_i32_1 : i32, i32, i32
  }
  func.func @transform_13(%arg0: i32) -> (i32, i32, i32) {
    %c0_i32 = arith.constant 0 : i32
    %c0_i32_0 = arith.constant 0 : i32
    %c0_i32_1 = arith.constant 0 : i32
    %c0_i32_2 = arith.constant 0 : i32
    return %c0_i32, %c0_i32_0, %c0_i32_1 : i32, i32, i32
  }
  func.func @transform_14(%arg0: i32) -> (i32, i32, i32) {
    %c0_i32 = arith.constant 0 : i32
    %c0_i32_0 = arith.constant 0 : i32
    %c0_i32_1 = arith.constant 0 : i32
    %c0_i32_2 = arith.constant 0 : i32
    return %c0_i32, %c0_i32_0, %c0_i32_1 : i32, i32, i32
  }
  func.func @transform_15(%arg0: i32) -> (i32, i32, i32) {
    %c0_i32 = arith.constant 0 : i32
    %c0_i32_0 = arith.constant 0 : i32
    %c0_i32_1 = arith.constant 0 : i32
    %c0_i32_2 = arith.constant 0 : i32
    return %c0_i32, %c0_i32_0, %c0_i32_1 : i32, i32, i32
  }
  func.func @transform_16(%arg0: i32) -> (i32, i32, i32) {
    %c0_i32 = arith.constant 0 : i32
    %c0_i32_0 = arith.constant 0 : i32
    %c0_i32_1 = arith.constant 0 : i32
    %c0_i32_2 = arith.constant 0 : i32
    return %c0_i32, %c0_i32_0, %c0_i32_1 : i32, i32, i32
  }
  func.func @transform_17(%arg0: i32) -> (i32, i32, i32) {
    %c0_i32 = arith.constant 0 : i32
    %c0_i32_0 = arith.constant 0 : i32
    %c0_i32_1 = arith.constant 0 : i32
    %c0_i32_2 = arith.constant 0 : i32
    return %c0_i32, %c0_i32_0, %c0_i32_1 : i32, i32, i32
  }
  func.func @transform_18(%arg0: i32) -> (i32, i32, i32) {
    %c0_i32 = arith.constant 0 : i32
    %c0_i32_0 = arith.constant 0 : i32
    %c0_i32_1 = arith.constant 0 : i32
    %c0_i32_2 = arith.constant 0 : i32
    return %c0_i32, %c0_i32_0, %c0_i32_1 : i32, i32, i32
  }
  func.func @transform_19(%arg0: i32) -> (i32, i32, i32) {
    %c0_i32 = arith.constant 0 : i32
    %c0_i32_0 = arith.constant 0 : i32
    %c0_i32_1 = arith.constant 0 : i32
    %c0_i32_2 = arith.constant 0 : i32
    return %c0_i32, %c0_i32_0, %c0_i32_1 : i32, i32, i32
  }
  func.func @transform_20(%arg0: i32) -> (i32, i32, i32) {
    %c0_i32 = arith.constant 0 : i32
    %c0_i32_0 = arith.constant 0 : i32
    %c0_i32_1 = arith.constant 0 : i32
    %c0_i32_2 = arith.constant 0 : i32
    return %c0_i32, %c0_i32_0, %c0_i32_1 : i32, i32, i32
  }
  func.func @transform_21(%arg0: i32) -> (i32, i32, i32) {
    %c0_i32 = arith.constant 0 : i32
    %c0_i32_0 = arith.constant 0 : i32
    %c0_i32_1 = arith.constant 0 : i32
    %c0_i32_2 = arith.constant 0 : i32
    return %c0_i32, %c0_i32_0, %c0_i32_1 : i32, i32, i32
  }
  func.func @transform_22(%arg0: i32) -> (i32, i32, i32) {
    %c0_i32 = arith.constant 0 : i32
    %c0_i32_0 = arith.constant 0 : i32
    %c0_i32_1 = arith.constant 0 : i32
    %c0_i32_2 = arith.constant 0 : i32
    return %c0_i32, %c0_i32_0, %c0_i32_1 : i32, i32, i32
  }
  func.func @transform_23(%arg0: i32) -> (i32, i32, i32) {
    %c0_i32 = arith.constant 0 : i32
    %c0_i32_0 = arith.constant 0 : i32
    %c0_i32_1 = arith.constant 0 : i32
    %c0_i32_2 = arith.constant 0 : i32
    return %c0_i32, %c0_i32_0, %c0_i32_1 : i32, i32, i32
  }
  func.func @transform_24(%arg0: i32) -> (i32, i32, i32) {
    %c0_i32 = arith.constant 0 : i32
    %c0_i32_0 = arith.constant 0 : i32
    %c0_i32_1 = arith.constant 0 : i32
    %c0_i32_2 = arith.constant 0 : i32
    return %c0_i32, %c0_i32_0, %c0_i32_1 : i32, i32, i32
  }
  func.func @transform_25(%arg0: i32) -> (i32, i32, i32) {
    %c0_i32 = arith.constant 0 : i32
    %c0_i32_0 = arith.constant 0 : i32
    %c0_i32_1 = arith.constant 0 : i32
    %c0_i32_2 = arith.constant 0 : i32
    return %c0_i32, %c0_i32_0, %c0_i32_1 : i32, i32, i32
  }
  func.func @transform_26(%arg0: i32) -> (i32, i32, i32) {
    %c0_i32 = arith.constant 0 : i32
    %c0_i32_0 = arith.constant 0 : i32
    %c0_i32_1 = arith.constant 0 : i32
    %c0_i32_2 = arith.constant 0 : i32
    return %c0_i32, %c0_i32_0, %c0_i32_1 : i32, i32, i32
  }
  func.func @transform_27(%arg0: i32) -> (i32, i32) {
    %c0_i32 = arith.constant 0 : i32
    %c0_i32_0 = arith.constant 0 : i32
    %c0_i32_1 = arith.constant 0 : i32
    return %c0_i32, %c0_i32_0 : i32, i32
  }
  func.func @transform_28(%arg0: i32) -> (i32, i32) {
    %c0_i32 = arith.constant 0 : i32
    %c0_i32_0 = arith.constant 0 : i32
    %c0_i32_1 = arith.constant 0 : i32
    return %c0_i32, %c0_i32_0 : i32, i32
  }
  func.func @transform_29(%arg0: i32) -> (i32, i32) {
    %c0_i32 = arith.constant 0 : i32
    %c0_i32_0 = arith.constant 0 : i32
    %c0_i32_1 = arith.constant 0 : i32
    return %c0_i32, %c0_i32_0 : i32, i32
  }
  func.func @transform_30(%arg0: i32) -> (i32, i32) {
    %c0_i32 = arith.constant 0 : i32
    %c0_i32_0 = arith.constant 0 : i32
    %c0_i32_1 = arith.constant 0 : i32
    return %c0_i32, %c0_i32_0 : i32, i32
  }
  func.func @transform_31(%arg0: i32) -> (i32, i32) {
    %c0_i32 = arith.constant 0 : i32
    %c0_i32_0 = arith.constant 0 : i32
    %c0_i32_1 = arith.constant 0 : i32
    return %c0_i32, %c0_i32_0 : i32, i32
  }
  func.func @transform_32(%arg0: i32) -> (i32, i32) {
    %c0_i32 = arith.constant 0 : i32
    %c0_i32_0 = arith.constant 0 : i32
    %c0_i32_1 = arith.constant 0 : i32
    return %c0_i32, %c0_i32_0 : i32, i32
  }
  func.func @transform_33(%arg0: i32) -> (i32, i32, i32) {
    %c0_i32 = arith.constant 0 : i32
    %c0_i32_0 = arith.constant 0 : i32
    %c0_i32_1 = arith.constant 0 : i32
    return %arg0, %c0_i32, %c0_i32_0 : i32, i32, i32
  }
  func.func @transform_34(%arg0: i32) -> (i32, i32, i32) {
    %c0_i32 = arith.constant 0 : i32
    %c0_i32_0 = arith.constant 0 : i32
    %c0_i32_1 = arith.constant 0 : i32
    return %arg0, %c0_i32, %c0_i32_0 : i32, i32, i32
  }
}

</mosaic_0001>

<bundles_post_ra>
// kernel: neg.1
= control target key start
LH: loop header
LB: loop body
LE: loop exit
PB: predicated region body
PF: predicated region fallthrough
CT: control target
= control target key end

     0   :  { %2 = vsyncpa [#allocation1], 0  ;;  %s70_s0 = inlined_call_operand.vmem [shape: f32[2], index: 0, kind: input, shape index: {}]   ;;  %s71_s1 = inlined_call_operand.hbm [shape: f32[2], index: 1, kind: output, shape index: {}]  }
   0x1   :  { %v3_v0 = vld [vmem:[%s70_s0] sm:$0x1]  ;;  %s44_s0 = smov [#allocation0]  }
   0x2   :  { %v6_v1 = vxor.u32 2147483648, %v3_v0  ;;  %s13_s8 = sshll.u32 %s44_s0, 4  ;;  %s14_s8 = int_to_ptr.vmem [resolvable:$true] %s13_s8 }
   0x3   :  { %s20_s9 = scalar_lea.vmem %s14_s8, 16  ;;  %s24_s10 = scalar_lea.vmem %s14_s8, 32 }
   0x4   :  { %8 = vst [vmem:[#allocation0] sm:$0x1] %v6_v1  ;;  %p21_p0 = scmp.ne.s32.totalorder %s14_s8, %s20_s9  ;;  %p25_p1 = scmp.lt.s32.totalorder %s14_s8, %s14_s8 }
   0x5   :  { %p26_p2 = scmp.lt.s32.totalorder %s24_s10, %s20_s9 }
   0x7   :  { %p27_p3 = por %p26_p2, %p25_p1 }
   0x9   :  { %p28_p4 = pnand %p27_p3, %p21_p0 }
   0xb   :  { %31 = shalt.err (!%p28_p4)
}
   0xc   :  { %s32_s13 = scalar_lea.hbm %s71_s1, 16 }
   0xd   :  { %p33_p5 = scmp.ne.s32.totalorder %s71_s1, %s32_s13  ;;  %p36_p6 = scmp.lt.u32.totalorder %s32_s13, %s71_s1 }
   0xf   :  { %p38_p7 = pnand %p36_p6, %p33_p5 }
  0x11   :  { %41 = shalt.err (!%p38_p7)
}
  0x12   :  { %16 = dma.vmem_to_hbm [thread:$0]  %s14_s8, 16, %s71_s1, [#allocation1]  }
  0x13   :  { %42 = dma.done.wait [#allocation1], 16  }
  0x14   :  { %43 = vsyncadd [#allocation1], 4294967280 }
  0x15   :  { %18 = vsyncpa [#allocation1], 1 }

// kernel: transformer_forward.1
= control target key start
LH: loop header
LB: loop body
LE: loop exit
PB: predicated region body
PF: predicated region fallthrough
CT: control target
= control target key end

     0   :  { %s7510_s6 = smov 1   ;;  %s7511_s10 = smov 2   ;;  %s8667_s0 = inlined_call_operand.smem [shape: u32[35], index: -1, kind: input, shape index: {}] }
   0x1   :  { %s7574_s5 = sld [smem:[%s8667_s0]]   ;;  %s7512_s14 = smov 3  }
   0x2   :  { %s7579_s9 = sld [smem:[%s8667_s0 + %s7510_s6]]   ;;  %s7513_s18 = smov 4  }
   0x3   :  { %s7584_s13 = sld [smem:[%s8667_s0 + %s7511_s10]]   ;;  %s7514_s22 = smov 5  }
   0x4   :  { %s7589_s17 = sld [smem:[%s8667_s0 + %s7512_s14]]   ;;  %s7515_s26 = smov 6  }
   0x5   :  { %s7594_s21 = sld [smem:[%s8667_s0 + %s7513_s18]]   ;;  %s7516_s30 = smov 7  }
   0x6   :  { %s7599_s25 = sld [smem:[%s8667_s0 + %s7514_s22]]   ;;  %s7517_s4 = smov 8  }
   0x7   :  { %8701 = sst [smem:[#allocation7_spill]] %s7574_s5  ;;  %s7518_s10 = smov 9  }
   0x8   :  { %s7604_s29 = sld [smem:[%s8667_s0 + %s7515_s26]]   ;;  %s7519_s15 = smov 10  }
   0x9   :  { %s7609_s3 = sld [smem:[%s8667_s0 + %s7516_s30]]   ;;  %s7520_s20 = smov 11  }
   0xa   :  { %8702 = sst [smem:[#allocation8_spill]] %s7589_s17  ;;  %s7521_s26 = smov 12  }
   0xb   :  { %8703 = sst [smem:[#allocation9_spill]] %s7594_s21  ;;  %s7522_s1 = smov 13  }
   0xc   :  { %s7614_s8 = sld [smem:[%s8667_s0 + %s7517_s4]]   ;;  %s7523_s7 = smov 14  }
   0xd   :  { %s7619_s14 = sld [smem:[%s8667_s0 + %s7518_s10]]   ;;  %s7525_s22 = smov 16  }
   0xe   :  { %s7624_s19 = sld [smem:[%s8667_s0 + %s7519_s15]]   ;;  %s7524_s15 = smov 15  }
   0xf   :  { %8704 = sst [smem:[#allocation10_spill]] %s7609_s3  ;;  %s7526_s28 = smov 17  }
  0x10   :  { %s7629_s24 = sld [smem:[%s8667_s0 + %s7520_s20]]   ;;  %s7540_s16 = smov 31  }
  0x11   :  { %s7634_s30 = sld [smem:[%s8667_s0 + %s7521_s26]]   ;;  %s7541_s23 = smov 33  }
  0x12   :  { %s7639_s6 = sld [smem:[%s8667_s0 + %s7522_s1]]   ;;  %s7542_s1 = smov 34  }
  0x13   :  { %s7644_s12 = sld [smem:[%s8667_s0 + %s7523_s7]]   ;;  %s7527_s7 = smov 18  }
  0x14   :  { %8705 = sst [smem:[#allocation11_spill]] %s7624_s19  ;;  %s7543_s10 = smov 32  }
  0x15   :  { %s7649_s20 = sld [smem:[%s8667_s0 + %s7524_s15]]   ;;  %s7528_s15 = smov 19  }
  0x16   :  { %8706 = sst [smem:[#allocation12_spill]] %s7629_s24 }
  0x17   :  { %8707 = sst [smem:[#allocation13_spill]] %s7634_s30 }
  0x18   :  { %s7654_s27 = sld [smem:[%s8667_s0 + %s7525_s22]]   ;;  %s7529_s22 = smov 20  }
  0x19   :  { %s7659_s4 = sld [smem:[%s8667_s0 + %s7526_s28]]   ;;  %s7530_s28 = smov 21  }
  0x1a   :  { %s7664_s30 = sld [smem:[%s8667_s0 + %s7527_s7]]   ;;  %s7531_s7 = smov 22  }
  0x1b   :  { %s7669_s24 = sld [smem:[%s8667_s0 + %s7528_s15]]   ;;  %s7532_s15 = smov 23  }
  0x1c   :  { %s7674_s17 = sld [smem:[%s8667_s0 + %s7529_s22]]   ;;  %s7533_s22 = smov 24  }
  0x1d   :  { %s7679_s21 = sld [smem:[%s8667_s0 + %s7530_s28]]   ;;  %s7534_s28 = smov 25  }
  0x1e   :  { %s7684_s19 = sld [smem:[%s8667_s0 + %s7531_s7]]   ;;  %s7535_s7 = smov 26  }
  0x1f   :  { %8708 = sst [smem:[#allocation14_spill]] %s7659_s4 }
  0x20   :  { %8709 = sst [smem:[#allocation15_spill]] %s7664_s30 }
  0x21   :  { %8710 = sst [smem:[#allocation16_spill]] %s7669_s24 }
  0x22   :  { %8711 = sst [smem:[#allocation17_spill]] %s7674_s17 }
  0x23   :  { %8712 = sst [smem:[#allocation18_spill]] %s7679_s21 }
  0x24   :  { %8713 = sst [smem:[#allocation19_spill]] %s7684_s19 }
  0x25   :  { %s7689_s24 = sld [smem:[%s8667_s0 + %s7532_s15]]   ;;  %s7536_s15 = smov 27  }
  0x26   :  { %s7694_s17 = sld [smem:[%s8667_s0 + %s7533_s22]]   ;;  %s7537_s22 = smov 28  }
  0x27   :  { %s7699_s21 = sld [smem:[%s8667_s0 + %s7534_s28]]   ;;  %s7538_s28 = smov 29  }
  0x28   :  { %s7704_s19 = sld [smem:[%s8667_s0 + %s7535_s7]]   ;;  %s7539_s7 = smov 30  }
  0x29   :  { %s6169_s30 = sld [smem:[%s8667_s0 + %s7543_s10]]  }
  0x2b   :  { %8714 = sst [smem:[#allocation20_spill]] %s7689_s24 }
  0x2c   :  { %8715 = sst [smem:[#allocation21_spill]] %s7694_s17 }
  0x2d   :  { %8716 = sst [smem:[#allocation22_spill]] %s7699_s21 }
  0x2e   :  { %8717 = sst [smem:[#allocation23_spill]] %s7704_s19 }
  0x2f   :  { %s7709_s24 = sld [smem:[%s8667_s0 + %s7536_s15]]   ;;  %v77_v1 = vstv %s6169_s30 }
  0x30   :  { %s7714_s17 = sld [smem:[%s8667_s0 + %s7537_s22]]   ;;  %78 = vst [vmem:[#allocation3] sm:$0x1] %v77_v1 }
  0x31   :  { %s7719_s21 = sld [smem:[%s8667_s0 + %s7538_s28]]  }
  0x32   :  { %s6167_s19 = sld [smem:[%s8667_s0 + %s7539_s7]]  }
  0x35   :  { %8718 = sst [smem:[#allocation24_spill]] %s7709_s24 }
  0x36   :  { %8719 = sst [smem:[#allocation25_spill]] %s7714_s17 }
  0x37   :  { %8720 = sst [smem:[#allocation26_spill]] %s7719_s21 }
  0x38   :  { %s7727_s24 = sld [smem:[%s8667_s0 + %s7540_s16]]   ;;  %v75_v0 = vstv %s6167_s19 }
  0x39   :  { %s7732_s17 = sld [smem:[%s8667_s0 + %s7541_s23]]   ;;  %76 = vst [vmem:[#allocation2] sm:$0x1] %v75_v0 }
  0x3a   :  { %s7737_s21 = sld [smem:[%s8667_s0 + %s7542_s1]]  }
  0x3b   :  { %79 = vsyncpa [#allocation5], 0  ;;  %s7742_s16 = smov 0  }
  0x3c LB: > { %s8721_s4 = sld [smem:[#allocation14_spill]]  ;;  %s8722_s5 = sld [smem:[#allocation7_spill]]  ;;  %s7508_s16 = sphi %s7742_s16, %s85_s16  }
  0x3d   : > { %s7748_s15 = sadd.s32 4294967295, %s7508_s16   ;;  %p6174_p0 = scmp.ge.s32.totalorder %s7508_s16, 1 }
  0x3e   : > { %p845_p1 = scmp.lt.s32.totalorder %s7508_s16, 3  ;;  %p7325_p3 = scmp.eq.s32.totalorder %s7748_s15, 0 }
  0x40   : > { %p7753_p2 = pnand %p6174_p0, %p845_p1 }
  0x42   : > { %s858_s0 = sshll.u32 %s8722_s5, 4  ;;  %p7321_p4 = pneg %p7753_p2  ;;  %s859_s0 = int_to_ptr.vmem [resolvable:$true] %s858_s0 }
  0x43   : > { %s7483_s30 = scalar_lea.vmem %s859_s0, 32  ;;  %p7491_p10 = scmp.lt.s32.totalorder %s859_s0, %s859_s0 }
  0x44   : > { %p7322_p5 = pnand %p7325_p3, %p7321_p4  ;;  %p7484_p6 = scmp.ne.s32.totalorder %s859_s0, %s7483_s30 }
  0x45   : > { %p7492_p11 = scmp.lt.s32.totalorder %s7483_s30, %s7483_s30 }
  0x46   : > { %p7485_p7 = pneg %p7322_p5 }
  0x47   : > { %p7493_p12 = por %p7492_p11, %p7491_p10 }
  0x48   : > { %p7486_p8 = pnand %p7485_p7, %p7484_p6 }
  0x4a   : > { %p7487_p9 = pneg %p7486_p8 }
  0x4c   : > { %p7494_p13 = pnand %p7493_p12, %p7487_p9 }
  0x4e   : > { %7497 = shalt.err (!%p7494_p13)
}
  0x4f   : > { %s7544_s18 = smov [#allocation4]   ;;  %976 = sbr.rel (%p7753_p2) target bundleno = 10979 (0x2ae3), region = 152 }
  0x50   : > { %7324 = dma.vmem_to_smem (!%p7322_p5), %s859_s0, 32, %s7544_s18, [#allocation5]  }
  0x56   : > { %7503 = dma.done.wait (%p7325_p3), [#allocation5], 32  }
  0x57   : > { %7505 = vsyncadd (%p7325_p3), [#allocation5], 4294967264 }
  0x58   : > { %982 = sfence }
  0x59   : > { %p1069_p0 = scmp.lt.s32.totalorder %s7748_s15, 1  ;;  %v7545_v2 = vmov 1   ;;  %v7546_v3 = vmov 0   ;;  %v7547_v7 = vmov 2   ;;  %v1441_v8 = vld [vmem:[%s7639_s6] sm:$0xff]  ;;  %v1442_v9 = vld [vmem:[%s7639_s6 + $0x8] sm:$0xff]  ;;  %v1102_v34 = vlaneseq }
  0x5a   : > { %7392 = vset.pattern.permute.xlu1 %v7545_v2  ;;  %7391 = vset.pattern.permute.xlu0 %v7546_v3  ;;  %v7113_v11 = vpack.c.bf16 %v1442_v9, %v1441_v8  ;;  %v1443_v12 = vld [vmem:[%s7639_s6 + $0x10] sm:$0xff]  ;;  %v1444_v13 = vld [vmem:[%s7639_s6 + $0x18] sm:$0xff]  ;;  %v7548_v20 = vmov 4   ;;  %v7549_v21 = vmov 3   ;;  %v1355_v22 = vld [vmem:[%s7619_s14] sm:$0xff]  ;;  %v7550_v25 = vmov 0.0|0.0  }
  0x5b   : > { %s8755_s15 = smov (!%p1069_p0, %s7748_s15), 1  ;;  %v7117_v14 = vpack.c.bf16 %v1444_v13, %v1443_v12  ;;  %v1356_v23 = vld [vmem:[%s7619_s14 + $0x8] sm:$0xff]  ;;  %7107 = vmatprep.subr.bf16.mxu0 %v7550_v25  ;;  %v7551_v26 = vmov 5   ;;  %s8724_s3 = sld [smem:[#allocation10_spill]]  ;;  %v1357_v27 = vld [vmem:[%s7619_s14 + $0x10] sm:$0xff]  ;;  %v1358_v28 = vld [vmem:[%s7619_s14 + $0x18] sm:$0xff] }
  0x5c   : > { %s6354_s23 = sshll.u32 %s8755_s15, 6  ;;  %7114 = vmatprep.subr.bf16.mxu1 %v7113_v11  ;;  %s8684_s26 = sshll.u32 %s8755_s15, 3  ;;  %v7108_v24 = vpack.c.bf16 %v1356_v23, %v1355_v22  ;;  %v7111_v29 = vpack.c.bf16 %v1358_v28, %v1357_v27  ;;  %vm7552_vm0 = vmmov 0   ;;  %v7553_v30 = vmov 0.0   ;;  %v1589_v31 = vld [vmem:[%s7649_s20] sm:$0xff]  ;;  %v1590_v32 = vld [vmem:[%s7649_s20 + $0x8] sm:$0xff] }
  0x5d   : > { %s7776_s22 = scalar_lea.vmem %s7584_s13, %s6354_s23  ;;  %7116 = vmatpush3.bf16.msra.mxu1 %v7113_v11  ;;  %s1072_s1 = scalar_lea.vmem %s7579_s9, %s8684_s26  ;;  %6608 = vmatprep.mubr.msk.f32.mxu0 %vm7552_vm0, %v7553_v30  ;;  %v7821_v33 = vpack.c.bf16 %v1590_v32, %v1589_v31  ;;  %v7824_v35 = vshrl.u32 %v1102_v34, 7  ;;  %v7836_v44 = vld [vmem:[%s7614_s8] ss:$0 sm:$0xff]  ;;  %vm1366_vm1 = vcmask 261120   ;;  %vm1885_vm2 = vcmask 64512  }
  0x5e   : > { %v1165_v4 = vld [vmem:[%s7776_s22] sm:$0xff]  ;;  %v1166_v5 = vld [vmem:[%s7776_s22 + $0x8] sm:$0xff]  ;;  %v1167_v6 = vld [vmem:[%s7776_s22 + $0x10] sm:$0xff]  ;;  %7118 = vmatprep.subr.bf16.mxu1 %v7117_v14  ;;  %7109 = vmatpush3.bf16.msra.mxu0 %v7108_v24  ;;  %s8725_s28 = sld [smem:[#allocation15_spill]]  ;;  %s8726_s2 = sld [smem:[#allocation11_spill]]  ;;  %vm2009_vm3 = vcmask 523264  }
  0x5f   : > { %1242 = vperm.xlu1 %7392, %v1165_v4   ;;  %1177 = vperm.xlu0 %7391, %v1165_v4   ;;  %v1168_v10 = vld [vmem:[%s7776_s22 + $0x18] sm:$0xff]  ;;  %v1169_v15 = vld [vmem:[%s7776_s22 + $0x20] sm:$0xff]  ;;  %v1170_v16 = vld [vmem:[%s7776_s22 + $0x28] sm:$0xff]  ;;  %v1104_v36 = vsub.s32 0, %v7824_v35  ;;  %v1120_v39 = vsub.s32 1, %v7824_v35  ;;  %v1130_v43 = vsub.s32 2, %v7824_v35 }
  0x60   : > { %v1171_v17 = vld [vmem:[%s7776_s22 + $0x30] sm:$0xff]  ;;  %v1172_v18 = vld [vmem:[%s7776_s22 + $0x38] sm:$0xff]  ;;  %v1094_v19 = vld [vmem:[%s1072_s1] sm:$0xff]  ;;  %7110 = vmatprep.subr.bf16.mxu0 %v7550_v25  ;;  %s8727_s10 = sld [smem:[#allocation9_spill]]  ;;  %s8695_s7 = smov 96   ;;  %vm6034_vm6 = vcmask 0  }
  0x61   : > { %7120 = vmatpush3.bf16.msra.mxu1 %v7117_v14  ;;  %v1173_v37 = vld [vmem:[%s8724_s3] sm:$0x7]  ;;  %s8728_s11 = sld [smem:[#allocation8_spill]]  ;;  %s1353_s0 = sld [smem:[#allocation4]]  ;;  %vm5954_vm7 = vcmask 7168  }
  0x62   : > { %7112 = vmatpush3.bf16.msra.mxu0 %v7111_v29  ;;  %v7830_v38 = vrot.slane %v1173_v37, %v1104_v36  ;;  %v7840_v45 = vrot.slane %v1173_v37, %v1120_v39  ;;  %v7846_v50 = vrot.slane %v1173_v37, %v1130_v43  ;;  %s6185_s19 = sld [smem:[#allocation4 + $0x1]]  ;;  %s8693_s30 = smov 88  }
  0x63   : > { %1246 = vperm.xlu1 %7392, %v1166_v5   ;;  %1182 = vperm.xlu0 %7391, %v1166_v5   ;;  %s8729_s18 = sld [smem:[#allocation12_spill]]  ;;  %s8694_s23 = smov 64  }
  0x64   : > { %7122 = vmatprep.subr.bf16.mxu0 %v7821_v33  ;;  %s8692_s22 = smov 120   ;;  %s8686_s1 = smov 80  }
  0x65   : > { %s8730_s26 = sld [smem:[#allocation13_spill]]  ;;  %s8738_s3 = sld [smem:[#allocation23_spill]] }
  0x66   : > { %s8740_s5 = smov 64  }
  0x67   : > { %7393 = vset.pattern.permute.xlu1 %v7547_v7  ;;  %1187 = vperm.xlu0 %7391, %v1167_v6  }
  0x68   : > { %1294 = vperm.xlu1 %7393, %v1165_v4  }
  0x6b   : > { %1192 = vperm.xlu0 %7391, %v1168_v10  }
  0x6c   : > { %1298 = vperm.xlu1 %7393, %v1166_v5  }
  0x6f   : > { %7396 = vset.pattern.permute.xlu0 %v7547_v7 }
  0x70   : > { %7394 = vset.pattern.permute.xlu1 %v7545_v2  ;;  %1302 = vperm.xlu0 %7396, %v1167_v6  }
  0x71   : > { %1254 = vperm.xlu1 %7394, %v1168_v10  }
  0x74   : > { %1310 = vperm.xlu0 %7396, %v1169_v15  }
  0x75   : > { %7395 = vset.pattern.permute.xlu1 %v7546_v3 }
  0x76   : > { %1197 = vperm.xlu1 %7395, %v1169_v15  }
  0x78   : > { %7400 = vset.pattern.permute.xlu0 %v7545_v2 }
  0x79   : > { %1250 = vperm.xlu0 %7400, %v1167_v6  }
  0x7a   : > { %1202 = vperm.xlu1 %7395, %v1170_v16  }
  0x7d   : > { %1258 = vperm.xlu0 %7400, %v1169_v15  }
  0x7e   : > { %7397 = vset.pattern.permute.xlu1 %v7547_v7 }
  0x7f   : > { %1306 = vperm.xlu1 %7397, %v1168_v10  }
  0x81   : > { %1266 = vperm.xlu0 %7400, %v1171_v17  }
  0x83   : > { %7398 = vset.pattern.permute.xlu1 %v7545_v2 }
  0x84   : > { %1262 = vperm.xlu1 %7398, %v1170_v16  }
  0x85   : > { %7404 = vset.pattern.permute.xlu0 %v7547_v7 }
  0x86   : > { %1322 = vperm.xlu0 %7404, %v1172_v18  }
  0x88   : > { %7399 = vset.pattern.permute.xlu1 %v7546_v3 }
  0x89   : > { %1207 = vperm.xlu1 %7399, %v1171_v17  }
  0x8a   : > { %1125 = vperm.xlu0 %7404, %v1094_v19  }
  0x8d   : > { %1212 = vperm.xlu1 %7399, %v1172_v18  }
  0x8e   : > { %7408 = vset.pattern.permute.xlu0 %v7548_v20 }
  0x8f   : > { %1145 = vperm.xlu0 %7408, %v1094_v19  }
  0x91   : > { %7401 = vset.pattern.permute.xlu1 %v7547_v7 }
  0x92   : > { %1314 = vperm.xlu1 %7401, %v1170_v16  }
  0x93   : > { %7410 = vset.pattern.permute.xlu0 %v7546_v3 }
  0x96   : > { %7402 = vset.pattern.permute.xlu1 %v7545_v2 }
  0x97   : > { %1270 = vperm.xlu1 %7402, %v1172_v18  }
  0x9b   : > { %7403 = vset.pattern.permute.xlu1 %v7547_v7 }
  0x9c   : > { %1318 = vperm.xlu1 %7403, %v1171_v17  }
  0xa0   : > { %7405 = vset.pattern.permute.xlu1 %v7546_v3 }
  0xa1   : > { %1099 = vperm.xlu1 %7405, %v1094_v19  }
  0xa5   : > { %7406 = vset.pattern.permute.xlu1 %v7545_v2 }
  0xa6   : > { %1115 = vperm.xlu1 %7406, %v1094_v19  }
  0xaa   : > { %7407 = vset.pattern.permute.xlu1 %v7549_v21 }
  0xab   : > { %1135 = vperm.xlu1 %7407, %v1094_v19  }
  0xaf   : > { %7409 = vset.pattern.permute.xlu1 %v7551_v26 }
  0xb0   : > { %1155 = vperm.xlu1 %7409, %v1094_v19  }
  0xb4   : > { %7411 = vset.pattern.permute.xlu1 %v7546_v3 }
  0xde   : > { %v1243_v40 = vpop.permute.xlu1 %1242  ;;  %v1178_v41 = vpop.permute.xlu0 %1177 }
  0xdf   : > { %v1219_v42 = vmul.f32 %v7830_v38, %v1178_v41  ;;  %v1277_v51 = vmul.f32 %v7840_v45, %v1243_v40 }
  0xe1   : > { %v1233_v48 = vadd.f32 %v7836_v44, %v1219_v42 }
  0xe2   : > { %v1247_v46 = vpop.permute.xlu1 %1246  ;;  %v1183_v47 = vpop.permute.xlu0 %1182 }
  0xe3   : > { %v1220_v49 = vmul.f32 %v7830_v38, %v1183_v47  ;;  %v1285_v56 = vadd.f32 %v1277_v51, %v1233_v48  ;;  %v1278_v57 = vmul.f32 %v7840_v45, %v1247_v46 }
  0xe5   : > { %v1234_v54 = vadd.f32 %v7836_v44, %v1220_v49 }
  0xe6   : > { %v1188_v52 = vpop.permute.xlu0 %1187 }
  0xe7   : > { %v1295_v53 = vpop.permute.xlu1 %1294  ;;  %v1286_v61 = vadd.f32 %v1278_v57, %v1234_v54  ;;  %v1221_v8 = vmul.f32 %v7830_v38, %v1188_v52 }
  0xe8   : > { %v1329_v55 = vmul.f32 %v7846_v50, %v1295_v53 }
  0xe9   : > { %v1235_v12 = vadd.f32 %v7836_v44, %v1221_v8 }
  0xea   : > { %v1193_v58 = vpop.permute.xlu0 %1192  ;;  %v7852_v59 = vadd.f32 %v1329_v55, %v1285_v56 }
  0xeb   : > { %v1299_v60 = vpop.permute.xlu1 %1298  ;;  %v1222_v10 = vmul.f32 %v7830_v38, %v1193_v58 }
  0xec   : > { %v1330_v62 = vmul.f32 %v7846_v50, %v1299_v60  ;;  %v1345_v63 = vmax.f32 %v7852_v59, 0.0  ;;  %v6267_v59 = vld [vmem:[%s7649_s20 + $0x20] sm:$0xff] }
  0xed   : > { %v1236_v17 = vadd.f32 %v7836_v44, %v1222_v10 }
  0xee   : > { %v7856_v0 = vadd.f32 %v1330_v62, %v1286_v61  ;;  %6619 = vmatprep.mubr.msk.f32.mxu1 %vm1366_vm1, %v1345_v63 }
  0xef   : > { %v1303_v1 = vpop.permute.xlu0 %1302 }
  0xf0   : > { %v1346_v4 = vmax.f32 %v7856_v0, 0.0  ;;  %v1255_v5 = vpop.permute.xlu1 %1254  ;;  %v1331_v13 = vmul.f32 %v7846_v50, %v1303_v1 }
  0xf1   : > { %v1280_v18 = vmul.f32 %v7840_v45, %v1255_v5 }
  0xf2   : > { %6620 = vmatmul.mubr.msk.f32.vlgmr.msra.gmra.mrb[0].mxu1 %vm1366_vm1, %v1346_v4 }
  0xf3   : > { %v1311_v6 = vpop.permute.xlu0 %1310  ;;  %v1288_v28 = vadd.f32 %v1280_v18, %v1236_v17  ;;  %v6183_v18 = vld [vmem:[%s7604_s29] ss:$0 sm:$0xff] }
  0xf4   : > { %v1333_v22 = vmul.f32 %v7846_v50, %v1311_v6 }
  0xf5   : > { %v1198_v9 = vpop.permute.xlu1 %1197 }
  0xf6   : > { %v1223_v14 = vmul.f32 %v7830_v38, %v1198_v9 }
  0xf8   : > { %v1251_v11 = vpop.permute.xlu0 %1250  ;;  %v1237_v23 = vadd.f32 %v7836_v44, %v1223_v14 }
  0xf9   : > { %v1279_v15 = vmul.f32 %v7840_v45, %v1251_v11  ;;  %v1203_v16 = vpop.permute.xlu1 %1202 }
  0xfa   : > { %v1224_v47 = vmul.f32 %v7830_v38, %v1203_v16 }
  0xfb   : > { %v1287_v19 = vadd.f32 %v1279_v15, %v1235_v12 }
  0xfc   : > { %v1259_v20 = vpop.permute.xlu0 %1258  ;;  %v1238_v51 = vadd.f32 %v7836_v44, %v1224_v47  ;;  %v1160_v47 = vsub.s32 5, %v7824_v35 }
  0xfd   : > { %v7875_v24 = vadd.f32 %v1331_v13, %v1287_v19  ;;  %v1281_v26 = vmul.f32 %v7840_v45, %v1259_v20  ;;  %v1095_v13 = vld [vmem:[%s7599_s25] sm:$0x3f]  ;;  %v1150_v20 = vsub.s32 4, %v7824_v35 }
  0xfe   : > { %v1307_v27 = vpop.permute.xlu1 %1306  ;;  %v1105_v15 = vrot.slane %v1095_v13, %v1104_v36  ;;  %v1140_v36 = vsub.s32 3, %v7824_v35  ;;  %v1591_v35 = vld [vmem:[%s7649_s20 + $0x10] sm:$0xff] }
  0xff   : > { %v1347_v29 = vmax.f32 %v7875_v24, 0.0  ;;  %v1289_v31 = vadd.f32 %v1281_v26, %v1237_v23  ;;  %v1332_v32 = vmul.f32 %v7846_v50, %v1307_v27  ;;  %v6270_v24 = vld [vmem:[%s7649_s20 + $0x38] sm:$0xff] }
 0x100   : > { %v1267_v54 = vpop.permute.xlu0 %1266 }
 0x101   : > { %v7880_v34 = vadd.f32 %v1333_v22, %v1289_v31  ;;  %v7882_v37 = vadd.f32 %v1332_v32, %v1288_v28  ;;  %6622 = vmatprep.mubr.msk.f32.mxu1 %vm1366_vm1, %v1347_v29  ;;  %v1283_v8 = vmul.f32 %v7840_v45, %v1267_v54  ;;  %v1131_v22 = vrot.slane %v1095_v13, %v1130_v43 }
 0x102   : > { %v1141_v31 = vrot.slane %v1095_v13, %v1140_v36  ;;  %v1151_v32 = vrot.slane %v1095_v13, %v1150_v20 }
 0x103   : > { %v1349_v40 = vmax.f32 %v7880_v34, 0.0  ;;  %v1348_v41 = vmax.f32 %v7882_v37, 0.0  ;;  %v1263_v42 = vpop.permute.xlu1 %1262  ;;  %v6281_v34 = vld [vmem:[%s8721_s4 + $0x20] sm:$0xff]  ;;  %v6282_v37 = vld [vmem:[%s8721_s4 + $0x28] sm:$0xff] }
 0x104   : > { %v1282_v49 = vmul.f32 %v7840_v45, %v1263_v42 }
 0x105   : > { %6623 = vmatmul.mubr.msk.f32.gmra.mrb[2].mxu1 %vm1366_vm1, %v1348_v41  ;;  %v1323_v62 = vpop.permute.xlu0 %1322 }
 0x106   : > { %6625 = vmatprep.mubr.msk.f32.mxu1 %vm1366_vm1, %v1349_v40  ;;  %v1290_v53 = vadd.f32 %v1282_v49, %v1238_v51  ;;  %v1336_v9 = vmul.f32 %v7846_v50, %v1323_v62  ;;  %v1592_v62 = vld [vmem:[%s7649_s20 + $0x18] sm:$0xff] }
 0x108   : > { %v1208_v46 = vpop.permute.xlu1 %1207 }
 0x109   : > { %v1225_v57 = vmul.f32 %v7830_v38, %v1208_v46  ;;  %v1126_v23 = vpop.permute.xlu0 %1125 }
 0x10a   : > { %v1132_v42 = vmul.f32 %v1131_v22, %v1126_v23 }
 0x10b   : > { %v1239_v6 = vadd.f32 %v7836_v44, %v1225_v57 }
 0x10c   : > { %v1213_v48 = vpop.permute.xlu1 %1212 }
 0x10d   : > { %v1226_v56 = vmul.f32 %v7830_v38, %v1213_v48  ;;  %v1291_v11 = vadd.f32 %v1283_v8, %v1239_v6  ;;  %v1738_v6 = vld [vmem:[%s8721_s4 + $0x8] sm:$0xff] }
 0x10f   : > { %v1240_v1 = vadd.f32 %v7836_v44, %v1226_v56 }
 0x111   : > { %v1315_v52 = vpop.permute.xlu1 %1314 }
 0x112   : > { %v1334_v55 = vmul.f32 %v7846_v50, %v1315_v52 }
 0x114   : > { %v7901_v58 = vadd.f32 %v1334_v55, %v1290_v53  ;;  %v1161_v53 = vrot.slane %v1095_v13, %v1160_v47 }
 0x116   : > { %v1350_v60 = vmax.f32 %v7901_v58, 0.0  ;;  %v1271_v61 = vpop.permute.xlu1 %1270 }
 0x117   : > { %v1284_v5 = vmul.f32 %v7840_v45, %v1271_v61 }
 0x118   : > { %6626 = vmatmul.mubr.msk.f32.gmra.mrb[4].mxu1 %vm1366_vm1, %v1350_v60 }
 0x119   : > { %v1292_v38 = vadd.f32 %v1284_v5, %v1240_v1  ;;  %v7125_v1 = vpack.c.bf16 %v1592_v62, %v1591_v35  ;;  %v1737_v5 = vld [vmem:[%s8721_s4] sm:$0xff] }
 0x11a   : > { %v7129_v8 = vpack.c.bf16 %v1738_v6, %v1737_v5 }
 0x11b   : > { %v1319_v10 = vpop.permute.xlu1 %1318  ;;  %v7914_v14 = vadd.f32 %v1336_v9, %v1292_v38  ;;  %v6188_v38 = vld [vmem:[%s7644_s12] ss:$0 sm:$0xff] }
 0x11c   : > { %v1335_v12 = vmul.f32 %v7846_v50, %v1319_v10  ;;  %v1121_v50 = vrot.slane %v1095_v13, %v1120_v39  ;;  %v1146_v39 = vpop.permute.xlu0 %1145  ;;  %7130 = vmatprep.subr.bf16.mxu1 %v7129_v8 }
 0x11d   : > { %v1352_v17 = vmax.f32 %v7914_v14, 0.0  ;;  %v1152_v52 = vmul.f32 %v1151_v32, %v1146_v39  ;;  %7132 = vmatpush3.bf16.msra.mxu1 %v7129_v8 }
 0x11e   : > { %v7918_v44 = vadd.f32 %v1335_v12, %v1291_v11 }
 0x120   : > { %v1351_v45 = vmax.f32 %v7918_v44, 0.0  ;;  %v1100_v16 = vpop.permute.xlu1 %1099 }
 0x121   : > { %v1106_v19 = vmul.f32 %v1105_v15, %v1100_v16 }
 0x122   : > { %6628 = vmatprep.mubr.msk.f32.mxu1 %vm1366_vm1, %v1351_v45 }
 0x123   : > { %6629 = vmatmul.mubr.msk.f32.gmra.mrb[6].mxu1 %vm1366_vm1, %v1352_v17  ;;  %v1113_v26 = vadd.f32 %v6183_v18, %v1106_v19 }
 0x125   : > { %v1116_v27 = vpop.permute.xlu1 %1115 }
 0x126   : > { %v1122_v28 = vmul.f32 %v1121_v50, %v1116_v27 }
 0x128   : > { %v1123_v46 = vadd.f32 %v1122_v28, %v1113_v26 }
 0x12a   : > { %v1133_v48 = vadd.f32 %v1132_v42, %v1123_v46  ;;  %v1136_v49 = vpop.permute.xlu1 %1135 }
 0x12b   : > { %v1142_v51 = vmul.f32 %v1141_v31, %v1136_v49 }
 0x12d   : > { %v1143_v43 = vadd.f32 %v1142_v51, %v1133_v48  ;;  %v1739_v51 = vld [vmem:[%s8721_s4 + $0x10] sm:$0xff] }
 0x12f   : > { %v1153_v54 = vadd.f32 %v1152_v52, %v1143_v43  ;;  %v1156_v55 = vpop.permute.xlu1 %1155  ;;  %v1740_v52 = vld [vmem:[%s8721_s4 + $0x18] sm:$0xff]  ;;  %v6197_v43 = vld [vmem:[%s7654_s27] ss:$0 sm:$0xff] }
 0x130   : > { %v1162_v56 = vmul.f32 %v1161_v53, %v1156_v55  ;;  %v7133_v53 = vpack.c.bf16 %v1740_v52, %v1739_v51 }
 0x132   : > { %v7936_v57 = vadd.f32 %v1162_v56, %v1153_v54  ;;  %7134 = vmatprep.subr.bf16.mxu1 %v7133_v53 }
 0x133   : > { %7136 = vmatpush3.bf16.msra.mxu1 %v7133_v53 }
 0x134   : > { %v1164_v61 = vmax.f32 %v7936_v57, 0.0  ;;  %7137 = vmatprep.subr.bf16.mxu1 %v7550_v25 }
 0x136   : > { %6609 = vmatmul.mubr.msk.f32.vlgmr.msra.gmra.mrb[0].mxu0 %vm1366_vm1, %v1164_v61 }
 0x137   : > { %7124 = vmatpush3.bf16.msra.mxu0 %v7821_v33 }
 0x138   : > { %7126 = vmatprep.subr.bf16.mxu0 %v7125_v1 }
 0x13b   : > { %7128 = vmatpush3.bf16.msra.mxu0 %v7125_v1 }
 0x13c   : > { %6671 = vmatprep.subr.mxu0 %v7553_v30 }
 0x1c5   : > { %v6621_v9 = vpop.f32.mrb[0].mxu1 }
 0x1c6   : > { %v1548_v10 = vadd.f32 %v6621_v9, %v6188_v38  ;;  %v1542_v11 = vpop.f32.mrb[1].mxu1 }
 0x1c7   : > { %v1543_v12 = vadd.f32 %v6188_v38, %v1542_v11 }
 0x1c8   : > { %v1582_v15 = vmax.f32 %v1548_v10, 0.0 }
 0x1c9   : > { %v1581_v13 = vmax.f32 %v1543_v12, 0.0 }
 0x1cb   : > { %6639 = vmatprep.mubr.msk.f32.mxu0 %vm1366_vm1, %v1581_v13 }
 0x1cc   : > { %6640 = vmatmul.mubr.msk.f32.vlgmr.msra.gmra.mrb[2].mxu0 %vm1366_vm1, %v1582_v15 }
 0x1d8   : > { %v6624_v33 = vpop.f32.mrb[2].mxu1 }
 0x1d9   : > { %v1558_v16 = vadd.f32 %v6624_v33, %v6188_v38  ;;  %v1552_v18 = vpop.f32.mrb[3].mxu1 }
 0x1da   : > { %v1553_v19 = vadd.f32 %v6188_v38, %v1552_v18 }
 0x1db   : > { %v1584_v36 = vmax.f32 %v1558_v16, 0.0 }
 0x1dc   : > { %v1583_v50 = vmax.f32 %v1553_v19, 0.0 }
 0x1de   : > { %6642 = vmatprep.mubr.msk.f32.mxu0 %vm1366_vm1, %v1583_v50 }
 0x1df   : > { %6643 = vmatmul.mubr.msk.f32.gmra.mrb[4].mxu0 %vm1366_vm1, %v1584_v36 }
 0x1eb   : > { %v6627_v20 = vpop.f32.mrb[4].mxu1 }
 0x1ec   : > { %v1568_v22 = vadd.f32 %v6627_v20, %v6188_v38  ;;  %v1562_v23 = vpop.f32.mrb[5].mxu1 }
 0x1ed   : > { %v1563_v26 = vadd.f32 %v6188_v38, %v1562_v23  ;;  %v6206_v23 = vld [vmem:[%s8725_s28] ss:$0 sm:$0xff] }
 0x1ee   : > { %v1586_v28 = vmax.f32 %v1568_v22, 0.0 }
 0x1ef   : > { %v1585_v27 = vmax.f32 %v1563_v26, 0.0 }
 0x1f1   : > { %6645 = vmatprep.mubr.msk.f32.mxu0 %vm1366_vm1, %v1585_v27 }
 0x1f2   : > { %6646 = vmatmul.mubr.msk.f32.gmra.mrb[6].mxu0 %vm1366_vm1, %v1586_v28 }
 0x1f6   : > { %v6630_v31 = vpop.f32.mrb[6].mxu1 }
 0x1f7   : > { %v1578_v32 = vadd.f32 %v6630_v31, %v6188_v38  ;;  %v1572_v42 = vpop.f32.mrb[7].mxu1 }
 0x1f8   : > { %v1573_v46 = vadd.f32 %v6188_v38, %v1572_v42 }
 0x1f9   : > { %v1588_v47 = vmax.f32 %v1578_v32, 0.0 }
 0x1fa   : > { %v1587_v39 = vmax.f32 %v1573_v46, 0.0 }
 0x1fc   : > { %6648 = vmatprep.mubr.msk.f32.mxu0 %vm1366_vm1, %v1587_v39 }
 0x1fd   : > { %6649 = vmatmul.mubr.msk.f32.gmra.mrb[8].mxu0 %vm1366_vm1, %v1588_v47 }
 0x1fe   : > { %6673 = vmatprep.mubr.msk.f32.mxu0 %vm7552_vm0, %v7553_v30 }
 0x209   : > { %v7959_v48 = vpop.f32.mrb[0].mxu0 }
 0x20a   : > { %v6610_v49 = vpop.f32.mrb[1].mxu0 }
 0x29f   : > { %v6641_v54 = vpop.f32.mrb[2].mxu0 }
 0x2a0   : > { %v1696_v55 = vadd.f32 %v6641_v54, %v6197_v43  ;;  %v1690_v56 = vpop.f32.mrb[3].mxu0 }
 0x2a1   : > { %v1691_v35 = vadd.f32 %v6197_v43, %v1690_v56  ;;  %v6186_v56 = vld [vmem:[%s8726_s2] ss:$0 sm:$0xff] }
 0x2a2   : > { %v1730_v1 = vmax.f32 %v1696_v55, 0.0 }
 0x2a3   : > { %v1729_v62 = vmax.f32 %v1691_v35, 0.0  ;;  %v8002_v35 = vadd.f32 %v6186_v56, %v7959_v48 }
 0x2a5   : > { %6659 = vmatprep.mubr.msk.f32.mxu1 %vm1366_vm1, %v1729_v62  ;;  %v8009_v62 = vld [vmem:[%s8727_s10 + $0x8] sm:$0xff]  ;;  %v8048_v56 = vmul.f32 0.35355338, %v8002_v35 }
 0x2a6   : > { %6660 = vmatmul.mubr.msk.f32.vlgmr.msra.gmra.mrb[8].mxu1 %vm1366_vm1, %v1730_v1  ;;  %v8012_v1 = vld [vmem:[%s8727_s10] sm:$0xff] }
 0x2b2   : > { %v6644_v5 = vpop.f32.mrb[4].mxu0 }
 0x2b3   : > { %v1706_v6 = vadd.f32 %v6644_v5, %v6197_v43  ;;  %v1700_v8 = vpop.f32.mrb[5].mxu0 }
 0x2b4   : > { %v1701_v38 = vadd.f32 %v6197_v43, %v1700_v8 }
 0x2b5   : > { %v1732_v10 = vmax.f32 %v1706_v6, 0.0 }
 0x2b6   : > { %v1731_v9 = vmax.f32 %v1701_v38, 0.0 }
 0x2b8   : > { %6662 = vmatprep.mubr.msk.f32.mxu1 %vm1366_vm1, %v1731_v9 }
 0x2b9   : > { %6663 = vmatmul.mubr.msk.f32.gmra.mrb[10].mxu1 %vm1366_vm1, %v1732_v10  ;;  %v8018_v10 = vld [vmem:[%s8727_s10 + $0x18] sm:$0xff] }
 0x2c5   : > { %v6647_v11 = vpop.f32.mrb[6].mxu0 }
 0x2c6   : > { %v1716_v12 = vadd.f32 %v6647_v11, %v6197_v43  ;;  %v1710_v13 = vpop.f32.mrb[7].mxu0  ;;  %v8021_v11 = vld [vmem:[%s8727_s10 + $0x10] sm:$0xff] }
 0x2c7   : > { %v1711_v15 = vadd.f32 %v6197_v43, %v1710_v13 }
 0x2c8   : > { %v1734_v16 = vmax.f32 %v1716_v12, 0.0 }
 0x2c9   : > { %v1733_v33 = vmax.f32 %v1711_v15, 0.0 }
 0x2cb   : > { %6665 = vmatprep.mubr.msk.f32.mxu1 %vm1366_vm1, %v1733_v33 }
 0x2cc   : > { %6666 = vmatmul.mubr.msk.f32.gmra.mrb[12].mxu1 %vm1366_vm1, %v1734_v16  ;;  %v8027_v16 = vld [vmem:[%s8727_s10 + $0x28] sm:$0xff] }
 0x2d0   : > { %v6650_v18 = vpop.f32.mrb[8].mxu0 }
 0x2d1   : > { %v1726_v19 = vadd.f32 %v6650_v18, %v6197_v43  ;;  %v1720_v50 = vpop.f32.mrb[9].mxu0  ;;  %v8030_v18 = vld [vmem:[%s8727_s10 + $0x20] sm:$0xff] }
 0x2d2   : > { %v1721_v36 = vadd.f32 %v6197_v43, %v1720_v50 }
 0x2d3   : > { %v1736_v22 = vmax.f32 %v1726_v19, 0.0 }
 0x2d4   : > { %v1735_v20 = vmax.f32 %v1721_v36, 0.0 }
 0x2d6   : > { %6668 = vmatprep.mubr.msk.f32.mxu1 %vm1366_vm1, %v1735_v20 }
 0x2d7   : > { %6669 = vmatmul.mubr.msk.f32.gmra.mrb[14].mxu1 %vm1366_vm1, %v1736_v22 }
 0x2d8   : > { %6692 = vmatprep.mubr.msk.f32.mxu1 %vm7552_vm0, %v7553_v30 }
 0x379   : > { %v6661_v26 = vpop.f32.mrb[8].mxu1 }
 0x37a   : > { %v7976_v27 = vadd.f32 %v6661_v26, %v6206_v23  ;;  %v1838_v28 = vpop.f32.mrb[9].mxu1  ;;  %v8039_v26 = vld [vmem:[%s8727_s10 + $0x30] sm:$0xff] }
 0x37b   : > { %v7978_v31 = vadd.f32 %v6206_v23, %v1838_v28 }
 0x37c   : > { %1968 = vperm.xlu0 %7410, %v7976_v27  }
 0x37d   : > { %1963 = vperm.xlu1 %7411, %v7978_v31  }
 0x38c   : > { %v6664_v32 = vpop.f32.mrb[10].mxu1 }
 0x38d   : > { %v7982_v42 = vadd.f32 %v6664_v32, %v6206_v23  ;;  %v1848_v46 = vpop.f32.mrb[11].mxu1 }
 0x38e   : > { %v7985_v39 = vadd.f32 %v6206_v23, %v1848_v46 }
 0x38f   : > { %1978 = vperm.xlu1 %7411, %v7982_v42  }
 0x393   : > { %1973 = vperm.xlu1 %7411, %v7985_v39  }
 0x39f   : > { %v6667_v47 = vpop.f32.mrb[12].mxu1 }
 0x3a0   : > { %v7988_v49 = vadd.f32 %v6667_v47, %v6206_v23  ;;  %v1858_v51 = vpop.f32.mrb[13].mxu1 }
 0x3a1   : > { %v7990_v52 = vadd.f32 %v6206_v23, %v1858_v51 }
 0x3a2   : > { %1988 = vperm.xlu1 %7411, %v7988_v49  }
 0x3a3   : > { %1983 = vperm.xlu0 %7410, %v7990_v52  }
 0x3aa   : > { %v6670_v53 = vpop.f32.mrb[14].mxu1 }
 0x3ab   : > { %v7994_v43 = vadd.f32 %v6670_v53, %v6206_v23  ;;  %v1868_v54 = vpop.f32.mrb[15].mxu1 }
 0x3ac   : > { %v7996_v55 = vadd.f32 %v6206_v23, %v1868_v54  ;;  %v8036_v23 = vld [vmem:[%s8727_s10 + $0x38] sm:$0xff]  ;;  %v8045_v54 = vld [vmem:[%s8728_s11] sm:$0xff] }
 0x3ad   : > { %1998 = vperm.xlu1 %7411, %v7994_v43  }
 0x3ae   : > { %1993 = vperm.xlu0 %7410, %v7996_v55  }
 0x3b1   : > { %7412 = vset.pattern.permute.xlu1 %v7545_v2 }
 0x3b2   : > { %1883 = vrot.lane.b32.xlu0 %v8002_v35, %s8695_s7  ;;  %s8737_s7 = sld [smem:[#allocation22_spill]] }
 0x3b3   : > { %7413 = vset.pattern.permute.xlu0 %v7545_v2 }
 0x3fb   : > { %v1969_v5 = vpop.permute.xlu0 %1968 }
 0x3fc   : > { %v2002_v6 = vmul.f32 %v1969_v5, %v8009_v62  ;;  %v1964_v48 = vpop.permute.xlu1 %1963  ;;  %v8060_v5 = vstv %s1353_s0  ;;  %s8691_s0 = smov 56  }
 0x3fd   : > { %v2001_v8 = vmul.f32 %v1964_v48, %v8012_v1 }
 0x3ff   : > { %v7138_v38 = vpack.c.bf16 %v2002_v6, %v2001_v8  ;;  %v8062_v6 = vstv %s6185_s19  ;;  %s8685_s19 = smov 112  }
 0x401   : > { %7139 = vmatpush3.bf16.msra.mxu1 %v7138_v38 }
 0x402   : > { %7140 = vmatprep.subr.bf16.mxu1 %v7550_v25 }
 0x40e   : > { %v1979_v9 = vpop.permute.xlu1 %1978 }
 0x40f   : > { %v2004_v13 = vmul.f32 %v1979_v9, %v8018_v10 }
 0x412   : > { %v1974_v12 = vpop.permute.xlu1 %1973 }
 0x413   : > { %v2003_v15 = vmul.f32 %v1974_v12, %v8021_v11 }
 0x415   : > { %v7141_v33 = vpack.c.bf16 %v2004_v13, %v2003_v15 }
 0x417   : > { %7142 = vmatpush3.bf16.msra.mxu1 %v7141_v33 }
 0x418   : > { %7143 = vmatprep.subr.bf16.mxu1 %v7550_v25 }
 0x421   : > { %v1989_v19 = vpop.permute.xlu1 %1988 }
 0x422   : > { %v2006_v50 = vmul.f32 %v1989_v19, %v8027_v16  ;;  %v1984_v36 = vpop.permute.xlu0 %1983 }
 0x423   : > { %v2005_v20 = vmul.f32 %v1984_v36, %v8030_v18 }
 0x425   : > { %v7144_v22 = vpack.c.bf16 %v2006_v50, %v2005_v20 }
 0x427   : > { %7145 = vmatpush3.bf16.msra.mxu1 %v7144_v22 }
 0x428   : > { %7146 = vmatprep.subr.bf16.mxu1 %v7550_v25 }
 0x42c   : > { %v1999_v28 = vpop.permute.xlu1 %1998 }
 0x42d   : > { %v2008_v32 = vmul.f32 %v1999_v28, %v8036_v23  ;;  %v1994_v46 = vpop.permute.xlu0 %1993  ;;  %v1877_v28 = vld [vmem:[%s8729_s18] sm:$0xff] }
 0x42e   : > { %v2007_v47 = vmul.f32 %v1994_v46, %v8039_v26 }
 0x430   : > { %v7147_v51 = vpack.c.bf16 %v2008_v32, %v2007_v47 }
 0x431   : > { %v1884_v53 = vpop.permute.xlu0 %1883 }
 0x432   : > { %6672 = vmatpush3.xpose.msk.msra.mxu0 %vm1885_vm2, %v1884_v53  ;;  %7148 = vmatpush3.bf16.msra.mxu1 %v7147_v51 }
 0x433   : > { %6695 = vmatprep.subr.mxu1 %v7553_v30  ;;  %6700 = vmatprep.subr.mxu0 %v7553_v30 }
 0x435   : > { %6674 = vmatmul.mubr.msk.f32.vlgmr.msra.gmra.mrb[10].mxu0 %vm1885_vm2, %v8048_v56  ;;  %6693 = vmatmul.mubr.msk.f32.vlgmr.msra.gmra.mrb[16].mxu1 %vm2009_vm3, %v8045_v54 }
 0x436   : > { %6697 = vmatprep.mubr.msk.f32.mxu1 %vm7552_vm0, %v7553_v30  ;;  %6702 = vmatprep.mubr.msk.f32.mxu0 %vm7552_vm0, %v7553_v30 }
 0x437   : > { %6701 = vmatpush3.msra.mxu0 %v1877_v28 }
 0x438   : > { %6705 = vmatprep.subr.mxu0 %v7553_v30 }
 0x508   : > { %v1957_v48 = vpop.f32.mrb[10].mxu0  ;;  %v2079_v8 = vpop.f32.mrb[16].mxu1 }
 0x509   : > { %v2084_v38 = vmul.f32 %v8060_v5, %v1957_v48  ;;  %v2086_v9 = vmul.f32 %v8062_v6, %v2079_v8  ;;  %v6675_v12 = vpop.f32.mrb[11].mxu0  ;;  %v6694_v13 = vpop.f32.mrb[17].mxu1 }
 0x50b   : > { %v2087_v15 = vadd.f32 %v2086_v9, %v2084_v38 }
 0x50d   : > { %v2088_v33 = vsel %vm1885_vm2, %v2087_v15, -inf }
 0x50e   : > { %2089 = vmax.xlane.f32.xlu1 %v2088_v33 }
 0x51f   : > { %2334 = vperm.xlu1 %7412, %v7978_v31  }
 0x523   : > { %2338 = vperm.xlu1 %7412, %v7976_v27  }
 0x527   : > { %2346 = vperm.xlu1 %7412, %v7982_v42  }
 0x52b   : > { %2350 = vperm.xlu1 %7412, %v7990_v52  }
 0x52f   : > { %2358 = vperm.xlu1 %7412, %v7996_v55  }
 0x533   : > { %2257 = vrot.lane.b32.xlu1 %v8002_v35, %s8693_s30  ;;  %s8735_s30 = sld [smem:[#allocation17_spill]] }
 0x534   : > { %7414 = vset.pattern.permute.xlu1 %v7547_v7 }
 0x59b   : > { %v2090_v19 = vpop.xlane.xlu1 %2089 }
 0x59c   : > { %v2091_v50 = vsub.f32 %v2087_v15, %v2090_v19 }
 0x59e   : > { %v2092_v36 = vmul.f32 1.442695, %v2091_v50 }
 0x59f   : > { %v2335_v32 = vpop.permute.xlu1 %2334 }
 0x5a0   : > { %7426 = vpow2.f32 %v2092_v36  ;;  %v2365_v38 = vmul.f32 %v2335_v32, %v8012_v1 }
 0x5a3   : > { %v2339_v46 = vpop.permute.xlu1 %2338 }
 0x5a4   : > { %v2366_v48 = vmul.f32 %v2339_v46, %v8009_v62 }
 0x5a6   : > { %v7150_v15 = vpack.c.bf16 %v2366_v48, %v2365_v38 }
 0x5a7   : > { %v2347_v53 = vpop.permute.xlu1 %2346 }
 0x5a8   : > { %v2368_v33 = vmul.f32 %v2347_v53, %v8018_v10 }
 0x5aa   : > { %v7427_v20 = vpop.eup %7426 }
 0x5ab   : > { %v2094_v22 = vsel %vm1885_vm2, %v7427_v20, 0.0  ;;  %v2351_v9 = vpop.permute.xlu1 %2350 }
 0x5ac   : > { %2095 = vadd.xlane.f32.xlu0 %v2094_v22  ;;  %v2369_v22 = vmul.f32 %v2351_v9, %v8030_v18 }
 0x5af   : > { %v2359_v28 = vpop.permute.xlu1 %2358 }
 0x5c2   : > { %2099 = vrot.lane.b32.xlu0 %v8002_v35, %s8694_s23  ;;  %s8736_s23 = sld [smem:[#allocation19_spill]] }
 0x5c6   : > { %2342 = vperm.xlu0 %7413, %v7985_v39  }
 0x5ca   : > { %2354 = vperm.xlu0 %7413, %v7988_v49  }
 0x5ce   : > { %2362 = vperm.xlu0 %7413, %v7994_v43  }
 0x5d2   : > { %2255 = vrot.lane.b32.xlu0 %v8048_v56, %s8692_s22  ;;  %s8734_s22 = sld [smem:[#allocation18_spill]] }
 0x5d3   : > { %7415 = vset.pattern.permute.xlu0 %v7547_v7 }
 0x639   : > { %v2096_v47 = vpop.xlane.xlu0 %2095 }
 0x63a   : > { %7428 = vrcp.f32 %v2096_v47  ;;  %v2371_v47 = vmul.f32 %v2359_v28, %v8039_v26 }
 0x63d   : > { %v2100_v51 = vpop.permute.xlu0 %2099 }
 0x63e   : > { %6696 = vmatpush3.msra.mxu1 %v2100_v51 }
 0x63f   : > { %7149 = vmatprep.subr.bf16.mxu1 %v7550_v25 }
 0x644   : > { %v7429_v8 = vpop.eup %7428 }
 0x645   : > { %v2098_v12 = vmul.f32 %v7429_v8, %v7427_v20  ;;  %v2343_v13 = vpop.permute.xlu0 %2342  ;;  %v2258_v8 = vpop.permute.xlu1 %2257 }
 0x646   : > { %v2367_v19 = vmul.f32 %v2343_v13, %v8021_v11 }
 0x647   : > { %6698 = vmatmul.mubr.msk.f32.vlgmr.msra.gmra.mrb[18].mxu1 %vm1885_vm2, %v2098_v12 }
 0x648   : > { %v7153_v50 = vpack.c.bf16 %v2368_v33, %v2367_v19  ;;  %7151 = vmatpush3.bf16.msra.mxu1 %v7150_v15  ;;  %6726 = vmatprep.mubr.msk.f32.mxu1 %vm7552_vm0, %v7553_v30 }
 0x649   : > { %v2355_v36 = vpop.permute.xlu0 %2354  ;;  %7152 = vmatprep.subr.bf16.mxu1 %v7550_v25 }
 0x64a   : > { %v2370_v20 = vmul.f32 %v2355_v36, %v8027_v16 }
 0x64c   : > { %v7156_v32 = vpack.c.bf16 %v2370_v20, %v2369_v22  ;;  %7154 = vmatpush3.bf16.msra.mxu1 %v7153_v50 }
 0x64d   : > { %v2363_v46 = vpop.permute.xlu0 %2362  ;;  %7155 = vmatprep.subr.bf16.mxu1 %v7550_v25 }
 0x64e   : > { %v2372_v51 = vmul.f32 %v2363_v46, %v8036_v23 }
 0x650   : > { %v7159_v53 = vpack.c.bf16 %v2372_v51, %v2371_v47  ;;  %7157 = vmatpush3.bf16.msra.mxu1 %v7156_v32 }
 0x651   : > { %7158 = vmatprep.subr.bf16.mxu1 %v7550_v25  ;;  %v2256_v9 = vpop.permute.xlu0 %2255 }
 0x654   : > { %7160 = vmatpush3.bf16.msra.mxu1 %v7159_v53 }
 0x655   : > { %6763 = vmatprep.subr.mxu1 %v7553_v30 }
 0x657   : > { %6727 = vmatmul.mubr.msk.f32.vlgmr.msra.gmra.mrb[20].mxu1 %vm2009_vm3, %v8045_v54 }
 0x658   : > { %6765 = vmatprep.mubr.msk.f32.mxu1 %vm7552_vm0, %v7553_v30 }
 0x71a   : > { %v2171_v48 = vpop.f32.mrb[18].mxu1 }
 0x71b   : > { %v6699_v38 = vpop.f32.mrb[19].mxu1  ;;  %6703 = vmatmul.mubr.msk.f32.vlgmr.msra.gmra.mrb[12].mxu0 %vm1885_vm2, %v2171_v48 }
 0x71c   : > { %6706 = vmatpush3.xpose.msk.msra.mxu0 %vm1885_vm2, %v2258_v8  ;;  %6707 = vmatprep.mubr.msk.f32.mxu0 %vm7552_vm0, %v7553_v30 }
 0x71d   : > { %6729 = vmatprep.subr.mxu0 %v7553_v30 }
 0x71f   : > { %6708 = vmatmul.mubr.msk.f32.vlgmr.msra.gmra.mrb[14].mxu0 %vm1885_vm2, %v2256_v9 }
 0x720   : > { %6731 = vmatprep.mubr.msk.f32.mxu0 %vm7552_vm0, %v7553_v30 }
 0x72a   : > { %v2439_v12 = vpop.f32.mrb[20].mxu1 }
 0x72b   : > { %v6728_v13 = vpop.f32.mrb[21].mxu1  ;;  %v2444_v19 = vmul.f32 %v2439_v12, %v8062_v6  ;;  %v1878_v12 = vld [vmem:[%s8729_s18 + $0x8] sm:$0xff] }
 0x7ee   : > { %v8114_v15 = vpop.f32.mrb[12].mxu0 }
 0x7ef   : > { %v6704_v33 = vpop.f32.mrb[13].mxu0 }
 0x7f2   : > { %v2329_v50 = vpop.f32.mrb[14].mxu0 }
 0x7f3   : > { %v2443_v36 = vmul.f32 %v2329_v50, %v8060_v5  ;;  %v6709_v22 = vpop.f32.mrb[15].mxu0 }
 0x7f5   : > { %v2445_v20 = vadd.f32 %v2444_v19, %v2443_v36 }
 0x7f7   : > { %v2446_v28 = vsel %vm1885_vm2, %v2445_v20, -inf }
 0x7f8   : > { %2447 = vmax.xlane.f32.xlu1 %v2446_v28 }
 0x809   : > { %2686 = vperm.xlu1 %7414, %v7978_v31  }
 0x80d   : > { %2690 = vperm.xlu1 %7414, %v7976_v27  }
 0x811   : > { %2698 = vperm.xlu1 %7414, %v7982_v42  }
 0x815   : > { %2609 = vrot.lane.b32.xlu1 %v8002_v35, %s8686_s1  ;;  %s8689_s1 = smov 48  }
 0x819   : > { %2706 = vperm.xlu1 %7414, %v7988_v49  }
 0x81d   : > { %2710 = vperm.xlu1 %7414, %v7996_v55  }
 0x821   : > { %7416 = vset.pattern.permute.xlu1 %v7549_v21 }
 0x885   : > { %v2448_v32 = vpop.xlane.xlu1 %2447 }
 0x886   : > { %v2449_v46 = vsub.f32 %v2445_v20, %v2448_v32 }
 0x888   : > { %v2450_v47 = vmul.f32 1.442695, %v2449_v46 }
 0x889   : > { %v2687_v13 = vpop.permute.xlu1 %2686 }
 0x88a   : > { %7430 = vpow2.f32 %v2450_v47  ;;  %v2717_v46 = vmul.f32 %v2687_v13, %v8012_v1 }
 0x88d   : > { %v2691_v33 = vpop.permute.xlu1 %2690 }
 0x88e   : > { %v2718_v20 = vmul.f32 %v2691_v33, %v8009_v62 }
 0x891   : > { %v2699_v50 = vpop.permute.xlu1 %2698 }
 0x894   : > { %v7431_v51 = vpop.eup %7430 }
 0x895   : > { %v2452_v53 = vsel %vm1885_vm2, %v7431_v51, 0.0  ;;  %v2610_v22 = vpop.permute.xlu1 %2609 }
 0x896   : > { %2453 = vadd.xlane.f32.xlu0 %v2452_v53 }
 0x8ac   : > { %2457 = vrot.lane.b32.xlu0 %v8002_v35, %s8691_s0  ;;  %s8733_s0 = sld [smem:[#allocation21_spill]] }
 0x8b0   : > { %2694 = vperm.xlu0 %7415, %v7985_v39  }
 0x8b4   : > { %2702 = vperm.xlu0 %7415, %v7990_v52  }
 0x8b8   : > { %2607 = vrot.lane.b32.xlu0 %v8048_v56, %s8685_s19  ;;  %s8687_s19 = smov 72  }
 0x8bc   : > { %2714 = vperm.xlu0 %7415, %v7994_v43  }
 0x8c0   : > { %7417 = vset.pattern.permute.xlu0 %v7549_v21 }
 0x923   : > { %v2454_v48 = vpop.xlane.xlu0 %2453 }
 0x924   : > { %7432 = vrcp.f32 %v2454_v48  ;;  %v2707_v48 = vpop.permute.xlu1 %2706 }
 0x925   : > { %v2722_v13 = vmul.f32 %v2707_v48, %v8027_v16 }
 0x927   : > { %v2458_v8 = vpop.permute.xlu0 %2457 }
 0x928   : > { %6730 = vmatpush3.msra.mxu0 %v2458_v8  ;;  %v2720_v8 = vmul.f32 %v2699_v50, %v8018_v10  ;;  %v2711_v33 = vpop.permute.xlu1 %2710 }
 0x929   : > { %6734 = vmatprep.subr.mxu0 %v7553_v30 }
 0x92e   : > { %v7433_v38 = vpop.eup %7432 }
 0x92f   : > { %v2456_v9 = vmul.f32 %v7433_v38, %v7431_v51  ;;  %v2695_v19 = vpop.permute.xlu0 %2694  ;;  %v7162_v51 = vpack.c.bf16 %v2718_v20, %v2717_v46 }
 0x930   : > { %v2719_v53 = vmul.f32 %v2695_v19, %v8021_v11 }
 0x931   : > { %6732 = vmatmul.mubr.msk.f32.vlgmr.msra.gmra.mrb[16].mxu0 %vm1885_vm2, %v2456_v9 }
 0x932   : > { %6735 = vmatpush3.msra.mxu0 %v1878_v12  ;;  %6736 = vmatprep.mubr.msk.f32.mxu0 %vm7552_vm0, %v7553_v30  ;;  %v7165_v38 = vpack.c.bf16 %v2720_v8, %v2719_v53 }
 0x933   : > { %6739 = vmatprep.subr.mxu0 %v7553_v30  ;;  %v2703_v36 = vpop.permute.xlu0 %2702 }
 0x934   : > { %v2721_v9 = vmul.f32 %v2703_v36, %v8030_v18  ;;  %v6220_v36 = vld [vmem:[%s8730_s26] ss:$0 sm:$0xff] }
 0x936   : > { %v7168_v19 = vpack.c.bf16 %v2722_v13, %v2721_v9 }
 0x937   : > { %v2608_v47 = vpop.permute.xlu0 %2607 }
 0x93b   : > { %v2715_v12 = vpop.permute.xlu0 %2714 }
 0x93c   : > { %v2724_v50 = vmul.f32 %v2715_v12, %v8036_v23 }
 0xa04   : > { %v2529_v28 = vpop.f32.mrb[16].mxu0 }
 0xa05   : > { %v6733_v32 = vpop.f32.mrb[17].mxu0  ;;  %6737 = vmatmul.mubr.msk.f32.vlgmr.msra.gmra.mrb[18].mxu0 %vm1885_vm2, %v2529_v28  ;;  %v2254_v28 = vadd.f32 %v6220_v36, %v8114_v15 }
 0xa06   : > { %6740 = vmatpush3.xpose.msk.msra.mxu0 %vm1885_vm2, %v2610_v22  ;;  %6741 = vmatprep.mubr.msk.f32.mxu0 %vm7552_vm0, %v7553_v30  ;;  %v2723_v22 = vmul.f32 %v2711_v33, %v8039_v26 }
 0xa07   : > { %7161 = vmatprep.subr.bf16.mxu0 %v7550_v25 }
 0xa08   : > { %v7171_v20 = vpack.c.bf16 %v2724_v50, %v2723_v22  ;;  %v1879_v22 = vld [vmem:[%s8729_s18 + $0x10] sm:$0xff] }
 0xa09   : > { %6742 = vmatmul.mubr.msk.f32.vlgmr.msra.gmra.mrb[20].mxu0 %vm1885_vm2, %v2608_v47 }
 0xa0a   : > { %7163 = vmatpush3.bf16.msra.mxu0 %v7162_v51  ;;  %6760 = vmatprep.mubr.msk.f32.mxu0 %vm7552_vm0, %v7553_v30 }
 0xa0b   : > { %7164 = vmatprep.subr.bf16.mxu0 %v7550_v25 }
 0xa0e   : > { %7166 = vmatpush3.bf16.msra.mxu0 %v7165_v38 }
 0xa0f   : > { %7167 = vmatprep.subr.bf16.mxu0 %v7550_v25 }
 0xa12   : > { %7169 = vmatpush3.bf16.msra.mxu0 %v7168_v19 }
 0xa13   : > { %7170 = vmatprep.subr.bf16.mxu0 %v7550_v25 }
 0xa16   : > { %7172 = vmatpush3.bf16.msra.mxu0 %v7171_v20 }
 0xa17   : > { %6797 = vmatprep.subr.mxu0 %v7553_v30 }
 0xa19   : > { %6761 = vmatmul.mubr.msk.f32.vlgmr.msra.gmra.mrb[22].mxu0 %vm2009_vm3, %v8045_v54 }
 0xa1a   : > { %6799 = vmatprep.mubr.msk.f32.mxu0 %vm7552_vm0, %v7553_v30 }
 0xad8   : > { %v2602_v32 = vpop.f32.mrb[18].mxu0 }
 0xad9   : > { %v8168_v46 = vadd.f32 %v2602_v32, %v2254_v28  ;;  %v6738_v47 = vpop.f32.mrb[19].mxu0 }
 0xadc   : > { %v2681_v51 = vpop.f32.mrb[20].mxu0 }
 0xadd   : > { %v6743_v53 = vpop.f32.mrb[21].mxu0  ;;  %v2795_v8 = vmul.f32 %v2681_v51, %v8060_v5 }
 0xaec   : > { %v2791_v48 = vpop.f32.mrb[22].mxu0 }
 0xaed   : > { %v2796_v38 = vmul.f32 %v2791_v48, %v8062_v6  ;;  %v6762_v9 = vpop.f32.mrb[23].mxu0 }
 0xaef   : > { %v2797_v12 = vadd.f32 %v2796_v38, %v2795_v8 }
 0xaf1   : > { %v2798_v13 = vsel %vm1885_vm2, %v2797_v12, -inf }
 0xaf2   : > { %2799 = vmax.xlane.f32.xlu1 %v2798_v13 }
 0xb03   : > { %3038 = vperm.xlu1 %7416, %v7978_v31  }
 0xb07   : > { %3042 = vperm.xlu1 %7416, %v7976_v27  }
 0xb0b   : > { %3050 = vperm.xlu1 %7416, %v7982_v42  }
 0xb0f   : > { %2961 = vrot.lane.b32.xlu1 %v8002_v35, %s8687_s19  ;;  %s8688_s19 = smov 104  }
 0xb13   : > { %3058 = vperm.xlu1 %7416, %v7988_v49  }
 0xb17   : > { %3062 = vperm.xlu1 %7416, %v7996_v55  }
 0xb1b   : > { %7418 = vset.pattern.permute.xlu1 %v7546_v3 }
 0xb7f   : > { %v2800_v15 = vpop.xlane.xlu1 %2799 }
 0xb80   : > { %v2801_v33 = vsub.f32 %v2797_v12, %v2800_v15 }
 0xb82   : > { %v2802_v19 = vmul.f32 1.442695, %v2801_v33 }
 0xb84   : > { %7434 = vpow2.f32 %v2802_v19 }
 0xb8e   : > { %v7435_v50 = vpop.eup %7434 }
 0xb8f   : > { %v2804_v31 = vsel %vm1885_vm2, %v7435_v50, 0.0 }
 0xb90   : > { %2805 = vadd.xlane.f32.xlu0 %v2804_v31 }
 0xba6   : > { %2809 = vrot.lane.b32.xlu0 %v8002_v35, %s8689_s1  ;;  %s8731_s1 = sld [smem:[#allocation16_spill]] }
 0xbaa   : > { %3046 = vperm.xlu0 %7417, %v7985_v39   ;;  %v3039_v39 = vpop.permute.xlu1 %3038 }
 0xbab   : > { %v3069_v47 = vmul.f32 %v3039_v39, %v8012_v1 }
 0xbac   : > { %v3344_v57 = vld [vmem:[%s8731_s1 + $0x10] sm:$0xff] }
 0xbae   : > { %3054 = vperm.xlu0 %7417, %v7990_v52   ;;  %v3043_v52 = vpop.permute.xlu1 %3042 }
 0xbaf   : > { %v3070_v36 = vmul.f32 %v3043_v52, %v8009_v62 }
 0xbb1   : > { %v7174_v53 = vpack.c.bf16 %v3070_v36, %v3069_v47 }
 0xbb2   : > { %2959 = vrot.lane.b32.xlu0 %v8048_v56, %s8688_s19  ;;  %s8690_s19 = smov 40  }
 0xbb6   : > { %3066 = vperm.xlu0 %7417, %v7994_v43   ;;  %v3051_v43 = vpop.permute.xlu1 %3050 }
 0xbb7   : > { %v3072_v62 = vmul.f32 %v3051_v43, %v8018_v10 }
 0xbba   : > { %7419 = vset.pattern.permute.xlu0 %v7546_v3  ;;  %v2962_v20 = vpop.permute.xlu1 %2961 }
 0xbbe   : > { %v3059_v8 = vpop.permute.xlu1 %3058 }
 0xbbf   : > { %v3074_v12 = vmul.f32 %v3059_v8, %v8027_v16 }
 0xbc2   : > { %v3063_v13 = vpop.permute.xlu1 %3062 }
 0xbc3   : > { %v3075_v10 = vmul.f32 %v3063_v13, %v8039_v26 }
 0xc1d   : > { %v2806_v27 = vpop.xlane.xlu0 %2805 }
 0xc1e   : > { %7436 = vrcp.f32 %v2806_v27 }
 0xc21   : > { %v2810_v42 = vpop.permute.xlu0 %2809 }
 0xc22   : > { %6764 = vmatpush3.msra.mxu1 %v2810_v42 }
 0xc23   : > { %6768 = vmatprep.subr.mxu1 %v7553_v30 }
 0xc28   : > { %v7437_v49 = vpop.eup %7436 }
 0xc29   : > { %v2808_v55 = vmul.f32 %v7437_v49, %v7435_v50  ;;  %v3047_v3 = vpop.permute.xlu0 %3046 }
 0xc2a   : > { %v3071_v48 = vmul.f32 %v3047_v3, %v8021_v11 }
 0xc2b   : > { %6766 = vmatmul.mubr.msk.f32.vlgmr.msra.gmra.mrb[22].mxu1 %vm1885_vm2, %v2808_v55 }
 0xc2c   : > { %6769 = vmatpush3.msra.mxu1 %v1879_v22  ;;  %6770 = vmatprep.mubr.msk.f32.mxu1 %vm7552_vm0, %v7553_v30  ;;  %v7177_v1 = vpack.c.bf16 %v3072_v62, %v3071_v48 }
 0xc2d   : > { %6773 = vmatprep.subr.mxu1 %v7553_v30  ;;  %v3055_v56 = vpop.permute.xlu0 %3054 }
 0xc2e   : > { %v3073_v38 = vmul.f32 %v3055_v56, %v8030_v18  ;;  %v1880_v56 = vld [vmem:[%s8729_s18 + $0x18] sm:$0xff] }
 0xc30   : > { %v7180_v11 = vpack.c.bf16 %v3074_v12, %v3073_v38  ;;  %v3342_v38 = vld [vmem:[%s8731_s1] sm:$0xff] }
 0xc31   : > { %v2960_v51 = vpop.permute.xlu0 %2959 }
 0xc35   : > { %v3067_v9 = vpop.permute.xlu0 %3066 }
 0xc36   : > { %v3076_v15 = vmul.f32 %v3067_v9, %v8036_v23  ;;  %v3343_v9 = vld [vmem:[%s8731_s1 + $0x8] sm:$0xff] }
 0xc37   : > { %v7186_v12 = vpack.c.bf16 %v3343_v9, %v3342_v38 }
 0xc38   : > { %v7183_v33 = vpack.c.bf16 %v3076_v15, %v3075_v10 }
 0xcfe   : > { %v2881_v28 = vpop.f32.mrb[22].mxu1 }
 0xcff   : > { %v6767_v32 = vpop.f32.mrb[23].mxu1  ;;  %6771 = vmatmul.mubr.msk.f32.vlgmr.msra.gmra.mrb[24].mxu1 %vm1885_vm2, %v2881_v28 }
 0xd00   : > { %6774 = vmatpush3.xpose.msk.msra.mxu1 %vm1885_vm2, %v2962_v20  ;;  %6775 = vmatprep.mubr.msk.f32.mxu1 %vm7552_vm0, %v7553_v30 }
 0xd01   : > { %7173 = vmatprep.subr.bf16.mxu1 %v7550_v25 }
 0xd03   : > { %6776 = vmatmul.mubr.msk.f32.vlgmr.msra.gmra.mrb[26].mxu1 %vm1885_vm2, %v2960_v51 }
 0xd04   : > { %7175 = vmatpush3.bf16.msra.mxu1 %v7174_v53  ;;  %6794 = vmatprep.mubr.msk.f32.mxu1 %vm7552_vm0, %v7553_v30 }
 0xd05   : > { %7176 = vmatprep.subr.bf16.mxu1 %v7550_v25 }
 0xd08   : > { %7178 = vmatpush3.bf16.msra.mxu1 %v7177_v1 }
 0xd09   : > { %7179 = vmatprep.subr.bf16.mxu1 %v7550_v25 }
 0xd0c   : > { %7181 = vmatpush3.bf16.msra.mxu1 %v7180_v11 }
 0xd0d   : > { %7182 = vmatprep.subr.bf16.mxu1 %v7550_v25 }
 0xd10   : > { %7184 = vmatpush3.bf16.msra.mxu1 %v7183_v33 }
 0xd11   : > { %7191 = vmatprep.subr.bf16.mxu1 %v7550_v25 }
 0xd13   : > { %6795 = vmatmul.mubr.msk.f32.vlgmr.msra.gmra.mrb[28].mxu1 %vm2009_vm3, %v8045_v54 }
 0xd14   : > { %6834 = vmatprep.mubr.msk.f32.mxu1 %vm7552_vm0, %v7553_v30 }
 0xdd2   : > { %v2954_v16 = vpop.f32.mrb[24].mxu1 }
 0xdd3   : > { %v2958_v18 = vadd.f32 %v2954_v16, %v8168_v46  ;;  %v6772_v19 = vpop.f32.mrb[25].mxu1 }
 0xdd4   : > { %v6237_v19 = vld [vmem:[%s8733_s0] ss:$0 sm:$0xff] }
 0xdd6   : > { %v3033_v23 = vpop.f32.mrb[26].mxu1 }
 0xdd7   : > { %v6777_v50 = vpop.f32.mrb[27].mxu1  ;;  %v3147_v31 = vmul.f32 %v3033_v23, %v8060_v5 }
 0xde6   : > { %v3143_v26 = vpop.f32.mrb[28].mxu1 }
 0xde7   : > { %v3148_v27 = vmul.f32 %v3143_v26, %v8062_v6  ;;  %v6796_v42 = vpop.f32.mrb[29].mxu1  ;;  %v3453_v26 = vld [vmem:[%s8734_s22] sm:$0xff] }
 0xde8   : > { %v3455_v42 = vld [vmem:[%s8734_s22 + $0x10] sm:$0xff] }
 0xde9   : > { %v3149_v49 = vadd.f32 %v3148_v27, %v3147_v31  ;;  %v3454_v31 = vld [vmem:[%s8734_s22 + $0x8] sm:$0xff] }
 0xdea   : > { %v7192_v27 = vpack.c.bf16 %v3454_v31, %v3453_v26  ;;  %v6240_v26 = vld [vmem:[%s8736_s23] ss:$0 sm:$0xff] }
 0xdeb   : > { %v3150_v55 = vsel %vm1885_vm2, %v3149_v49, -inf }
 0xdec   : > { %3151 = vmax.xlane.f32.xlu1 %v3150_v55  ;;  %7193 = vmatpush3.bf16.msra.mxu1 %v7192_v27 }
 0xded   : > { %7194 = vmatprep.subr.bf16.mxu1 %v7550_v25 }
 0xe79   : > { %v3152_v54 = vpop.xlane.xlu1 %3151 }
 0xe7a   : > { %v3153_v22 = vsub.f32 %v3149_v49, %v3152_v54  ;;  %v3456_v49 = vld [vmem:[%s8734_s22 + $0x18] sm:$0xff]  ;;  %v3457_v54 = vld [vmem:[%s8734_s22 + $0x20] sm:$0xff] }
 0xe7b   : > { %v7195_v55 = vpack.c.bf16 %v3456_v49, %v3455_v42 }
 0xe7c   : > { %v3154_v39 = vmul.f32 1.442695, %v3153_v22  ;;  %v3458_v22 = vld [vmem:[%s8734_s22 + $0x28] sm:$0xff] }
 0xe7d   : > { %7196 = vmatpush3.bf16.msra.mxu1 %v7195_v55 }
 0xe7e   : > { %7438 = vpow2.f32 %v3154_v39  ;;  %7197 = vmatprep.subr.bf16.mxu1 %v7550_v25  ;;  %v7198_v39 = vpack.c.bf16 %v3458_v22, %v3457_v54 }
 0xe81   : > { %7199 = vmatpush3.bf16.msra.mxu1 %v7198_v39 }
 0xe82   : > { %7200 = vmatprep.subr.bf16.mxu1 %v7550_v25 }
 0xe88   : > { %v7439_v52 = vpop.eup %7438 }
 0xe89   : > { %v3156_v46 = vsel %vm1885_vm2, %v7439_v52, 0.0 }
 0xe8a   : > { %3157 = vadd.xlane.f32.xlu0 %v3156_v46  ;;  %v3460_v46 = vld [vmem:[%s8734_s22 + $0x38] sm:$0xff] }
 0xea0   : > { %3161 = vrot.lane.b32.xlu0 %v8002_v35, %s8690_s19  ;;  %s8732_s19 = sld [smem:[#allocation20_spill]] }
 0xea6   : > { %v6236_v16 = vld [vmem:[%s8732_s19] ss:$0 sm:$0xff] }
 0xf17   : > { %v3158_v5 = vpop.xlane.xlu0 %3157 }
 0xf18   : > { %7440 = vrcp.f32 %v3158_v5 }
 0xf1b   : > { %v3162_v6 = vpop.permute.xlu0 %3161 }
 0xf1c   : > { %6798 = vmatpush3.msra.mxu0 %v3162_v6  ;;  %v6238_v6 = vld [vmem:[%s8735_s30] ss:$0 sm:$0xff] }
 0xf1d   : > { %6802 = vmatprep.subr.mxu0 %v7553_v30 }
 0xf22   : > { %v7441_v3 = vpop.eup %7440 }
 0xf23   : > { %v3160_v43 = vmul.f32 %v7441_v3, %v7439_v52  ;;  %v3459_v52 = vld [vmem:[%s8734_s22 + $0x30] sm:$0xff] }
 0xf24   : > { %v7201_v5 = vpack.c.bf16 %v3460_v46, %v3459_v52 }
 0xf25   : > { %6800 = vmatmul.mubr.msk.f32.vlgmr.msra.gmra.mrb[24].mxu0 %vm1885_vm2, %v3160_v43 }
 0xf26   : > { %6804 = vmatprep.mubr.msk.f32.mxu0 %vm7552_vm0, %v7553_v30  ;;  %6803 = vmatpush3.msra.mxu0 %v1880_v56 }
 0xf27   : > { %7185 = vmatprep.subr.bf16.mxu0 %v7550_v25  ;;  %7202 = vmatpush3.bf16.msra.mxu1 %v7201_v5  ;;  %v6246_v5 = vld [vmem:[%s7619_s14 + $0x20] sm:$0xff] }
 0xff8   : > { %v3233_v20 = vpop.f32.mrb[24].mxu0 }
 0xff9   : > { %v6801_v35 = vpop.f32.mrb[25].mxu0  ;;  %6805 = vmatmul.mubr.msk.f32.vlgmr.msra.gmra.mrb[26].mxu0 %vm1885_vm2, %v3233_v20 }
 0xffa   : > { %6815 = vmatprep.mubr.msk.f32.mxu0 %vm7552_vm0, %v7553_v30  ;;  %7187 = vmatpush3.bf16.msra.mxu0 %v7186_v12 }
 0xffb   : > { %7188 = vmatprep.subr.bf16.mxu0 %v7550_v25 }
0x10cc   : > { %v3306_v36 = vpop.f32.mrb[26].mxu0 }
0x10cd   : > { %v3310_v28 = vadd.f32 %v3306_v36, %v2958_v18  ;;  %v6806_v32 = vpop.f32.mrb[27].mxu0 }
0x10cf   : > { %v3311_v47 = vadd.f32 %v3310_v28, %v1164_v61  ;;  %v3345_v61 = vld [vmem:[%s8731_s1 + $0x18] sm:$0xff] }
0x10d0   : > { %v7189_v13 = vpack.c.bf16 %v3345_v61, %v3344_v57 }
0x10d1   : > { %v3314_v51 = vsel %vm1366_vm1, %v3311_v47, 0.0 }
0x10d2   : > { %3315 = vadd.xlane.f32.xlu1 %v3314_v51  ;;  %7190 = vmatpush3.bf16.msra.mxu0 %v7189_v13 }
0x10d3   : > { %7203 = vmatprep.subr.bf16.mxu0 %v7550_v25 }
0x115f   : > { %v3316_v53 = vpop.xlane.xlu1 %3315 }
0x1160   : > { %v3318_v48 = vmul.f32 0.03125, %v3316_v53 }
0x1162   : > { %v3319_v8 = vsub.f32 %v3311_v47, %v3318_v48 }
0x1164   : > { %v3320_v62 = vmul.f32 %v3319_v8, %v3319_v8 }
0x1166   : > { %v3321_v1 = vsel %vm1366_vm1, %v3320_v62, 0.0 }
0x1167   : > { %3322 = vadd.xlane.f32.xlu1 %v3321_v1 }
0x11f4   : > { %v3323_v11 = vpop.xlane.xlu1 %3322 }
0x11f5   : > { %v3324_v15 = vmul.f32 0.03125, %v3323_v11 }
0x11f7   : > { %v3325_v10 = vadd.f32 1e-05, %v3324_v15 }
0x11f9   : > { %7442 = vrsqrt.f32 %v3325_v10  ;;  %v7565_v10 = vmov -1.0  }
0x1203   : > { %v7443_v33 = vpop.eup %7442 }
0x1204   : > { %v3327_v18 = vmul.f32 %v7443_v33, %v3319_v8 }
0x1206   : > { %v3334_v23 = vmul.f32 %v6236_v16, %v3327_v18 }
0x1208   : > { %v3341_v50 = vadd.f32 %v6237_v19, %v3334_v23 }
0x120a   : > { %6816 = vmatmul.mubr.msk.f32.vlgmr.msra.gmra.mrb[28].mxu0 %vm1366_vm1, %v3341_v50 }
0x120b   : > { %6845 = vmatprep.mubr.msk.f32.mxu0 %vm7552_vm0, %v7553_v30 }
0x12dd   : > { %v3422_v3 = vpop.f32.mrb[28].mxu0 }
0x12de   : > { %v3423_v43 = vadd.f32 %v6238_v6, %v3422_v3  ;;  %v6817_v56 = vpop.f32.mrb[29].mxu0  ;;  %v6247_v6 = vld [vmem:[%s7619_s14 + $0x28] sm:$0xff] }
0x12df   : > { %v7204_v3 = vpack.c.bf16 %v6247_v6, %v6246_v5  ;;  %v6284_v5 = vld [vmem:[%s8721_s4 + $0x38] sm:$0xff] }
0x12e0   : > { %v3427_v20 = vmul.f32 0.70710677, %v3423_v43  ;;  %v3426_v18 = vmul.f32 0.5, %v3423_v43  ;;  %v6249_v43 = vld [vmem:[%s7619_s14 + $0x38] sm:$0xff] }
0x12e1   : > { %7205 = vmatpush3.bf16.msra.mxu0 %v7204_v3  ;;  %v6272_v3 = vld [vmem:[%s7654_s27 + $0x1] ss:$0 sm:$0xff] }
0x12e2   : > { %v3430_v35 = vand.u32 2147483647, %v3427_v20  ;;  %vm3428_vm4 = vcmp.ge.f32.partialorder %v3427_v20, 0.0  ;;  %7206 = vmatprep.subr.bf16.mxu0 %v7550_v25  ;;  %v6253_v20 = vld [vmem:[%s7639_s6 + $0x20] sm:$0xff] }
0x12e3   : > { %v3429_v33 = vsel %vm3428_vm4, 1.0, %v7565_v10 }
0x12e4   : > { %v3431_v36 = vmul.f32 0.3275911, %v3430_v35  ;;  %v3444_v32 = vsub.f32 0.0, %v3430_v35 }
0x12e6   : > { %v3432_v28 = vadd.f32 1.0, %v3431_v36  ;;  %v3445_v51 = vmul.f32 %v3444_v32, %v3430_v35  ;;  %v6254_v35 = vld [vmem:[%s7639_s6 + $0x28] sm:$0xff] }
0x12e7   : > { %v7209_v36 = vpack.c.bf16 %v6254_v35, %v6253_v20 }
0x12e8   : > { %7444 = vrcp.f32 %v3432_v28  ;;  %v3446_v8 = vmul.f32 1.442695, %v3445_v51 }
0x12ea   : > { %7446 = vpow2.f32 %v3446_v8  ;;  %v6243_v8 = vld [vmem:[%s8738_s3] ss:$0 sm:$0xff] }
0x12f2   : > { %v7445_v47 = vpop.eup %7444 }
0x12f3   : > { %v3435_v53 = vmul.f32 1.0614054, %v7445_v47 }
0x12f4   : > { %v7447_v13 = vpop.eup %7446 }
0x12f5   : > { %v3436_v48 = vadd.f32 -1.4531521, %v3435_v53  ;;  %v6242_v53 = vld [vmem:[%s8737_s7] ss:$0 sm:$0xff] }
0x12f7   : > { %v3437_v62 = vmul.f32 %v7445_v47, %v3436_v48 }
0x12f9   : > { %v3438_v1 = vadd.f32 1.4214138, %v3437_v62  ;;  %v6255_v62 = vld [vmem:[%s7639_s6 + $0x30] sm:$0xff] }
0x12fb   : > { %v3439_v38 = vmul.f32 %v7445_v47, %v3438_v1  ;;  %v6256_v1 = vld [vmem:[%s7639_s6 + $0x38] sm:$0xff] }
0x12fd   : > { %v3440_v9 = vadd.f32 -0.28449672, %v3439_v38 }
0x12ff   : > { %v3441_v12 = vmul.f32 %v7445_v47, %v3440_v9 }
0x1301   : > { %v3442_v57 = vadd.f32 0.2548296, %v3441_v12  ;;  %v7213_v12 = vpack.c.bf16 %v6256_v1, %v6255_v62 }
0x1303   : > { %v3443_v61 = vmul.f32 %v7445_v47, %v3442_v57 }
0x1305   : > { %v3448_v11 = vmul.f32 %v7447_v13, %v3443_v61 }
0x1307   : > { %v3449_v15 = vsub.f32 1.0, %v3448_v11 }
0x1309   : > { %v3450_v16 = vmul.f32 %v3449_v15, %v3429_v33 }
0x130b   : > { %v3451_v19 = vadd.f32 1.0, %v3450_v16 }
0x130d   : > { %v3452_v23 = vmul.f32 %v3451_v19, %v3426_v18 }
0x130f   : > { %6835 = vmatmul.mubr.msk.f32.vlgmr.msra.gmra.mrb[30].mxu1 %vm2009_vm3, %v3452_v23 }
0x13e2   : > { %v3537_v31 = vpop.f32.mrb[30].mxu1 }
0x13e3   : > { %v3538_v27 = vadd.f32 %v6240_v26, %v3537_v31  ;;  %v6836_v42 = vpop.f32.mrb[31].mxu1 }
0x13e5   : > { %v3541_v49 = vadd.f32 %v3538_v27, %v3341_v50  ;;  %v6248_v50 = vld [vmem:[%s7619_s14 + $0x30] sm:$0xff] }
0x13e6   : > { %v7207_v56 = vpack.c.bf16 %v6249_v43, %v6248_v50 }
0x13e7   : > { %v3544_v55 = vsel %vm1366_vm1, %v3541_v49, 0.0 }
0x13e8   : > { %3545 = vadd.xlane.f32.xlu1 %v3544_v55  ;;  %7208 = vmatpush3.bf16.msra.mxu0 %v7207_v56 }
0x13e9   : > { %7210 = vmatprep.subr.bf16.mxu0 %v7209_v36 }
0x1475   : > { %v3546_v54 = vpop.xlane.xlu1 %3545 }
0x1476   : > { %v3547_v22 = vmul.f32 0.03125, %v3546_v54 }
0x1478   : > { %v3548_v39 = vsub.f32 %v3541_v49, %v3547_v22 }
0x147a   : > { %v3549_v52 = vmul.f32 %v3548_v39, %v3548_v39 }
0x147c   : > { %v3550_v46 = vsel %vm1366_vm1, %v3549_v52, 0.0 }
0x147d   : > { %3551 = vadd.xlane.f32.xlu1 %v3550_v46  ;;  %v6283_v46 = vld [vmem:[%s8721_s4 + $0x30] sm:$0xff]  ;;  %s8739_s4 = smov 96  }
0x147e   : > { %v7229_v6 = vpack.c.bf16 %v6284_v5, %v6283_v46  ;;  %v8388_v46 = vld [vmem:[%s8727_s10 + $0x10] sm:$0xff] }
0x150a   : > { %v3552_v28 = vpop.xlane.xlu1 %3551 }
0x150b   : > { %v3553_v32 = vmul.f32 0.03125, %v3552_v28 }
0x150d   : > { %v3554_v47 = vadd.f32 1e-05, %v3553_v32 }
0x150f   : > { %7448 = vrsqrt.f32 %v3554_v47 }
0x1519   : > { %v7449_v51 = vpop.eup %7448 }
0x151a   : > { %v3556_v48 = vmul.f32 %v7449_v51, %v3548_v39 }
0x151c   : > { %v3563_v38 = vmul.f32 %v6242_v53, %v3556_v48 }
0x151e   : > { %v8279_v9 = vadd.f32 %v6243_v8, %v3563_v38 }
0x1520   : > { %6846 = vmatmul.mubr.msk.f32.vlgmr.msra.gmra.mrb[30].mxu0 %vm1366_vm1, %v8279_v9 }
0x1521   : > { %7212 = vmatpush3.bf16.msra.mxu0 %v7209_v36  ;;  %6856 = vmatprep.mubr.msk.f32.mxu0 %vm1366_vm1, %v1345_v63  ;;  %v6268_v63 = vld [vmem:[%s7649_s20 + $0x28] sm:$0xff] }
0x1522   : > { %7214 = vmatprep.subr.bf16.mxu0 %v7213_v12  ;;  %v7217_v0 = vpack.c.bf16 %v6268_v63, %v6267_v59 }
0x1524   : > { %7218 = vmatprep.subr.bf16.mxu1 %v7217_v0 }
0x1525   : > { %7216 = vmatpush3.bf16.msra.mxu0 %v7213_v12  ;;  %7220 = vmatpush3.bf16.msra.mxu1 %v7217_v0 }
0x1528   : > { %6857 = vmatmul.mubr.msk.f32.vlgmr.msra.gmra.mrb[32].mxu0 %vm1366_vm1, %v1346_v4  ;;  %v6269_v4 = vld [vmem:[%s7649_s20 + $0x30] sm:$0xff] }
0x1529   : > { %6859 = vmatprep.mubr.msk.f32.mxu0 %vm1366_vm1, %v1347_v29  ;;  %v7221_v29 = vpack.c.bf16 %v6270_v24, %v6269_v4 }
0x152b   : > { %7222 = vmatprep.subr.bf16.mxu1 %v7221_v29 }
0x152c   : > { %6860 = vmatmul.mubr.msk.f32.gmra.mrb[34].mxu0 %vm1366_vm1, %v1348_v41  ;;  %7224 = vmatpush3.bf16.msra.mxu1 %v7221_v29 }
0x152d   : > { %6862 = vmatprep.mubr.msk.f32.mxu0 %vm1366_vm1, %v1349_v40  ;;  %6908 = vmatprep.subr.mxu1 %v7553_v30  ;;  %v7225_v40 = vpack.c.bf16 %v6282_v37, %v6281_v34  ;;  %v6286_v37 = vld [vmem:[%s8725_s28 + $0x1] ss:$0 sm:$0xff] }
0x152f   : > { %7226 = vmatprep.subr.bf16.mxu0 %v7225_v40 }
0x1530   : > { %6863 = vmatmul.mubr.msk.f32.gmra.mrb[36].mxu0 %vm1366_vm1, %v1350_v60  ;;  %v6258_v60 = vld [vmem:[%s7644_s12 + $0x1] ss:$0 sm:$0xff] }
0x1531   : > { %6865 = vmatprep.mubr.msk.f32.mxu0 %vm1366_vm1, %v1351_v45  ;;  %7228 = vmatpush3.bf16.msra.mxu0 %v7225_v40 }
0x1532   : > { %7230 = vmatprep.subr.bf16.mxu0 %v7229_v6 }
0x1534   : > { %6866 = vmatmul.mubr.msk.f32.gmra.mrb[38].mxu0 %vm1366_vm1, %v1352_v17 }
0x1535   : > { %7232 = vmatpush3.bf16.msra.mxu0 %v7229_v6 }
0x1536   : > { %7233 = vmatprep.subr.bf16.mxu0 %v7550_v25 }
0x15f3   : > { %v8314_v41 = vpop.f32.mrb[30].mxu0 }
0x15f4   : > { %v6847_v58 = vpop.f32.mrb[31].mxu0 }
0x15fb   : > { %v6858_v14 = vpop.f32.mrb[32].mxu0 }
0x15fc   : > { %v3745_v44 = vadd.f32 %v6858_v14, %v6258_v60  ;;  %v3739_v45 = vpop.f32.mrb[33].mxu0 }
0x15fd   : > { %v3740_v17 = vadd.f32 %v6258_v60, %v3739_v45 }
0x15fe   : > { %v3779_v13 = vmax.f32 %v3745_v44, 0.0 }
0x15ff   : > { %v3778_v57 = vmax.f32 %v3740_v17, 0.0  ;;  %v6861_v61 = vpop.f32.mrb[34].mxu0 }
0x1600   : > { %v3755_v11 = vadd.f32 %v6861_v61, %v6258_v60  ;;  %v3749_v15 = vpop.f32.mrb[35].mxu0 }
0x1601   : > { %v3750_v33 = vadd.f32 %v6258_v60, %v3749_v15  ;;  %6876 = vmatprep.mubr.msk.f32.mxu1 %vm1366_vm1, %v3778_v57 }
0x1602   : > { %6877 = vmatmul.mubr.msk.f32.vlgmr.msra.gmra.mrb[32].mxu1 %vm1366_vm1, %v3779_v13  ;;  %v3781_v19 = vmax.f32 %v3755_v11, 0.0 }
0x1603   : > { %v3780_v16 = vmax.f32 %v3750_v33, 0.0  ;;  %v6864_v18 = vpop.f32.mrb[36].mxu0 }
0x1604   : > { %v3765_v23 = vadd.f32 %v6864_v18, %v6258_v60  ;;  %v3759_v26 = vpop.f32.mrb[37].mxu0 }
0x1605   : > { %v3760_v31 = vadd.f32 %v6258_v60, %v3759_v26  ;;  %6879 = vmatprep.mubr.msk.f32.mxu1 %vm1366_vm1, %v3780_v16 }
0x1606   : > { %6880 = vmatmul.mubr.msk.f32.gmra.mrb[34].mxu1 %vm1366_vm1, %v3781_v19  ;;  %v3783_v49 = vmax.f32 %v3765_v23, 0.0  ;;  %v6251_v19 = vld [vmem:[%s8726_s2 + $0x1] ss:$0 sm:$0xff]  ;;  %s6245_s2 = sld [smem:[#allocation4 + $0x81]] }
0x1607   : > { %v3782_v27 = vmax.f32 %v3760_v31, 0.0  ;;  %v6867_v42 = vpop.f32.mrb[38].mxu0  ;;  %v8367_v26 = vadd.f32 %v6251_v19, %v8314_v41  ;;  %v8379_v41 = vld [vmem:[%s8727_s10] sm:$0xff] }
0x1608   : > { %v3775_v55 = vadd.f32 %v6867_v42, %v6258_v60  ;;  %v3769_v54 = vpop.f32.mrb[39].mxu0 }
0x1609   : > { %v3770_v22 = vadd.f32 %v6258_v60, %v3769_v54  ;;  %6882 = vmatprep.mubr.msk.f32.mxu1 %vm1366_vm1, %v3782_v27  ;;  %v8375_v27 = vld [vmem:[%s8727_s10 + $0x8] sm:$0xff] }
0x160a   : > { %6883 = vmatmul.mubr.msk.f32.gmra.mrb[36].mxu1 %vm1366_vm1, %v3783_v49  ;;  %v3785_v52 = vmax.f32 %v3775_v55, 0.0 }
0x160b   : > { %v3784_v39 = vmax.f32 %v3770_v22, 0.0 }
0x160d   : > { %6885 = vmatprep.mubr.msk.f32.mxu1 %vm1366_vm1, %v3784_v39 }
0x160e   : > { %6886 = vmatmul.mubr.msk.f32.gmra.mrb[38].mxu1 %vm1366_vm1, %v3785_v52  ;;  %v8384_v52 = vld [vmem:[%s8727_s10 + $0x18] sm:$0xff] }
0x160f   : > { %6910 = vmatprep.mubr.msk.f32.mxu1 %vm7552_vm0, %v7553_v30 }
0x16d5   : > { %v6878_v50 = vpop.f32.mrb[32].mxu1 }
0x16d6   : > { %v3895_v43 = vadd.f32 %v6878_v50, %v6272_v3  ;;  %v3889_v56 = vpop.f32.mrb[33].mxu1 }
0x16d7   : > { %v3890_v20 = vadd.f32 %v6272_v3, %v3889_v56 }
0x16d8   : > { %v3929_v28 = vmax.f32 %v3895_v43, 0.0  ;;  %v8392_v43 = vld [vmem:[%s8727_s10 + $0x20] sm:$0xff] }
0x16d9   : > { %v3928_v35 = vmax.f32 %v3890_v20, 0.0  ;;  %v6881_v36 = vpop.f32.mrb[34].mxu1  ;;  %v8396_v20 = vld [vmem:[%s8727_s10 + $0x28] sm:$0xff] }
0x16da   : > { %v3905_v32 = vadd.f32 %v6881_v36, %v6272_v3  ;;  %v3899_v47 = vpop.f32.mrb[35].mxu1 }
0x16db   : > { %v3900_v51 = vadd.f32 %v6272_v3, %v3899_v47  ;;  %6896 = vmatprep.mubr.msk.f32.mxu0 %vm1366_vm1, %v3928_v35  ;;  %v8401_v47 = vld [vmem:[%s8727_s10 + $0x30] sm:$0xff] }
0x16dc   : > { %6897 = vmatmul.mubr.msk.f32.vlgmr.msra.gmra.mrb[40].mxu0 %vm1366_vm1, %v3929_v28  ;;  %v3931_v8 = vmax.f32 %v3905_v32, 0.0 }
0x16dd   : > { %v3930_v53 = vmax.f32 %v3900_v51, 0.0  ;;  %v6884_v48 = vpop.f32.mrb[36].mxu1 }
0x16de   : > { %v3915_v62 = vadd.f32 %v6884_v48, %v6272_v3  ;;  %v3909_v1 = vpop.f32.mrb[37].mxu1 }
0x16df   : > { %v3910_v38 = vadd.f32 %v6272_v3, %v3909_v1  ;;  %6899 = vmatprep.mubr.msk.f32.mxu0 %vm1366_vm1, %v3930_v53  ;;  %v8405_v53 = vld [vmem:[%s8727_s10 + $0x38] sm:$0xff]  ;;  %v8411_v1 = vmul.f32 0.35355338, %v8367_v26 }
0x16e0   : > { %6900 = vmatmul.mubr.msk.f32.gmra.mrb[42].mxu0 %vm1366_vm1, %v3931_v8  ;;  %v3933_v63 = vmax.f32 %v3915_v62, 0.0 }
0x16e1   : > { %v3932_v12 = vmax.f32 %v3910_v38, 0.0  ;;  %v6887_v59 = vpop.f32.mrb[38].mxu1  ;;  %v8420_v38 = vld [vmem:[%s8728_s11] sm:$0xff] }
0x16e2   : > { %v3925_v0 = vadd.f32 %v6887_v59, %v6272_v3  ;;  %v3919_v4 = vpop.f32.mrb[39].mxu1 }
0x16e3   : > { %v3920_v24 = vadd.f32 %v6272_v3, %v3919_v4  ;;  %6902 = vmatprep.mubr.msk.f32.mxu0 %vm1366_vm1, %v3932_v12 }
0x16e4   : > { %6903 = vmatmul.mubr.msk.f32.gmra.mrb[44].mxu0 %vm1366_vm1, %v3933_v63  ;;  %v3935_v34 = vmax.f32 %v3925_v0, 0.0  ;;  %v8428_v0 = vstv %s6245_s2  ;;  %s8741_s2 = smov 88  }
0x16e5   : > { %v3934_v29 = vmax.f32 %v3920_v24, 0.0 }
0x16e7   : > { %6905 = vmatprep.mubr.msk.f32.mxu0 %vm1366_vm1, %v3934_v29 }
0x16e8   : > { %6906 = vmatmul.mubr.msk.f32.gmra.mrb[46].mxu0 %vm1366_vm1, %v3935_v34 }
0x16e9   : > { %6929 = vmatprep.mubr.msk.f32.mxu0 %vm7552_vm0, %v7553_v30 }
0x17af   : > { %v6898_v40 = vpop.f32.mrb[40].mxu0 }
0x17b0   : > { %v8342_v58 = vadd.f32 %v6898_v40, %v6286_v37  ;;  %v4039_v60 = vpop.f32.mrb[41].mxu0 }
0x17b1   : > { %v8344_v14 = vadd.f32 %v6286_v37, %v4039_v60 }
0x17b2   : > { %4170 = vperm.xlu0 %7419, %v8342_v58  }
0x17b3   : > { %v6901_v44 = vpop.f32.mrb[42].mxu0  ;;  %4165 = vperm.xlu1 %7418, %v8344_v14  }
0x17b4   : > { %v8348_v45 = vadd.f32 %v6901_v44, %v6286_v37  ;;  %v4049_v17 = vpop.f32.mrb[43].mxu0 }
0x17b5   : > { %v8351_v61 = vadd.f32 %v6286_v37, %v4049_v17 }
0x17b6   : > { %4180 = vperm.xlu0 %7419, %v8348_v45  }
0x17b7   : > { %v6904_v57 = vpop.f32.mrb[44].mxu0 }
0x17b8   : > { %v4059_v13 = vpop.f32.mrb[45].mxu0  ;;  %v8357_v33 = vadd.f32 %v6904_v57, %v6286_v37 }
0x17b9   : > { %v8353_v11 = vadd.f32 %v6286_v37, %v4059_v13 }
0x17ba   : > { %4175 = vperm.xlu0 %7419, %v8351_v61  }
0x17bb   : > { %v6907_v15 = vpop.f32.mrb[46].mxu0  ;;  %4185 = vperm.xlu1 %7418, %v8353_v11  }
0x17bc   : > { %v4069_v16 = vpop.f32.mrb[47].mxu0  ;;  %v8364_v23 = vadd.f32 %v6907_v15, %v6286_v37 }
0x17bd   : > { %v8359_v18 = vadd.f32 %v6286_v37, %v4069_v16 }
0x17be   : > { %4190 = vperm.xlu0 %7419, %v8357_v33  }
0x17bf   : > { %4195 = vperm.xlu1 %7418, %v8359_v18  }
0x17c2   : > { %4200 = vperm.xlu0 %7419, %v8364_v23  }
0x17c3   : > { %4086 = vrot.lane.b32.xlu1 %v8367_v26, %s8739_s4  ;;  %s6244_s4 = sld [smem:[#allocation4 + $0x80]] }
0x17c4   : > { %7420 = vset.pattern.permute.xlu1 %v7545_v2 }
0x17c6   : > { %7421 = vset.pattern.permute.xlu0 %v7545_v2 }
0x17c9   : > { %v8426_v59 = vstv %s6244_s4  ;;  %s8743_s4 = smov 56  }
0x1831   : > { %v4171_v31 = vpop.permute.xlu0 %4170 }
0x1832   : > { %v4204_v42 = vmul.f32 %v8375_v27, %v4171_v31  ;;  %v4166_v49 = vpop.permute.xlu1 %4165 }
0x1833   : > { %v4203_v55 = vmul.f32 %v8379_v41, %v4166_v49 }
0x1835   : > { %v7234_v54 = vpack.c.bf16 %v4204_v42, %v4203_v55  ;;  %v4181_v22 = vpop.permute.xlu0 %4180 }
0x1836   : > { %v4206_v2 = vmul.f32 %v8384_v52, %v4181_v22 }
0x1837   : > { %7235 = vmatpush3.bf16.msra.mxu0 %v7234_v54 }
0x1838   : > { %7236 = vmatprep.subr.bf16.mxu0 %v7550_v25 }
0x1839   : > { %v4176_v39 = vpop.permute.xlu0 %4175 }
0x183a   : > { %v4205_v5 = vmul.f32 %v8388_v46, %v4176_v39  ;;  %v4186_v6 = vpop.permute.xlu1 %4185 }
0x183b   : > { %v4207_v56 = vmul.f32 %v8392_v43, %v4186_v6  ;;  %v6295_v6 = vld [vmem:[%s8729_s18 + $0x20] sm:$0xff] }
0x183c   : > { %v7237_v3 = vpack.c.bf16 %v4206_v2, %v4205_v5 }
0x183d   : > { %v4191_v50 = vpop.permute.xlu0 %4190 }
0x183e   : > { %v4208_v35 = vmul.f32 %v8396_v20, %v4191_v50  ;;  %7238 = vmatpush3.bf16.msra.mxu0 %v7237_v3  ;;  %v4196_v36 = vpop.permute.xlu1 %4195 }
0x183f   : > { %7239 = vmatprep.subr.bf16.mxu0 %v7550_v25  ;;  %v4209_v51 = vmul.f32 %v8401_v47, %v4196_v36 }
0x1840   : > { %v7240_v28 = vpack.c.bf16 %v4208_v35, %v4207_v56 }
0x1841   : > { %v4201_v32 = vpop.permute.xlu0 %4200 }
0x1842   : > { %v4210_v48 = vmul.f32 %v8405_v53, %v4201_v32  ;;  %7241 = vmatpush3.bf16.msra.mxu0 %v7240_v28  ;;  %v4087_v8 = vpop.permute.xlu1 %4086 }
0x1843   : > { %6909 = vmatpush3.xpose.msk.msra.mxu1 %vm1885_vm2, %v4087_v8  ;;  %7242 = vmatprep.subr.bf16.mxu0 %v7550_v25 }
0x1844   : > { %v7243_v62 = vpack.c.bf16 %v4210_v48, %v4209_v51  ;;  %6932 = vmatprep.subr.mxu1 %v7553_v30 }
0x1846   : > { %6911 = vmatmul.mubr.msk.f32.vlgmr.msra.gmra.mrb[40].mxu1 %vm1885_vm2, %v8411_v1  ;;  %7244 = vmatpush3.bf16.msra.mxu0 %v7243_v62 }
0x1847   : > { %7245 = vmatprep.subr.bf16.mxu0 %v7550_v25  ;;  %6934 = vmatprep.mubr.msk.f32.mxu1 %vm7552_vm0, %v7553_v30 }
0x1849   : > { %6930 = vmatmul.mubr.msk.f32.vlgmr.msra.gmra.mrb[48].mxu0 %vm2009_vm3, %v8420_v38 }
0x184a   : > { %6963 = vmatprep.mubr.msk.f32.mxu0 %vm7552_vm0, %v7553_v30 }
0x1919   : > { %v4159_v12 = vpop.f32.mrb[40].mxu1 }
0x191a   : > { %v6912_v63 = vpop.f32.mrb[41].mxu1  ;;  %v4282_v24 = vmul.f32 %v8426_v59, %v4159_v12 }
0x191c   : > { %v4277_v4 = vpop.f32.mrb[48].mxu0 }
0x191d   : > { %v4284_v29 = vmul.f32 %v8428_v0, %v4277_v4  ;;  %v6931_v34 = vpop.f32.mrb[49].mxu0 }
0x191f   : > { %v4285_v37 = vadd.f32 %v4284_v29, %v4282_v24 }
0x1921   : > { %v4286_v40 = vsel %vm1885_vm2, %v4285_v37, -inf }
0x1922   : > { %4287 = vmax.xlane.f32.xlu0 %v4286_v40 }
0x1938   : > { %4297 = vrot.lane.b32.xlu0 %v8367_v26, %s8740_s5  ;;  %s8742_s5 = smov 120  }
0x193c   : > { %4536 = vperm.xlu0 %7421, %v8342_v58  }
0x1940   : > { %4548 = vperm.xlu0 %7421, %v8353_v11  }
0x1944   : > { %4556 = vperm.xlu0 %7421, %v8359_v18  }
0x1948   : > { %4455 = vrot.lane.b32.xlu0 %v8367_v26, %s8741_s2  ;;  %s8744_s2 = smov 80  }
0x1949   : > { %7423 = vset.pattern.permute.xlu0 %v7547_v7 }
0x19af   : > { %v4288_v60 = vpop.xlane.xlu0 %4287 }
0x19b0   : > { %v4289_v44 = vsub.f32 %v4285_v37, %v4288_v60 }
0x19b2   : > { %v4290_v17 = vmul.f32 1.442695, %v4289_v44 }
0x19b3   : > { %v4298_v57 = vpop.permute.xlu0 %4297 }
0x19b4   : > { %7450 = vpow2.f32 %v4290_v17  ;;  %6933 = vmatpush3.msra.mxu1 %v4298_v57 }
0x19b5   : > { %6937 = vmatprep.subr.mxu1 %v7553_v30 }
0x19bb   : > { %v4537_v19 = vpop.permute.xlu0 %4536 }
0x19bc   : > { %v4564_v42 = vmul.f32 %v8375_v27, %v4537_v19 }
0x19be   : > { %v7451_v13 = vpop.eup %7450 }
0x19bf   : > { %v4292_v15 = vsel %vm1885_vm2, %v7451_v13, 0.0  ;;  %v4549_v39 = vpop.permute.xlu0 %4548 }
0x19c0   : > { %4293 = vadd.xlane.f32.xlu1 %v4292_v15  ;;  %v4567_v35 = vmul.f32 %v8392_v43, %v4549_v39 }
0x19c3   : > { %v4557_v28 = vpop.permute.xlu0 %4556 }
0x19c4   : > { %v4569_v48 = vmul.f32 %v8401_v47, %v4557_v28 }
0x19c7   : > { %v4456_v63 = vpop.permute.xlu0 %4455 }
0x19d1   : > { %4532 = vperm.xlu1 %7420, %v8344_v14  }
0x19d5   : > { %4540 = vperm.xlu1 %7420, %v8351_v61  }
0x19d9   : > { %4544 = vperm.xlu1 %7420, %v8348_v45  }
0x19dd   : > { %4552 = vperm.xlu1 %7420, %v8357_v33  }
0x19e1   : > { %4560 = vperm.xlu1 %7420, %v8364_v23  }
0x19e5   : > { %4453 = vrot.lane.b32.xlu1 %v8411_v1, %s8742_s5  ;;  %s8745_s5 = smov 112  }
0x19e6   : > { %7422 = vset.pattern.permute.xlu1 %v7547_v7 }
0x1a4d   : > { %v4294_v16 = vpop.xlane.xlu1 %4293 }
0x1a4e   : > { %7452 = vrcp.f32 %v4294_v16 }
0x1a51   : > { %v4533_v31 = vpop.permute.xlu1 %4532 }
0x1a52   : > { %v4563_v49 = vmul.f32 %v8379_v41, %v4533_v31 }
0x1a54   : > { %v7246_v55 = vpack.c.bf16 %v4564_v42, %v4563_v49 }
0x1a55   : > { %v4541_v54 = vpop.permute.xlu1 %4540 }
0x1a56   : > { %7247 = vmatpush3.bf16.msra.mxu0 %v7246_v55  ;;  %v4565_v7 = vmul.f32 %v8388_v46, %v4541_v54 }
0x1a57   : > { %7248 = vmatprep.subr.bf16.mxu0 %v7550_v25 }
0x1a58   : > { %v7453_v22 = vpop.eup %7452 }
0x1a59   : > { %v4296_v2 = vmul.f32 %v7453_v22, %v7451_v13  ;;  %v4545_v5 = vpop.permute.xlu1 %4544 }
0x1a5a   : > { %v4566_v3 = vmul.f32 %v8384_v52, %v4545_v5 }
0x1a5b   : > { %6935 = vmatmul.mubr.msk.f32.vlgmr.msra.gmra.mrb[42].mxu1 %vm1885_vm2, %v4296_v2  ;;  %v6296_v2 = vld [vmem:[%s8729_s18 + $0x28] sm:$0xff] }
0x1a5c   : > { %v7249_v50 = vpack.c.bf16 %v4566_v3, %v4565_v7  ;;  %6938 = vmatpush3.msra.mxu1 %v6295_v6  ;;  %6939 = vmatprep.mubr.msk.f32.mxu1 %vm7552_vm0, %v7553_v30 }
0x1a5d   : > { %v4553_v56 = vpop.permute.xlu1 %4552  ;;  %6942 = vmatprep.subr.mxu1 %v7553_v30 }
0x1a5e   : > { %v4568_v36 = vmul.f32 %v8396_v20, %v4553_v56  ;;  %7250 = vmatpush3.bf16.msra.mxu0 %v7249_v50 }
0x1a5f   : > { %7251 = vmatprep.subr.bf16.mxu0 %v7550_v25 }
0x1a60   : > { %v7252_v32 = vpack.c.bf16 %v4568_v36, %v4567_v35 }
0x1a61   : > { %v4561_v51 = vpop.permute.xlu1 %4560 }
0x1a62   : > { %v4570_v8 = vmul.f32 %v8405_v53, %v4561_v51  ;;  %7253 = vmatpush3.bf16.msra.mxu0 %v7252_v32 }
0x1a63   : > { %7254 = vmatprep.subr.bf16.mxu0 %v7550_v25 }
0x1a64   : > { %v7255_v62 = vpack.c.bf16 %v4570_v8, %v4569_v48 }
0x1a65   : > { %v4454_v24 = vpop.permute.xlu1 %4453 }
0x1a66   : > { %7256 = vmatpush3.bf16.msra.mxu0 %v7255_v62 }
0x1a67   : > { %7000 = vmatprep.subr.mxu0 %v7553_v30 }
0x1a69   : > { %6964 = vmatmul.mubr.msk.f32.vlgmr.msra.gmra.mrb[50].mxu0 %vm2009_vm3, %v8420_v38 }
0x1a6a   : > { %7002 = vmatprep.mubr.msk.f32.mxu0 %vm7552_vm0, %v7553_v30 }
0x1b2e   : > { %v4369_v12 = vpop.f32.mrb[42].mxu1 }
0x1b2f   : > { %v6936_v4 = vpop.f32.mrb[43].mxu1  ;;  %6940 = vmatmul.mubr.msk.f32.vlgmr.msra.gmra.mrb[44].mxu1 %vm1885_vm2, %v4369_v12 }
0x1b30   : > { %6943 = vmatpush3.xpose.msk.msra.mxu1 %vm1885_vm2, %v4456_v63  ;;  %6944 = vmatprep.mubr.msk.f32.mxu1 %vm7552_vm0, %v7553_v30 }
0x1b31   : > { %6966 = vmatprep.subr.mxu1 %v7553_v30 }
0x1b33   : > { %6945 = vmatmul.mubr.msk.f32.vlgmr.msra.gmra.mrb[46].mxu1 %vm1885_vm2, %v4454_v24 }
0x1b34   : > { %6968 = vmatprep.mubr.msk.f32.mxu1 %vm7552_vm0, %v7553_v30 }
0x1b3c   : > { %v4637_v29 = vpop.f32.mrb[50].mxu0 }
0x1b3d   : > { %v6965_v34 = vpop.f32.mrb[51].mxu0  ;;  %v4642_v60 = vmul.f32 %v4637_v29, %v8428_v0 }
0x1c02   : > { %v8480_v37 = vpop.f32.mrb[44].mxu1 }
0x1c03   : > { %v6941_v40 = vpop.f32.mrb[45].mxu1 }
0x1c06   : > { %v4527_v44 = vpop.f32.mrb[46].mxu1 }
0x1c07   : > { %v4641_v17 = vmul.f32 %v4527_v44, %v8426_v59  ;;  %v6946_v57 = vpop.f32.mrb[47].mxu1 }
0x1c09   : > { %v4643_v13 = vadd.f32 %v4642_v60, %v4641_v17  ;;  %v6305_v17 = vld [vmem:[%s8730_s26 + $0x1] ss:$0 sm:$0xff] }
0x1c0a   : > { %v4452_v57 = vadd.f32 %v6305_v17, %v8480_v37 }
0x1c0b   : > { %v4644_v15 = vsel %vm1885_vm2, %v4643_v13, -inf }
0x1c0c   : > { %4645 = vmax.xlane.f32.xlu0 %v4644_v15 }
0x1c22   : > { %4655 = vrot.lane.b32.xlu0 %v8367_v26, %s8743_s4  ;;  %s8746_s4 = smov 48  }
0x1c26   : > { %4888 = vperm.xlu0 %7423, %v8342_v58  }
0x1c2a   : > { %4807 = vrot.lane.b32.xlu0 %v8367_v26, %s8744_s2  ;;  %s8747_s2 = smov 72  }
0x1c2e   : > { %4904 = vperm.xlu0 %7423, %v8357_v33  }
0x1c32   : > { %4908 = vperm.xlu0 %7423, %v8359_v18  }
0x1c36   : > { %7425 = vset.pattern.permute.xlu0 %v7549_v21 }
0x1c99   : > { %v4646_v16 = vpop.xlane.xlu0 %4645 }
0x1c9a   : > { %v4647_v19 = vsub.f32 %v4643_v13, %v4646_v16 }
0x1c9c   : > { %v4648_v31 = vmul.f32 1.442695, %v4647_v19 }
0x1c9d   : > { %v4656_v42 = vpop.permute.xlu0 %4655 }
0x1c9e   : > { %7454 = vpow2.f32 %v4648_v31  ;;  %6967 = vmatpush3.msra.mxu1 %v4656_v42 }
0x1c9f   : > { %6971 = vmatprep.subr.mxu1 %v7553_v30 }
0x1ca5   : > { %v4889_v3 = vpop.permute.xlu0 %4888 }
0x1ca6   : > { %v4916_v28 = vmul.f32 %v8375_v27, %v4889_v3 }
0x1ca8   : > { %v7455_v49 = vpop.eup %7454 }
0x1ca9   : > { %v4650_v55 = vsel %vm1885_vm2, %v7455_v49, 0.0  ;;  %v4808_v56 = vpop.permute.xlu0 %4807 }
0x1caa   : > { %4651 = vadd.xlane.f32.xlu1 %v4650_v55 }
0x1cad   : > { %v4905_v8 = vpop.permute.xlu0 %4904 }
0x1cae   : > { %v4920_v24 = vmul.f32 %v8396_v20, %v4905_v8 }
0x1cb1   : > { %v4909_v29 = vpop.permute.xlu0 %4908 }
0x1cb2   : > { %v4921_v60 = vmul.f32 %v8401_v47, %v4909_v29 }
0x1cbb   : > { %4884 = vperm.xlu1 %7422, %v8344_v14  }
0x1cbf   : > { %4892 = vperm.xlu1 %7422, %v8351_v61  }
0x1cc3   : > { %4896 = vperm.xlu1 %7422, %v8348_v45  }
0x1cc7   : > { %4900 = vperm.xlu1 %7422, %v8353_v11  }
0x1ccb   : > { %4805 = vrot.lane.b32.xlu1 %v8411_v1, %s8745_s5  ;;  %s8748_s5 = smov 104  }
0x1ccf   : > { %4912 = vperm.xlu1 %7422, %v8364_v23  }
0x1cd3   : > { %7424 = vset.pattern.permute.xlu1 %v7549_v21 }
0x1d37   : > { %v4652_v54 = vpop.xlane.xlu1 %4651 }
0x1d38   : > { %7456 = vrcp.f32 %v4652_v54 }
0x1d3b   : > { %v4885_v5 = vpop.permute.xlu1 %4884 }
0x1d3c   : > { %v4915_v21 = vmul.f32 %v8379_v41, %v4885_v5 }
0x1d3e   : > { %v7258_v51 = vpack.c.bf16 %v4916_v28, %v4915_v21 }
0x1d3f   : > { %v4893_v6 = vpop.permute.xlu1 %4892 }
0x1d40   : > { %v4917_v62 = vmul.f32 %v8388_v46, %v4893_v6 }
0x1d42   : > { %v7457_v22 = vpop.eup %7456 }
0x1d43   : > { %v4654_v39 = vmul.f32 %v7457_v22, %v7455_v49  ;;  %v4897_v7 = vpop.permute.xlu1 %4896 }
0x1d44   : > { %v4918_v48 = vmul.f32 %v8384_v52, %v4897_v7 }
0x1d45   : > { %6969 = vmatmul.mubr.msk.f32.vlgmr.msra.gmra.mrb[48].mxu1 %vm1885_vm2, %v4654_v39 }
0x1d46   : > { %6972 = vmatpush3.msra.mxu1 %v6296_v2  ;;  %6973 = vmatprep.mubr.msk.f32.mxu1 %vm7552_vm0, %v7553_v30  ;;  %v7261_v12 = vpack.c.bf16 %v4918_v48, %v4917_v62 }
0x1d47   : > { %6976 = vmatprep.subr.mxu1 %v7553_v30  ;;  %v4901_v50 = vpop.permute.xlu1 %4900 }
0x1d48   : > { %v4919_v63 = vmul.f32 %v8392_v43, %v4901_v50  ;;  %v6297_v50 = vld [vmem:[%s8729_s18 + $0x30] sm:$0xff] }
0x1d4a   : > { %v7264_v34 = vpack.c.bf16 %v4920_v24, %v4919_v63 }
0x1d4b   : > { %v4806_v32 = vpop.permute.xlu1 %4805 }
0x1d4f   : > { %v4913_v4 = vpop.permute.xlu1 %4912 }
0x1d50   : > { %v4922_v40 = vmul.f32 %v8405_v53, %v4913_v4 }
0x1d52   : > { %v7267_v44 = vpack.c.bf16 %v4922_v40, %v4921_v60 }
0x1e18   : > { %v4727_v35 = vpop.f32.mrb[48].mxu1 }
0x1e19   : > { %v6970_v36 = vpop.f32.mrb[49].mxu1  ;;  %6974 = vmatmul.mubr.msk.f32.vlgmr.msra.gmra.mrb[50].mxu1 %vm1885_vm2, %v4727_v35 }
0x1e1a   : > { %6977 = vmatpush3.xpose.msk.msra.mxu1 %vm1885_vm2, %v4808_v56  ;;  %6978 = vmatprep.mubr.msk.f32.mxu1 %vm7552_vm0, %v7553_v30 }
0x1e1b   : > { %7257 = vmatprep.subr.bf16.mxu1 %v7550_v25 }
0x1e1d   : > { %6979 = vmatmul.mubr.msk.f32.vlgmr.msra.gmra.mrb[52].mxu1 %vm1885_vm2, %v4806_v32 }
0x1e1e   : > { %7259 = vmatpush3.bf16.msra.mxu1 %v7258_v51  ;;  %6997 = vmatprep.mubr.msk.f32.mxu1 %vm7552_vm0, %v7553_v30 }
0x1e1f   : > { %7260 = vmatprep.subr.bf16.mxu1 %v7550_v25 }
0x1e22   : > { %7262 = vmatpush3.bf16.msra.mxu1 %v7261_v12 }
0x1e23   : > { %7263 = vmatprep.subr.bf16.mxu1 %v7550_v25 }
0x1e26   : > { %7265 = vmatpush3.bf16.msra.mxu1 %v7264_v34 }
0x1e27   : > { %7266 = vmatprep.subr.bf16.mxu1 %v7550_v25 }
0x1e2a   : > { %7268 = vmatpush3.bf16.msra.mxu1 %v7267_v44 }
0x1e2b   : > { %7034 = vmatprep.subr.mxu1 %v7553_v30 }
0x1e2d   : > { %6998 = vmatmul.mubr.msk.f32.vlgmr.msra.gmra.mrb[54].mxu1 %vm2009_vm3, %v8420_v38 }
0x1e2e   : > { %7036 = vmatprep.mubr.msk.f32.mxu1 %vm7552_vm0, %v7553_v30 }
0x1eec   : > { %v4800_v13 = vpop.f32.mrb[50].mxu1 }
0x1eed   : > { %v8534_v15 = vadd.f32 %v4800_v13, %v4452_v57  ;;  %v6975_v16 = vpop.f32.mrb[51].mxu1 }
0x1ef0   : > { %v4879_v19 = vpop.f32.mrb[52].mxu1 }
0x1ef1   : > { %v6980_v31 = vpop.f32.mrb[53].mxu1  ;;  %v4993_v49 = vmul.f32 %v4879_v19, %v8426_v59 }
0x1f00   : > { %v4989_v42 = vpop.f32.mrb[54].mxu1 }
0x1f01   : > { %v4994_v55 = vmul.f32 %v4989_v42, %v8428_v0  ;;  %v6999_v54 = vpop.f32.mrb[55].mxu1 }
0x1f03   : > { %v4995_v22 = vadd.f32 %v4994_v55, %v4993_v49 }
0x1f05   : > { %v4996_v39 = vsel %vm1885_vm2, %v4995_v22, -inf }
0x1f06   : > { %4997 = vmax.xlane.f32.xlu0 %v4996_v39 }
0x1f1c   : > { %5007 = vrot.lane.b32.xlu0 %v8367_v26, %s8746_s4  ;;  %s8749_s4 = smov 40  }
0x1f20   : > { %5240 = vperm.xlu0 %7425, %v8342_v58  }
0x1f24   : > { %5159 = vrot.lane.b32.xlu0 %v8367_v26, %s8747_s2  ;;  %s8750_s2 = sld [smem:[#allocation24_spill]] }
0x1f28   : > { %5256 = vperm.xlu0 %7425, %v8357_v33  }
0x1f2c   : > { %5260 = vperm.xlu0 %7425, %v8359_v18  }
0x1f93   : > { %v4998_v37 = vpop.xlane.xlu0 %4997 }
0x1f94   : > { %v4999_v2 = vsub.f32 %v4995_v22, %v4998_v37 }
0x1f96   : > { %v5000_v5 = vmul.f32 1.442695, %v4999_v2 }
0x1f97   : > { %v5008_v6 = vpop.permute.xlu0 %5007 }
0x1f98   : > { %7458 = vpow2.f32 %v5000_v5  ;;  %7001 = vmatpush3.msra.mxu0 %v5008_v6 }
0x1f99   : > { %7005 = vmatprep.subr.mxu0 %v7553_v30 }
0x1fa2   : > { %v7459_v7 = vpop.eup %7458 }
0x1fa3   : > { %v5002_v3 = vsel %vm1885_vm2, %v7459_v7, 0.0 }
0x1fa4   : > { %5003 = vadd.xlane.f32.xlu1 %v5002_v3 }
0x1fb5   : > { %5236 = vperm.xlu1 %7424, %v8344_v14  }
0x1fb9   : > { %5244 = vperm.xlu1 %7424, %v8351_v61  }
0x1fbd   : > { %5248 = vperm.xlu1 %7424, %v8348_v45  }
0x1fc1   : > { %5252 = vperm.xlu1 %7424, %v8353_v11   ;;  %v5241_v11 = vpop.permute.xlu0 %5240 }
0x1fc2   : > { %v5268_v36 = vmul.f32 %v8375_v27, %v5241_v11 }
0x1fc5   : > { %5157 = vrot.lane.b32.xlu1 %v8411_v1, %s8748_s5  ;;  %v5160_v56 = vpop.permute.xlu0 %5159  ;;  %s8751_s5 = sld [smem:[#allocation26_spill]] }
0x1fc9   : > { %5264 = vperm.xlu1 %7424, %v8364_v23   ;;  %v5257_v48 = vpop.permute.xlu0 %5256 }
0x1fca   : > { %v5272_v12 = vmul.f32 %v8396_v20, %v5257_v48 }
0x1fcd   : > { %v5261_v63 = vpop.permute.xlu0 %5260 }
0x2031   : > { %v5004_v58 = vpop.xlane.xlu1 %5003 }
0x2032   : > { %7460 = vrcp.f32 %v5004_v58 }
0x2035   : > { %v5237_v14 = vpop.permute.xlu1 %5236 }
0x2036   : > { %v5267_v23 = vmul.f32 %v8379_v41, %v5237_v14  ;;  %v6327_v14 = vld [vmem:[%s8731_s1 + $0x30] sm:$0xff] }
0x2038   : > { %v7270_v32 = vpack.c.bf16 %v5268_v36, %v5267_v23  ;;  %v6323_v23 = vld [vmem:[%s8732_s19 + $0x1] ss:$0 sm:$0xff] }
0x2039   : > { %v5245_v45 = vpop.permute.xlu1 %5244 }
0x203a   : > { %v5269_v41 = vmul.f32 %v8388_v46, %v5245_v45  ;;  %v5273_v46 = vmul.f32 %v8401_v47, %v5261_v63 }
0x203c   : > { %v7461_v33 = vpop.eup %7460 }
0x203d   : > { %v5006_v18 = vmul.f32 %v7461_v33, %v7459_v7  ;;  %v5249_v61 = vpop.permute.xlu1 %5248  ;;  %v6325_v33 = vld [vmem:[%s8731_s1 + $0x20] sm:$0xff] }
0x203e   : > { %v5270_v51 = vmul.f32 %v8384_v52, %v5249_v61 }
0x203f   : > { %7003 = vmatmul.mubr.msk.f32.vlgmr.msra.gmra.mrb[52].mxu0 %vm1885_vm2, %v5006_v18  ;;  %v6326_v18 = vld [vmem:[%s8731_s1 + $0x28] sm:$0xff] }
0x2040   : > { %7006 = vmatpush3.msra.mxu0 %v6297_v50  ;;  %7007 = vmatprep.mubr.msk.f32.mxu0 %vm7552_vm0, %v7553_v30  ;;  %v7273_v27 = vpack.c.bf16 %v5270_v51, %v5269_v41  ;;  %v7282_v50 = vpack.c.bf16 %v6326_v18, %v6325_v33  ;;  %v6333_v51 = vld [vmem:[%s8734_s22 + $0x48] sm:$0xff]  ;;  %v6334_v41 = vld [vmem:[%s8734_s22 + $0x50] sm:$0xff] }
0x2041   : > { %7010 = vmatprep.subr.mxu0 %v7553_v30  ;;  %v5253_v1 = vpop.permute.xlu1 %5252 }
0x2042   : > { %v5271_v8 = vmul.f32 %v8392_v43, %v5253_v1 }
0x2044   : > { %v7276_v52 = vpack.c.bf16 %v5272_v12, %v5271_v8  ;;  %v6337_v12 = vld [vmem:[%s8734_s22 + $0x68] sm:$0xff] }
0x2045   : > { %v5158_v28 = vpop.permute.xlu1 %5157 }
0x2049   : > { %v5265_v62 = vpop.permute.xlu1 %5264 }
0x204a   : > { %v5274_v4 = vmul.f32 %v8405_v53, %v5265_v62  ;;  %v6336_v62 = vld [vmem:[%s8734_s22 + $0x60] sm:$0xff] }
0x204b   : > { %v7294_v63 = vpack.c.bf16 %v6337_v12, %v6336_v62  ;;  %v6345_v62 = vld [vmem:[%s8737_s7 + $0x1] ss:$0 sm:$0xff] }
0x204c   : > { %v7279_v24 = vpack.c.bf16 %v5274_v4, %v5273_v46  ;;  %v6339_v4 = vld [vmem:[%s8734_s22 + $0x78] sm:$0xff] }
0x2112   : > { %v5079_v21 = vpop.f32.mrb[52].mxu0 }
0x2113   : > { %v7004_v35 = vpop.f32.mrb[53].mxu0  ;;  %7008 = vmatmul.mubr.msk.f32.vlgmr.msra.gmra.mrb[54].mxu0 %vm1885_vm2, %v5079_v21 }
0x2114   : > { %7011 = vmatpush3.xpose.msk.msra.mxu0 %vm1885_vm2, %v5160_v56  ;;  %7012 = vmatprep.mubr.msk.f32.mxu0 %vm7552_vm0, %v7553_v30  ;;  %v6324_v35 = vld [vmem:[%s8733_s0 + $0x1] ss:$0 sm:$0xff]  ;;  %s1084_s0 = scalar_lea.vmem %s7737_s21, %s8755_s15 }
0x2115   : > { %7269 = vmatprep.subr.bf16.mxu0 %v7550_v25 }
0x2117   : > { %7013 = vmatmul.mubr.msk.f32.vlgmr.msra.gmra.mrb[56].mxu0 %vm1885_vm2, %v5158_v28 }
0x2118   : > { %7271 = vmatpush3.bf16.msra.mxu0 %v7270_v32  ;;  %7031 = vmatprep.mubr.msk.f32.mxu0 %vm7552_vm0, %v7553_v30  ;;  %v6332_v32 = vld [vmem:[%s8734_s22 + $0x40] sm:$0xff] }
0x2119   : > { %7272 = vmatprep.subr.bf16.mxu0 %v7550_v25  ;;  %v7288_v48 = vpack.c.bf16 %v6333_v51, %v6332_v32  ;;  %v5959_v32 = vld [vmem:[%s7727_s24 + $0x18] sm:$0xff] }
0x211c   : > { %7274 = vmatpush3.bf16.msra.mxu0 %v7273_v27  ;;  %v6335_v27 = vld [vmem:[%s8734_s22 + $0x58] sm:$0xff] }
0x211d   : > { %7275 = vmatprep.subr.bf16.mxu0 %v7550_v25  ;;  %v7291_v8 = vpack.c.bf16 %v6335_v27, %v6334_v41 }
0x2120   : > { %7277 = vmatpush3.bf16.msra.mxu0 %v7276_v52  ;;  %v6338_v52 = vld [vmem:[%s8734_s22 + $0x70] sm:$0xff] }
0x2121   : > { %7278 = vmatprep.subr.bf16.mxu0 %v7550_v25  ;;  %v7297_v46 = vpack.c.bf16 %v6339_v4, %v6338_v52  ;;  %v5871_v52 = vld [vmem:[%s8751_s5 + $0x8] sm:$0xff]  ;;  %v6346_v4 = vld [vmem:[%s8738_s3 + $0x1] ss:$0 sm:$0xff] }
0x2124   : > { %7280 = vmatpush3.bf16.msra.mxu0 %v7279_v24  ;;  %v6330_v24 = vld [vmem:[%s8735_s30 + $0x1] ss:$0 sm:$0xff] }
0x2125   : > { %7287 = vmatprep.subr.bf16.mxu0 %v7550_v25 }
0x2127   : > { %7032 = vmatmul.mubr.msk.f32.vlgmr.msra.gmra.mrb[58].mxu0 %vm2009_vm3, %v8420_v38 }
0x2128   : > { %7071 = vmatprep.mubr.msk.f32.mxu0 %vm7552_vm0, %v7553_v30  ;;  %7289 = vmatpush3.bf16.msra.mxu0 %v7288_v48 }
0x2129   : > { %7290 = vmatprep.subr.bf16.mxu0 %v7550_v25 }
0x212c   : > { %7292 = vmatpush3.bf16.msra.mxu0 %v7291_v8 }
0x212d   : > { %7293 = vmatprep.subr.bf16.mxu0 %v7550_v25 }
0x2130   : > { %7295 = vmatpush3.bf16.msra.mxu0 %v7294_v63  ;;  %v5870_v63 = vld [vmem:[%s8751_s5] sm:$0xff] }
0x2131   : > { %7296 = vmatprep.subr.bf16.mxu0 %v7550_v25 }
0x2134   : > { %7298 = vmatpush3.bf16.msra.mxu0 %v7297_v46 }
0x2135   : > { %7311 = vmatprep.subr.bf16.mxu0 %v7550_v25 }
0x21e6   : > { %v5152_v43 = vpop.f32.mrb[54].mxu0 }
0x21e7   : > { %v5156_v20 = vadd.f32 %v5152_v43, %v8534_v15  ;;  %v7009_v29 = vpop.f32.mrb[55].mxu0 }
0x21ea   : > { %v5231_v53 = vpop.f32.mrb[56].mxu0 }
0x21eb   : > { %v7014_v34 = vpop.f32.mrb[57].mxu0  ;;  %v5345_v40 = vmul.f32 %v5231_v53, %v8426_v59 }
0x21fa   : > { %v5341_v47 = vpop.f32.mrb[58].mxu0 }
0x21fb   : > { %v5346_v60 = vmul.f32 %v5341_v47, %v8428_v0  ;;  %v7033_v44 = vpop.f32.mrb[59].mxu0 }
0x21fd   : > { %v5347_v17 = vadd.f32 %v5346_v60, %v5345_v40 }
0x21ff   : > { %v5348_v57 = vsel %vm1885_vm2, %v5347_v17, -inf }
0x2200   : > { %5349 = vmax.xlane.f32.xlu0 %v5348_v57 }
0x2216   : > { %5359 = vrot.lane.b32.xlu0 %v8367_v26, %s8749_s4  ;;  %v6298_v26 = vld [vmem:[%s8729_s18 + $0x38] sm:$0xff]  ;;  %s8752_s4 = sld [smem:[#allocation25_spill]] }
0x228d   : > { %v5350_v38 = vpop.xlane.xlu0 %5349 }
0x228e   : > { %v5351_v13 = vsub.f32 %v5347_v17, %v5350_v38 }
0x2290   : > { %v5352_v15 = vmul.f32 1.442695, %v5351_v13 }
0x2291   : > { %v5360_v16 = vpop.permute.xlu0 %5359 }
0x2292   : > { %7462 = vpow2.f32 %v5352_v15  ;;  %7035 = vmatpush3.msra.mxu1 %v5360_v16 }
0x2293   : > { %7039 = vmatprep.subr.mxu1 %v7553_v30 }
0x229c   : > { %v7463_v59 = vpop.eup %7462 }
0x229d   : > { %v5354_v0 = vsel %vm1885_vm2, %v7463_v59, 0.0 }
0x229e   : > { %5355 = vadd.xlane.f32.xlu1 %v5354_v0 }
0x232b   : > { %v5356_v19 = vpop.xlane.xlu1 %5355 }
0x232c   : > { %7464 = vrcp.f32 %v5356_v19 }
0x2336   : > { %v7465_v31 = vpop.eup %7464 }
0x2337   : > { %v5358_v42 = vmul.f32 %v7465_v31, %v7463_v59 }
0x2339   : > { %7037 = vmatmul.mubr.msk.f32.vlgmr.msra.gmra.mrb[56].mxu1 %vm1885_vm2, %v5358_v42 }
0x233a   : > { %7041 = vmatprep.mubr.msk.f32.mxu1 %vm7552_vm0, %v7553_v30  ;;  %7040 = vmatpush3.msra.mxu1 %v6298_v26 }
0x233b   : > { %7281 = vmatprep.subr.bf16.mxu1 %v7550_v25 }
0x240c   : > { %v5431_v49 = vpop.f32.mrb[56].mxu1 }
0x240d   : > { %v7038_v55 = vpop.f32.mrb[57].mxu1  ;;  %7042 = vmatmul.mubr.msk.f32.vlgmr.msra.gmra.mrb[58].mxu1 %vm1885_vm2, %v5431_v49 }
0x240e   : > { %7052 = vmatprep.mubr.msk.f32.mxu1 %vm7552_vm0, %v7553_v30  ;;  %7283 = vmatpush3.bf16.msra.mxu1 %v7282_v50 }
0x240f   : > { %7284 = vmatprep.subr.bf16.mxu1 %v7550_v25 }
0x24e0   : > { %v5504_v54 = vpop.f32.mrb[58].mxu1 }
0x24e1   : > { %v5508_v22 = vadd.f32 %v5504_v54, %v5156_v20  ;;  %v7043_v39 = vpop.f32.mrb[59].mxu1 }
0x24e3   : > { %v5509_v37 = vadd.f32 %v5508_v22, %v8279_v9  ;;  %v6328_v9 = vld [vmem:[%s8731_s1 + $0x38] sm:$0xff]  ;;  %s8753_s1 = sshll.u32 %s8755_s15, 3 }
0x24e4   : > { %v7285_v45 = vpack.c.bf16 %v6328_v9, %v6327_v14 }
0x24e5   : > { %v5514_v2 = vsel %vm1366_vm1, %v5509_v37, 0.0 }
0x24e6   : > { %5515 = vadd.xlane.f32.xlu1 %v5514_v2  ;;  %7286 = vmatpush3.bf16.msra.mxu1 %v7285_v45  ;;  %v5785_v45 = vld [vmem:[%s8750_s2] sm:$0xff] }
0x24e7   : > { %7299 = vmatprep.subr.bf16.mxu1 %v7550_v25 }
0x2573   : > { %v5516_v5 = vpop.xlane.xlu1 %5515 }
0x2574   : > { %v5517_v6 = vmul.f32 0.03125, %v5516_v5  ;;  %v6341_v5 = vld [vmem:[%s8736_s23 + $0x1] ss:$0 sm:$0xff] }
0x2576   : > { %v5518_v7 = vsub.f32 %v5509_v37, %v5517_v6 }
0x2578   : > { %v5519_v3 = vmul.f32 %v5518_v7, %v5518_v7 }
0x257a   : > { %v5520_v58 = vsel %vm1366_vm1, %v5519_v3, 0.0 }
0x257b   : > { %5521 = vadd.xlane.f32.xlu1 %v5520_v58 }
0x2608   : > { %v5522_v61 = vpop.xlane.xlu1 %5521 }
0x2609   : > { %v5523_v11 = vmul.f32 0.03125, %v5522_v61  ;;  %v5786_v61 = vld [vmem:[%s8750_s2 + $0x8] sm:$0xff] }
0x260b   : > { %v5524_v1 = vadd.f32 1e-05, %v5523_v11  ;;  %v7300_v11 = vpack.c.bf16 %v5786_v61, %v5785_v45 }
0x260d   : > { %7466 = vrsqrt.f32 %v5524_v1  ;;  %v5787_v1 = vld [vmem:[%s8750_s2 + $0x10] sm:$0xff] }
0x2617   : > { %v7467_v56 = vpop.eup %7466 }
0x2618   : > { %v5526_v21 = vmul.f32 %v7467_v56, %v5518_v7  ;;  %v5788_v56 = vld [vmem:[%s8750_s2 + $0x18] sm:$0xff]  ;;  %s1081_s2 = scalar_lea.vmem %s7732_s17, %s8753_s1 }
0x261a   : > { %v5533_v36 = vmul.f32 %v6323_v23, %v5526_v21  ;;  %v7303_v23 = vpack.c.bf16 %v5788_v56, %v5787_v1  ;;  %v5956_v21 = vld [vmem:[%s7727_s24] sm:$0xff] }
0x261c   : > { %v5540_v28 = vadd.f32 %v6324_v35, %v5533_v36  ;;  %v5957_v35 = vld [vmem:[%s7727_s24 + $0x8] sm:$0xff]  ;;  %v5958_v36 = vld [vmem:[%s7727_s24 + $0x10] sm:$0xff] }
0x261d   : > { %v7315_v51 = vpack.c.bf16 %v5959_v32, %v5958_v36 }
0x261e   : > { %7053 = vmatmul.mubr.msk.f32.vlgmr.msra.gmra.mrb[60].mxu1 %vm1366_vm1, %v5540_v28 }
0x261f   : > { %7082 = vmatprep.mubr.msk.f32.mxu1 %vm7552_vm0, %v7553_v30  ;;  %7301 = vmatpush3.bf16.msra.mxu1 %v7300_v11 }
0x2620   : > { %7302 = vmatprep.subr.bf16.mxu1 %v7550_v25 }
0x2623   : > { %7304 = vmatpush3.bf16.msra.mxu1 %v7303_v23 }
0x2624   : > { %7305 = vmatprep.subr.bf16.mxu1 %v7550_v25 }
0x26f1   : > { %v5623_v43 = vpop.f32.mrb[60].mxu1 }
0x26f2   : > { %v5624_v20 = vadd.f32 %v6330_v24, %v5623_v43  ;;  %v7054_v29 = vpop.f32.mrb[61].mxu1  ;;  %v7306_v24 = vpack.c.bf16 %v5871_v52, %v5870_v63 }
0x26f4   : > { %v5628_v53 = vmul.f32 0.70710677, %v5624_v20  ;;  %v5627_v39 = vmul.f32 0.5, %v5624_v20 }
0x26f6   : > { %v5631_v34 = vand.u32 2147483647, %v5628_v53  ;;  %vm5629_vm5 = vcmp.ge.f32.partialorder %v5628_v53, 0.0 }
0x26f7   : > { %v5630_v54 = vsel %vm5629_vm5, 1.0, %v7565_v10 }
0x26f8   : > { %v5632_v47 = vmul.f32 0.3275911, %v5631_v34  ;;  %v5645_v60 = vsub.f32 0.0, %v5631_v34 }
0x26fa   : > { %v5633_v40 = vadd.f32 1.0, %v5632_v47  ;;  %v5646_v17 = vmul.f32 %v5645_v60, %v5631_v34 }
0x26fc   : > { %7468 = vrcp.f32 %v5633_v40  ;;  %v5647_v13 = vmul.f32 1.442695, %v5646_v17  ;;  %v5872_v17 = vld [vmem:[%s8751_s5 + $0x10] sm:$0xff] }
0x26fe   : > { %7470 = vpow2.f32 %v5647_v13  ;;  %v6347_v13 = vld [vmem:[%s8752_s4] ss:$0 sm:$0xff] }
0x2706   : > { %v7469_v44 = vpop.eup %7468 }
0x2707   : > { %v5636_v57 = vmul.f32 1.0614054, %v7469_v44 }
0x2708   : > { %v7471_v26 = vpop.eup %7470 }
0x2709   : > { %v5637_v38 = vadd.f32 -1.4531521, %v5636_v57  ;;  %v5873_v57 = vld [vmem:[%s8751_s5 + $0x18] sm:$0xff] }
0x270b   : > { %v5638_v15 = vmul.f32 %v7469_v44, %v5637_v38  ;;  %v7309_v38 = vpack.c.bf16 %v5873_v57, %v5872_v17 }
0x270d   : > { %v5639_v16 = vadd.f32 1.4214138, %v5638_v15 }
0x270f   : > { %v5640_v59 = vmul.f32 %v7469_v44, %v5639_v16 }
0x2711   : > { %v5641_v0 = vadd.f32 -0.28449672, %v5640_v59  ;;  %v5960_v59 = vld [vmem:[#allocation3] sm:$0x1] }
0x2713   : > { %v5642_v19 = vmul.f32 %v7469_v44, %v5641_v0 }
0x2715   : > { %v5643_v31 = vadd.f32 0.2548296, %v5642_v19 }
0x2717   : > { %v5644_v42 = vmul.f32 %v7469_v44, %v5643_v31 }
0x2719   : > { %v5649_v49 = vmul.f32 %v7471_v26, %v5644_v42  ;;  %v6349_v42 = vld [vmem:[#allocation2] ss:$0 sm:$0xff] }
0x271b   : > { %v5650_v55 = vsub.f32 1.0, %v5649_v49 }
0x271d   : > { %v5651_v22 = vmul.f32 %v5650_v55, %v5630_v54 }
0x271f   : > { %v5652_v37 = vadd.f32 1.0, %v5651_v22 }
0x2721   : > { %v5653_v2 = vmul.f32 %v5652_v37, %v5627_v39 }
0x2723   : > { %7072 = vmatmul.mubr.msk.f32.vlgmr.msra.gmra.mrb[60].mxu0 %vm2009_vm3, %v5653_v2 }
0x2724   : > { %7104 = vmatprep.mubr.msk.f32.mxu0 %vm7552_vm0, %v7553_v30 }
0x27f6   : > { %v5740_v6 = vpop.f32.mrb[60].mxu0 }
0x27f7   : > { %v5741_v7 = vadd.f32 %v6341_v5, %v5740_v6  ;;  %v7073_v3 = vpop.f32.mrb[61].mxu0 }
0x27f9   : > { %v5744_v58 = vadd.f32 %v5741_v7, %v5540_v28  ;;  %v7312_v28 = vpack.c.bf16 %v5957_v35, %v5956_v21 }
0x27fb   : > { %v5749_v10 = vsel %vm1366_vm1, %v5744_v58, 0.0  ;;  %7313 = vmatpush3.bf16.msra.mxu0 %v7312_v28 }
0x27fc   : > { %5750 = vadd.xlane.f32.xlu1 %v5749_v10  ;;  %7314 = vmatprep.subr.bf16.mxu0 %v7550_v25 }
0x27ff   : > { %7316 = vmatpush3.bf16.msra.mxu0 %v7315_v51 }
0x2889   : > { %v5751_v33 = vpop.xlane.xlu1 %5750 }
0x288a   : > { %v5752_v18 = vmul.f32 0.03125, %v5751_v33 }
0x288c   : > { %v5753_v50 = vsub.f32 %v5744_v58, %v5752_v18 }
0x288e   : > { %v5754_v14 = vmul.f32 %v5753_v50, %v5753_v50 }
0x2890   : > { %v5755_v9 = vsel %vm1366_vm1, %v5754_v14, 0.0 }
0x2891   : > { %5756 = vadd.xlane.f32.xlu1 %v5755_v9 }
0x291e   : > { %v5757_v48 = vpop.xlane.xlu1 %5756 }
0x291f   : > { %v5758_v41 = vmul.f32 0.03125, %v5757_v48 }
0x2921   : > { %v5759_v27 = vadd.f32 1e-05, %v5758_v41 }
0x2923   : > { %7472 = vrsqrt.f32 %v5759_v27 }
0x292d   : > { %v7473_v8 = vpop.eup %7472 }
0x292e   : > { %v5761_v12 = vmul.f32 %v7473_v8, %v5753_v50 }
0x2930   : > { %v5768_v46 = vmul.f32 %v6345_v62, %v5761_v12 }
0x2932   : > { %v5775_v43 = vadd.f32 %v6346_v4, %v5768_v46 }
0x2934   : > { %v5776_v20 = vsel %vm1366_vm1, %v5775_v43, 0.0  ;;  %7083 = vmatmul.mubr.msk.f32.vlgmr.msra.gmra.mrb[62].mxu1 %vm1366_vm1, %v5775_v43 }
0x2935   : > { %v5777_v29 = vrot.slane %v5776_v20, 4  ;;  %7307 = vmatpush3.bf16.msra.mxu1 %v7306_v24  ;;  %7093 = vmatprep.mubr.msk.f32.mxu1 %vm7552_vm0, %v7553_v30 }
0x2936   : > { %7308 = vmatprep.subr.bf16.mxu1 %v7550_v25 }
0x2937   : > { %v5778_v53 = vadd.f32 %v5777_v29, %v5776_v20 }
0x2939   : > { %v5779_v34 = vrot.slane %v5778_v53, 2  ;;  %7310 = vmatpush3.bf16.msra.mxu1 %v7309_v38 }
0x293b   : > { %v5780_v47 = vadd.f32 %v5779_v34, %v5778_v53 }
0x293d   : > { %v5781_v40 = vrot.slane %v5780_v47, 1 }
0x293f   : > { %v5782_v60 = vadd.f32 %v5781_v40, %v5780_v47 }
0x2941   : > { %v5784_v44 = vmul.f32 0.125, %v5782_v60 }
0x2943   : > { %7105 = vmatmul.mubr.msk.f32.vlgmr.msra.gmra.mrb[62].mxu0 %vm1366_vm1, %v5784_v44 }
0x2a07   : > { %v5865_v30 = vpop.f32.mrb[62].mxu1 }
0x2a08   : > { %v5866_v15 = vadd.f32 %v6347_v13, %v5865_v30  ;;  %v7084_v25 = vpop.f32.mrb[63].mxu1 }
0x2a0a   : > { %v5869_v16 = vmax.f32 %v5866_v15, 0.0 }
0x2a0c   : > { %7094 = vmatmul.mubr.msk.f32.vlgmr.msra.gmra.mrb[64].mxu1 %vm1366_vm1, %v5869_v16 }
0x2a16   : > { %v6030_v0 = vpop.f32.mrb[62].mxu0 }
0x2a17   : > { %v6031_v19 = vadd.f32 %v6030_v0, %v5960_v59  ;;  %v7106_v31 = vpop.f32.mrb[63].mxu0 }
0x2a19   : > { %6035 = vst.msk [vmem:[%s1084_s0] sm:$0x1] %vm6034_vm6, %v6031_v19 }
0x2adf   : > { %v5950_v26 = vpop.f32.mrb[64].mxu1 }
0x2ae0   : > { %v5951_v49 = vadd.f32 %v6349_v42, %v5950_v26  ;;  %v7095_v55 = vpop.f32.mrb[65].mxu1 }
0x2ae2   : > { %5955 = vst.msk [vmem:[%s1081_s2] sm:$0xff] %vm5954_vm7, %v5951_v49 }
0x2ae3 PF: > { %s85_s16 = sadd.s32 1, %s7508_s16  }
0x2ae4   : > { %p82_p1 = scmp.ge.s32.totalorder %s85_s16, 4  }
0x2ae6   :  { %84 = sbr.rel (!%p82_p1) target bundleno = 60 (0x3c), region = 254 }
0x2aed   :  { %6067 = vsyncpa [#allocation5], 1 }
0x2aee   :  { %6069 = vsyncpa [#allocation5 + $0x1], 1 }

</bundles_post_ra>
